<compile_context>
chip_gen: v5e
topology: v5e:2x2
jax: 0.10.0
libtpu: 0.0.40
codegen_flags: <defaults>
</compile_context>

<pallas_src>
import functools

import jax
import jax.numpy as jnp
from jax import lax
from jax.experimental import pallas as pl
from jax.experimental.pallas import tpu as pltpu

EPS = 1e-5
NEG_SLOPE = 0.1  # LeakyReLU negative slope


# --------------------------- Pallas kernel -----------------------------------

def _double_conv_kernel(x_ref, w1_ref, s1_ref, b1_ref, w2_ref, s2_ref, b2_ref,
                        o_ref, xbuf, col, *, H, W, C, XOFF, bb):
    """(conv3x3 + folded BN + LeakyReLU) x 2 for `bb` images, fused in VMEM.

    x_ref : (bb, C, H*W) f32   NCHW input, spatial dims flattened
    w*    : (C, 9*C)     bf16  weights flattened tap-major: j = (kh*3+kw)*C + ci
    s*,b* : (C, 1)       f32   eval-mode BN folded into per-channel scale/shift
    o_ref : (bb, C, H*W) f32   NCHW output (lane-dense last dim)
    xbuf  : (C, XB)      f32   halo-extended flat image staging buffer
    col   : (9*C, H*W)   bf16  im2col staging buffer (MXU RHS)
    """
    HW = H * W
    XB = xbuf.shape[1]

    # Horizontal zero-padding masks, generated in-kernel (no HBM mask input).
    colmod = lax.broadcasted_iota(jnp.int32, (1, HW), 1) % W
    mask_l = (colmod != 0).astype(jnp.float32)       # kw == 0 taps read w-1
    mask_r = (colmod != W - 1).astype(jnp.float32)   # kw == 2 taps read w+1

    def conv_bn_lrelu(w_ref, s_ref, b_ref):
        # im2col: 9 lane-shifted slices of the halo-extended image, border
        # columns masked, stacked along K -> one K=9*C MXU matmul.
        for k in range(9):
            kh, kw = divmod(k, 3)
            start = XOFF + (kh - 1) * W + (kw - 1)
            sl = xbuf[:, start:start + HW]
            if kw == 0:
                sl = sl * mask_l
            elif kw == 2:
                sl = sl * mask_r
            col[k * C:(k + 1) * C, :] = sl.astype(col.dtype)
        y = jnp.dot(w_ref[...], col[...], preferred_element_type=jnp.float32)
        y = y * s_ref[...] + b_ref[...]          # folded eval-mode BatchNorm
        return jnp.maximum(y, NEG_SLOPE * y)     # LeakyReLU(0.1)

    # Zero only the halo lane-columns (once); the interior [XOFF, XOFF+HW) is
    # overwritten with 128-aligned stores for every image / conv below.
    xbuf[:, :XOFF] = jnp.zeros((C, XOFF), xbuf.dtype)
    xbuf[:, XOFF + HW:] = jnp.zeros((C, XB - XOFF - HW), xbuf.dtype)

    for i in range(bb):
        xbuf[:, XOFF:XOFF + HW] = x_ref[i]       # cast to bf16 happens in im2col
        y1 = conv_bn_lrelu(w1_ref, s1_ref, b1_ref)
        xbuf[:, XOFF:XOFF + HW] = y1             # intermediate stays in VMEM
        y2 = conv_bn_lrelu(w2_ref, s2_ref, b2_ref)
        o_ref[i] = y2.astype(o_ref.dtype)


# --------------------------- wrapper ------------------------------------------

def conv_block_forward(x_nchw, kp, *, batch_block=1):
    """x_nchw: (B, C, H, W) f32 -> (B, C, H, W) f32.

    batch_block=1 keeps grid=(B,) "parallel" (right for v7x's 2 TensorCores);
    batch_block=B folds the batch into one grid step (better on v5e/v6e).
    """
    B, C, H, W = x_nchw.shape
    HW = H * W
    bb = batch_block
    assert B % bb == 0
    XOFF = -(-(W + 1) // 128) * 128          # 128-aligned left halo >= W+1
    XB = XOFF + HW + 128                     # right halo >= W+1, lane aligned

    x_flat = x_nchw.reshape(B, C, HW)        # free reshape (merge trailing dims)

    kern = functools.partial(_double_conv_kernel, H=H, W=W, C=C, XOFF=XOFF, bb=bb)
    out = pl.pallas_call(
        kern,
        out_shape=jax.ShapeDtypeStruct((B, C, HW), jnp.float32),
        grid=(B // bb,),
        in_specs=[
            pl.BlockSpec((bb, C, HW), lambda b: (b, 0, 0)),   # x (per batch blk)
            pl.BlockSpec((C, 9 * C), lambda b: (0, 0)),       # w1
            pl.BlockSpec((C, 1), lambda b: (0, 0)),           # bn1 scale
            pl.BlockSpec((C, 1), lambda b: (0, 0)),           # bn1 shift
            pl.BlockSpec((C, 9 * C), lambda b: (0, 0)),       # w2
            pl.BlockSpec((C, 1), lambda b: (0, 0)),           # bn2 scale
            pl.BlockSpec((C, 1), lambda b: (0, 0)),           # bn2 shift
        ],
        out_specs=pl.BlockSpec((bb, C, HW), lambda b: (b, 0, 0)),
        scratch_shapes=[pltpu.VMEM((C, XB), jnp.float32),
                        pltpu.VMEM((9 * C, HW), jnp.bfloat16)],
        compiler_params=pltpu.CompilerParams(
            dimension_semantics=("parallel",)),
    )(x_flat, kp['w1'], kp['s1'], kp['b1'], kp['w2'], kp['s2'], kp['b2'])

    return out.reshape(B, C, H, W)           # free reshape (split trailing dim)


# --------------------------- deterministic parameters -------------------------

def init_params(key, channels):
    keys = jax.random.split(key, 10)
    n = lambda k, s, scale=0.1: scale * jax.random.normal(k, s, jnp.float32)
    raw = dict(
        w1=n(keys[0], (channels, channels, 3, 3)),
        g1=1.0 + n(keys[1], (channels,)), be1=n(keys[2], (channels,)),
        rm1=n(keys[3], (channels,)), rv1=1.0 + jnp.abs(n(keys[4], (channels,))),
        w2=n(keys[5], (channels, channels, 3, 3)),
        g2=1.0 + n(keys[6], (channels,)), be2=n(keys[7], (channels,)),
        rm2=n(keys[8], (channels,)), rv2=1.0 + jnp.abs(n(keys[9], (channels,))),
    )

    def fold(g, be, rm, rv):                 # eval-mode BN -> scale, shift
        s = g / jnp.sqrt(rv + EPS)
        return s.reshape(-1, 1), (be - rm * s).reshape(-1, 1)

    # torch OIHW (Cout,Cin,3,3) -> (Cout, kh, kw, Cin) -> (Cout, 9*Cin) bf16
    flat_w = lambda w: jnp.transpose(w, (0, 2, 3, 1)).reshape(
        w.shape[0], 9 * w.shape[1]).astype(jnp.bfloat16)

    s1, b1 = fold(raw['g1'], raw['be1'], raw['rm1'], raw['rv1'])
    s2, b2 = fold(raw['g2'], raw['be2'], raw['rm2'], raw['rv2'])
    kp = dict(w1=flat_w(raw['w1']), s1=s1, b1=b1,
              w2=flat_w(raw['w2']), s2=s2, b2=b2)
    return raw, kp


# --------------------------- pure-JAX reference -------------------------------

def conv_block_ref(x, rp):
    # Precision mirrors the kernel: bf16 conv operands, f32 accumulation,
    # bf16 operands again for the second conv.
    def conv3x3(v, w):
        return lax.conv_general_dilated(
            v.astype(jnp.bfloat16), w.astype(jnp.bfloat16), (1, 1),
            [(1, 1), (1, 1)], dimension_numbers=("NCHW", "OIHW", "NCHW"),
            preferred_element_type=jnp.float32)

    def bn_eval(v, g, be, rm, rv):
        s = g / jnp.sqrt(rv + EPS)
        return v * s.reshape(1, -1, 1, 1) + (be - rm * s).reshape(1, -1, 1, 1)

    lrelu = lambda v: jnp.maximum(v, NEG_SLOPE * v)
    h = lrelu(bn_eval(conv3x3(x, rp['w1']),
                      rp['g1'], rp['be1'], rp['rm1'], rp['rv1']))
    h = lrelu(bn_eval(conv3x3(h, rp['w2']),
                      rp['g2'], rp['be2'], rp['rm2'], rp['rv2']))
    # torch forward also computes leaky_relu(h + x) but returns h (conv branch).
    return h


# --------------------------- main ---------------------------------------------

if __name__ == "__main__":
    key = jax.random.PRNGKey(0)
    kx, kparam = jax.random.split(key)
    B, C, H, W = 2, 64, 16, 16          # module requires input with out_c channels
    x = jax.random.normal(kx, (B, C, H, W), jnp.float32)
    raw, kp = init_params(kparam, C)

    out = jax.block_until_ready(jax.jit(conv_block_forward)(x, kp))
    ref = jax.block_until_ready(conv_block_ref(x, raw))

    assert out.shape == (B, C, H, W), out.shape
    err = float(jnp.max(jnp.abs(out - ref)))
    assert jnp.allclose(out, ref, atol=2e-2, rtol=2e-2), f"max abs err = {err}"
    print("KERNEL_OK")
</pallas_src>

<mosaic_0001>
module attributes {stable_mosaic.version = 11 : i64} {
  func.func @_double_conv_kernel(%arg0: i32, %arg1: memref<1x64x256xf32, #tpu.memory_space<vmem>>, %arg2: memref<64x576xbf16, #tpu.memory_space<vmem>>, %arg3: memref<64x1xf32, #tpu.memory_space<vmem>>, %arg4: memref<64x1xf32, #tpu.memory_space<vmem>>, %arg5: memref<64x576xbf16, #tpu.memory_space<vmem>>, %arg6: memref<64x1xf32, #tpu.memory_space<vmem>>, %arg7: memref<64x1xf32, #tpu.memory_space<vmem>>, %arg8: memref<1x64x256xf32, #tpu.memory_space<vmem>>, %arg9: memref<64x512xf32, #tpu.memory_space<vmem>>, %arg10: memref<576x256xbf16, #tpu.memory_space<vmem>>) attributes {dimension_semantics = [#tpu.dimension_semantics<parallel>], iteration_bounds = array<i64: 2>, scalar_prefetch = 0 : i64, scratch_operands = 2 : i64, tpu.core_type = #tpu.core_type<tc>, window_params = [{transform_indices = @transform_0, window_bounds = array<i64: 1, 64, 256>}, {pipeline_mode = #tpu.pipeline_mode<synchronous>, transform_indices = @transform_1, window_bounds = array<i64: 64, 576>}, {pipeline_mode = #tpu.pipeline_mode<synchronous>, transform_indices = @transform_2, window_bounds = array<i64: 64, 1>}, {pipeline_mode = #tpu.pipeline_mode<synchronous>, transform_indices = @transform_3, window_bounds = array<i64: 64, 1>}, {pipeline_mode = #tpu.pipeline_mode<synchronous>, transform_indices = @transform_4, window_bounds = array<i64: 64, 576>}, {pipeline_mode = #tpu.pipeline_mode<synchronous>, transform_indices = @transform_5, window_bounds = array<i64: 64, 1>}, {pipeline_mode = #tpu.pipeline_mode<synchronous>, transform_indices = @transform_6, window_bounds = array<i64: 64, 1>}, {transform_indices = @transform_7, window_bounds = array<i64: 1, 64, 256>}]} {
    %0 = tpu.iota {dimensions = array<i32: 1>} : vector<1x256xi32>
    %c16_i32 = arith.constant 16 : i32
    %c0_i32 = arith.constant 0 : i32
    %1 = arith.cmpi eq, %c16_i32, %c0_i32 : i32
    %c1_i32 = arith.constant 1 : i32
    %2 = arith.select %1, %c1_i32, %c16_i32 : i32
    %3 = vector.broadcast %2 : i32 to vector<1x256xi32>
    %4 = arith.remsi %0, %3 : vector<1x256xi32>
    %c0_i32_0 = arith.constant 0 : i32
    %5 = vector.broadcast %c0_i32_0 : i32 to vector<1x256xi32>
    %6 = arith.cmpi ne, %4, %5 : vector<1x256xi32>
    %c0_i32_1 = arith.constant 0 : i32
    %7 = vector.broadcast %c0_i32_1 : i32 to vector<1x256xi32>
    %8 = arith.cmpi slt, %4, %7 : vector<1x256xi32>
    %c0_i32_2 = arith.constant 0 : i32
    %9 = arith.cmpi slt, %2, %c0_i32_2 : i32
    %10 = vector.broadcast %9 : i1 to vector<1x256xi1>
    %11 = vector.broadcast %10 : vector<1x256xi1> to vector<1x256xi1>
    %12 = arith.xori %8, %11 : vector<1x256xi1>
    %13 = arith.andi %12, %6 : vector<1x256xi1>
    %14 = vector.broadcast %2 : i32 to vector<1x256xi32>
    %15 = arith.addi %4, %14 : vector<1x256xi32>
    %16 = arith.select %13, %15, %4 : vector<1x256xi1>, vector<1x256xi32>
    %c0_i32_3 = arith.constant 0 : i32
    %17 = vector.broadcast %c0_i32_3 : i32 to vector<1x256xi32>
    %18 = arith.cmpi ne, %16, %17 : vector<1x256xi32>
    %19 = arith.extui %18 : vector<1x256xi1> to vector<1x256xi32>
    %20 = arith.sitofp %19 : vector<1x256xi32> to vector<1x256xf32>
    %c15_i32 = arith.constant 15 : i32
    %21 = vector.broadcast %c15_i32 : i32 to vector<1x256xi32>
    %22 = arith.cmpi ne, %16, %21 : vector<1x256xi32>
    %23 = arith.extui %22 : vector<1x256xi1> to vector<1x256xi32>
    %24 = arith.sitofp %23 : vector<1x256xi32> to vector<1x256xf32>
    %cst = arith.constant 0.000000e+00 : f32
    %25 = vector.broadcast %cst : f32 to vector<64x128xf32>
    %c0 = arith.constant 0 : index
    %c0_4 = arith.constant 0 : index
    %26 = vector.load %arg9[%c0, %c0_4] : memref<64x512xf32, #tpu.memory_space<vmem>>, vector<64x128xf32>
    tpu.vector_store %arg9[%c0, %c0_4], %25 {strides = array<i32>} : memref<64x512xf32, #tpu.memory_space<vmem>>, vector<64x128xf32>,
    %cst_5 = arith.constant 0.000000e+00 : f32
    %27 = vector.broadcast %cst_5 : f32 to vector<64x128xf32>
    %c0_6 = arith.constant 0 : index
    %c384 = arith.constant 384 : index
    %28 = vector.load %arg9[%c0_6, %c384] : memref<64x512xf32, #tpu.memory_space<vmem>>, vector<64x128xf32>
    tpu.vector_store %arg9[%c0_6, %c384], %27 {strides = array<i32>} : memref<64x512xf32, #tpu.memory_space<vmem>>, vector<64x128xf32>,
    %c0_7 = arith.constant 0 : index
    %c0_8 = arith.constant 0 : index
    %c0_9 = arith.constant 0 : index
    %29 = vector.load %arg1[%c0_7, %c0_8, %c0_9] : memref<1x64x256xf32, #tpu.memory_space<vmem>>, vector<1x64x256xf32>
    %30 = vector.shape_cast %29 : vector<1x64x256xf32> to vector<64x256xf32>
    %c0_10 = arith.constant 0 : index
    %c128 = arith.constant 128 : index
    %31 = vector.load %arg9[%c0_10, %c128] : memref<64x512xf32, #tpu.memory_space<vmem>>, vector<64x256xf32>
    tpu.vector_store %arg9[%c0_10, %c128], %30 {strides = array<i32>} : memref<64x512xf32, #tpu.memory_space<vmem>>, vector<64x256xf32>,
    %c0_11 = arith.constant 0 : index
    %c111 = arith.constant 111 : index
    %32 = vector.load %arg9[%c0_11, %c111] : memref<64x512xf32, #tpu.memory_space<vmem>>, vector<64x256xf32>
    %33 = vector.broadcast %20 : vector<1x256xf32> to vector<64x256xf32>
    %34 = arith.mulf %32, %33 : vector<64x256xf32>
    %35 = arith.truncf %34 : vector<64x256xf32> to vector<64x256xbf16>
    %c0_12 = arith.constant 0 : index
    %c0_13 = arith.constant 0 : index
    %36 = vector.load %arg10[%c0_12, %c0_13] : memref<576x256xbf16, #tpu.memory_space<vmem>>, vector<64x256xbf16>
    tpu.vector_store %arg10[%c0_12, %c0_13], %35 {strides = array<i32>} : memref<576x256xbf16, #tpu.memory_space<vmem>>, vector<64x256xbf16>,
    %c0_14 = arith.constant 0 : index
    %c112 = arith.constant 112 : index
    %37 = vector.load %arg9[%c0_14, %c112] : memref<64x512xf32, #tpu.memory_space<vmem>>, vector<64x256xf32>
    %38 = arith.truncf %37 : vector<64x256xf32> to vector<64x256xbf16>
    %c64 = arith.constant 64 : index
    %c0_15 = arith.constant 0 : index
    %39 = vector.load %arg10[%c64, %c0_15] : memref<576x256xbf16, #tpu.memory_space<vmem>>, vector<64x256xbf16>
    tpu.vector_store %arg10[%c64, %c0_15], %38 {strides = array<i32>} : memref<576x256xbf16, #tpu.memory_space<vmem>>, vector<64x256xbf16>,
    %c0_16 = arith.constant 0 : index
    %c113 = arith.constant 113 : index
    %40 = vector.load %arg9[%c0_16, %c113] : memref<64x512xf32, #tpu.memory_space<vmem>>, vector<64x256xf32>
    %41 = vector.broadcast %24 : vector<1x256xf32> to vector<64x256xf32>
    %42 = arith.mulf %40, %41 : vector<64x256xf32>
    %43 = arith.truncf %42 : vector<64x256xf32> to vector<64x256xbf16>
    %c128_17 = arith.constant 128 : index
    %c0_18 = arith.constant 0 : index
    %44 = vector.load %arg10[%c128_17, %c0_18] : memref<576x256xbf16, #tpu.memory_space<vmem>>, vector<64x256xbf16>
    tpu.vector_store %arg10[%c128_17, %c0_18], %43 {strides = array<i32>} : memref<576x256xbf16, #tpu.memory_space<vmem>>, vector<64x256xbf16>,
    %c0_19 = arith.constant 0 : index
    %c127 = arith.constant 127 : index
    %45 = vector.load %arg9[%c0_19, %c127] : memref<64x512xf32, #tpu.memory_space<vmem>>, vector<64x256xf32>
    %46 = vector.broadcast %20 : vector<1x256xf32> to vector<64x256xf32>
    %47 = arith.mulf %45, %46 : vector<64x256xf32>
    %48 = arith.truncf %47 : vector<64x256xf32> to vector<64x256xbf16>
    %c192 = arith.constant 192 : index
    %c0_20 = arith.constant 0 : index
    %49 = vector.load %arg10[%c192, %c0_20] : memref<576x256xbf16, #tpu.memory_space<vmem>>, vector<64x256xbf16>
    tpu.vector_store %arg10[%c192, %c0_20], %48 {strides = array<i32>} : memref<576x256xbf16, #tpu.memory_space<vmem>>, vector<64x256xbf16>,
    %c0_21 = arith.constant 0 : index
    %c128_22 = arith.constant 128 : index
    %50 = vector.load %arg9[%c0_21, %c128_22] : memref<64x512xf32, #tpu.memory_space<vmem>>, vector<64x256xf32>
    %51 = arith.truncf %50 : vector<64x256xf32> to vector<64x256xbf16>
    %c256 = arith.constant 256 : index
    %c0_23 = arith.constant 0 : index
    %52 = vector.load %arg10[%c256, %c0_23] : memref<576x256xbf16, #tpu.memory_space<vmem>>, vector<64x256xbf16>
    tpu.vector_store %arg10[%c256, %c0_23], %51 {strides = array<i32>} : memref<576x256xbf16, #tpu.memory_space<vmem>>, vector<64x256xbf16>,
    %c0_24 = arith.constant 0 : index
    %c129 = arith.constant 129 : index
    %53 = vector.load %arg9[%c0_24, %c129] : memref<64x512xf32, #tpu.memory_space<vmem>>, vector<64x256xf32>
    %54 = vector.broadcast %24 : vector<1x256xf32> to vector<64x256xf32>
    %55 = arith.mulf %53, %54 : vector<64x256xf32>
    %56 = arith.truncf %55 : vector<64x256xf32> to vector<64x256xbf16>
    %c320 = arith.constant 320 : index
    %c0_25 = arith.constant 0 : index
    %57 = vector.load %arg10[%c320, %c0_25] : memref<576x256xbf16, #tpu.memory_space<vmem>>, vector<64x256xbf16>
    tpu.vector_store %arg10[%c320, %c0_25], %56 {strides = array<i32>} : memref<576x256xbf16, #tpu.memory_space<vmem>>, vector<64x256xbf16>,
    %c0_26 = arith.constant 0 : index
    %c143 = arith.constant 143 : index
    %58 = vector.load %arg9[%c0_26, %c143] : memref<64x512xf32, #tpu.memory_space<vmem>>, vector<64x256xf32>
    %59 = vector.broadcast %20 : vector<1x256xf32> to vector<64x256xf32>
    %60 = arith.mulf %58, %59 : vector<64x256xf32>
    %61 = arith.truncf %60 : vector<64x256xf32> to vector<64x256xbf16>
    %c384_27 = arith.constant 384 : index
    %c0_28 = arith.constant 0 : index
    %62 = vector.load %arg10[%c384_27, %c0_28] : memref<576x256xbf16, #tpu.memory_space<vmem>>, vector<64x256xbf16>
    tpu.vector_store %arg10[%c384_27, %c0_28], %61 {strides = array<i32>} : memref<576x256xbf16, #tpu.memory_space<vmem>>, vector<64x256xbf16>,
    %c0_29 = arith.constant 0 : index
    %c144 = arith.constant 144 : index
    %63 = vector.load %arg9[%c0_29, %c144] : memref<64x512xf32, #tpu.memory_space<vmem>>, vector<64x256xf32>
    %64 = arith.truncf %63 : vector<64x256xf32> to vector<64x256xbf16>
    %c448 = arith.constant 448 : index
    %c0_30 = arith.constant 0 : index
    %65 = vector.load %arg10[%c448, %c0_30] : memref<576x256xbf16, #tpu.memory_space<vmem>>, vector<64x256xbf16>
    tpu.vector_store %arg10[%c448, %c0_30], %64 {strides = array<i32>} : memref<576x256xbf16, #tpu.memory_space<vmem>>, vector<64x256xbf16>,
    %c0_31 = arith.constant 0 : index
    %c145 = arith.constant 145 : index
    %66 = vector.load %arg9[%c0_31, %c145] : memref<64x512xf32, #tpu.memory_space<vmem>>, vector<64x256xf32>
    %67 = vector.broadcast %24 : vector<1x256xf32> to vector<64x256xf32>
    %68 = arith.mulf %66, %67 : vector<64x256xf32>
    %69 = arith.truncf %68 : vector<64x256xf32> to vector<64x256xbf16>
    %c512 = arith.constant 512 : index
    %c0_32 = arith.constant 0 : index
    %70 = vector.load %arg10[%c512, %c0_32] : memref<576x256xbf16, #tpu.memory_space<vmem>>, vector<64x256xbf16>
    tpu.vector_store %arg10[%c512, %c0_32], %69 {strides = array<i32>} : memref<576x256xbf16, #tpu.memory_space<vmem>>, vector<64x256xbf16>,
    %c0_33 = arith.constant 0 : index
    %c0_34 = arith.constant 0 : index
    %71 = vector.load %arg2[%c0_33, %c0_34] : memref<64x576xbf16, #tpu.memory_space<vmem>>, vector<64x576xbf16>
    %c0_35 = arith.constant 0 : index
    %c0_36 = arith.constant 0 : index
    %72 = vector.load %arg10[%c0_35, %c0_36] : memref<576x256xbf16, #tpu.memory_space<vmem>>, vector<576x256xbf16>
    %cst_37 = arith.constant dense<0.000000e+00> : vector<64x256xf32>
    %73 = tpu.matmul %71, %72, %cst_37 {dimension_numbers = #tpu.dot_dimension_numbers<[1], [0], [0], [1], [0, 0, 1, 1], [], []>} : vector<64x576xbf16>, vector<576x256xbf16>, vector<64x256xf32> -> vector<64x256xf32>
    %c0_38 = arith.constant 0 : index
    %c0_39 = arith.constant 0 : index
    %74 = vector.load %arg3[%c0_38, %c0_39] : memref<64x1xf32, #tpu.memory_space<vmem>>, vector<64x1xf32>
    %75 = vector.broadcast %74 : vector<64x1xf32> to vector<64x256xf32>
    %76 = arith.mulf %73, %75 : vector<64x256xf32>
    %c0_40 = arith.constant 0 : index
    %c0_41 = arith.constant 0 : index
    %77 = vector.load %arg4[%c0_40, %c0_41] : memref<64x1xf32, #tpu.memory_space<vmem>>, vector<64x1xf32>
    %78 = vector.broadcast %77 : vector<64x1xf32> to vector<64x256xf32>
    %79 = arith.addf %76, %78 : vector<64x256xf32>
    %cst_42 = arith.constant 1.000000e-01 : f32
    %80 = vector.broadcast %cst_42 : f32 to vector<64x256xf32>
    %81 = arith.mulf %80, %79 : vector<64x256xf32>
    %82 = arith.maximumf %79, %81 : vector<64x256xf32>
    %c0_43 = arith.constant 0 : index
    %c128_44 = arith.constant 128 : index
    %83 = vector.load %arg9[%c0_43, %c128_44] : memref<64x512xf32, #tpu.memory_space<vmem>>, vector<64x256xf32>
    tpu.vector_store %arg9[%c0_43, %c128_44], %82 {strides = array<i32>} : memref<64x512xf32, #tpu.memory_space<vmem>>, vector<64x256xf32>,
    %c0_45 = arith.constant 0 : index
    %c111_46 = arith.constant 111 : index
    %84 = vector.load %arg9[%c0_45, %c111_46] : memref<64x512xf32, #tpu.memory_space<vmem>>, vector<64x256xf32>
    %85 = vector.broadcast %20 : vector<1x256xf32> to vector<64x256xf32>
    %86 = arith.mulf %84, %85 : vector<64x256xf32>
    %87 = arith.truncf %86 : vector<64x256xf32> to vector<64x256xbf16>
    %c0_47 = arith.constant 0 : index
    %c0_48 = arith.constant 0 : index
    %88 = vector.load %arg10[%c0_47, %c0_48] : memref<576x256xbf16, #tpu.memory_space<vmem>>, vector<64x256xbf16>
    tpu.vector_store %arg10[%c0_47, %c0_48], %87 {strides = array<i32>} : memref<576x256xbf16, #tpu.memory_space<vmem>>, vector<64x256xbf16>,
    %c0_49 = arith.constant 0 : index
    %c112_50 = arith.constant 112 : index
    %89 = vector.load %arg9[%c0_49, %c112_50] : memref<64x512xf32, #tpu.memory_space<vmem>>, vector<64x256xf32>
    %90 = arith.truncf %89 : vector<64x256xf32> to vector<64x256xbf16>
    %c64_51 = arith.constant 64 : index
    %c0_52 = arith.constant 0 : index
    %91 = vector.load %arg10[%c64_51, %c0_52] : memref<576x256xbf16, #tpu.memory_space<vmem>>, vector<64x256xbf16>
    tpu.vector_store %arg10[%c64_51, %c0_52], %90 {strides = array<i32>} : memref<576x256xbf16, #tpu.memory_space<vmem>>, vector<64x256xbf16>,
    %c0_53 = arith.constant 0 : index
    %c113_54 = arith.constant 113 : index
    %92 = vector.load %arg9[%c0_53, %c113_54] : memref<64x512xf32, #tpu.memory_space<vmem>>, vector<64x256xf32>
    %93 = vector.broadcast %24 : vector<1x256xf32> to vector<64x256xf32>
    %94 = arith.mulf %92, %93 : vector<64x256xf32>
    %95 = arith.truncf %94 : vector<64x256xf32> to vector<64x256xbf16>
    %c128_55 = arith.constant 128 : index
    %c0_56 = arith.constant 0 : index
    %96 = vector.load %arg10[%c128_55, %c0_56] : memref<576x256xbf16, #tpu.memory_space<vmem>>, vector<64x256xbf16>
    tpu.vector_store %arg10[%c128_55, %c0_56], %95 {strides = array<i32>} : memref<576x256xbf16, #tpu.memory_space<vmem>>, vector<64x256xbf16>,
    %c0_57 = arith.constant 0 : index
    %c127_58 = arith.constant 127 : index
    %97 = vector.load %arg9[%c0_57, %c127_58] : memref<64x512xf32, #tpu.memory_space<vmem>>, vector<64x256xf32>
    %98 = vector.broadcast %20 : vector<1x256xf32> to vector<64x256xf32>
    %99 = arith.mulf %97, %98 : vector<64x256xf32>
    %100 = arith.truncf %99 : vector<64x256xf32> to vector<64x256xbf16>
    %c192_59 = arith.constant 192 : index
    %c0_60 = arith.constant 0 : index
    %101 = vector.load %arg10[%c192_59, %c0_60] : memref<576x256xbf16, #tpu.memory_space<vmem>>, vector<64x256xbf16>
    tpu.vector_store %arg10[%c192_59, %c0_60], %100 {strides = array<i32>} : memref<576x256xbf16, #tpu.memory_space<vmem>>, vector<64x256xbf16>,
    %c0_61 = arith.constant 0 : index
    %c128_62 = arith.constant 128 : index
    %102 = vector.load %arg9[%c0_61, %c128_62] : memref<64x512xf32, #tpu.memory_space<vmem>>, vector<64x256xf32>
    %103 = arith.truncf %102 : vector<64x256xf32> to vector<64x256xbf16>
    %c256_63 = arith.constant 256 : index
    %c0_64 = arith.constant 0 : index
    %104 = vector.load %arg10[%c256_63, %c0_64] : memref<576x256xbf16, #tpu.memory_space<vmem>>, vector<64x256xbf16>
    tpu.vector_store %arg10[%c256_63, %c0_64], %103 {strides = array<i32>} : memref<576x256xbf16, #tpu.memory_space<vmem>>, vector<64x256xbf16>,
    %c0_65 = arith.constant 0 : index
    %c129_66 = arith.constant 129 : index
    %105 = vector.load %arg9[%c0_65, %c129_66] : memref<64x512xf32, #tpu.memory_space<vmem>>, vector<64x256xf32>
    %106 = vector.broadcast %24 : vector<1x256xf32> to vector<64x256xf32>
    %107 = arith.mulf %105, %106 : vector<64x256xf32>
    %108 = arith.truncf %107 : vector<64x256xf32> to vector<64x256xbf16>
    %c320_67 = arith.constant 320 : index
    %c0_68 = arith.constant 0 : index
    %109 = vector.load %arg10[%c320_67, %c0_68] : memref<576x256xbf16, #tpu.memory_space<vmem>>, vector<64x256xbf16>
    tpu.vector_store %arg10[%c320_67, %c0_68], %108 {strides = array<i32>} : memref<576x256xbf16, #tpu.memory_space<vmem>>, vector<64x256xbf16>,
    %c0_69 = arith.constant 0 : index
    %c143_70 = arith.constant 143 : index
    %110 = vector.load %arg9[%c0_69, %c143_70] : memref<64x512xf32, #tpu.memory_space<vmem>>, vector<64x256xf32>
    %111 = vector.broadcast %20 : vector<1x256xf32> to vector<64x256xf32>
    %112 = arith.mulf %110, %111 : vector<64x256xf32>
    %113 = arith.truncf %112 : vector<64x256xf32> to vector<64x256xbf16>
    %c384_71 = arith.constant 384 : index
    %c0_72 = arith.constant 0 : index
    %114 = vector.load %arg10[%c384_71, %c0_72] : memref<576x256xbf16, #tpu.memory_space<vmem>>, vector<64x256xbf16>
    tpu.vector_store %arg10[%c384_71, %c0_72], %113 {strides = array<i32>} : memref<576x256xbf16, #tpu.memory_space<vmem>>, vector<64x256xbf16>,
    %c0_73 = arith.constant 0 : index
    %c144_74 = arith.constant 144 : index
    %115 = vector.load %arg9[%c0_73, %c144_74] : memref<64x512xf32, #tpu.memory_space<vmem>>, vector<64x256xf32>
    %116 = arith.truncf %115 : vector<64x256xf32> to vector<64x256xbf16>
    %c448_75 = arith.constant 448 : index
    %c0_76 = arith.constant 0 : index
    %117 = vector.load %arg10[%c448_75, %c0_76] : memref<576x256xbf16, #tpu.memory_space<vmem>>, vector<64x256xbf16>
    tpu.vector_store %arg10[%c448_75, %c0_76], %116 {strides = array<i32>} : memref<576x256xbf16, #tpu.memory_space<vmem>>, vector<64x256xbf16>,
    %c0_77 = arith.constant 0 : index
    %c145_78 = arith.constant 145 : index
    %118 = vector.load %arg9[%c0_77, %c145_78] : memref<64x512xf32, #tpu.memory_space<vmem>>, vector<64x256xf32>
    %119 = vector.broadcast %24 : vector<1x256xf32> to vector<64x256xf32>
    %120 = arith.mulf %118, %119 : vector<64x256xf32>
    %121 = arith.truncf %120 : vector<64x256xf32> to vector<64x256xbf16>
    %c512_79 = arith.constant 512 : index
    %c0_80 = arith.constant 0 : index
    %122 = vector.load %arg10[%c512_79, %c0_80] : memref<576x256xbf16, #tpu.memory_space<vmem>>, vector<64x256xbf16>
    tpu.vector_store %arg10[%c512_79, %c0_80], %121 {strides = array<i32>} : memref<576x256xbf16, #tpu.memory_space<vmem>>, vector<64x256xbf16>,
    %c0_81 = arith.constant 0 : index
    %c0_82 = arith.constant 0 : index
    %123 = vector.load %arg5[%c0_81, %c0_82] : memref<64x576xbf16, #tpu.memory_space<vmem>>, vector<64x576xbf16>
    %c0_83 = arith.constant 0 : index
    %c0_84 = arith.constant 0 : index
    %124 = vector.load %arg10[%c0_83, %c0_84] : memref<576x256xbf16, #tpu.memory_space<vmem>>, vector<576x256xbf16>
    %cst_85 = arith.constant dense<0.000000e+00> : vector<64x256xf32>
    %125 = tpu.matmul %123, %124, %cst_85 {dimension_numbers = #tpu.dot_dimension_numbers<[1], [0], [0], [1], [0, 0, 1, 1], [], []>} : vector<64x576xbf16>, vector<576x256xbf16>, vector<64x256xf32> -> vector<64x256xf32>
    %c0_86 = arith.constant 0 : index
    %c0_87 = arith.constant 0 : index
    %126 = vector.load %arg6[%c0_86, %c0_87] : memref<64x1xf32, #tpu.memory_space<vmem>>, vector<64x1xf32>
    %127 = vector.broadcast %126 : vector<64x1xf32> to vector<64x256xf32>
    %128 = arith.mulf %125, %127 : vector<64x256xf32>
    %c0_88 = arith.constant 0 : index
    %c0_89 = arith.constant 0 : index
    %129 = vector.load %arg7[%c0_88, %c0_89] : memref<64x1xf32, #tpu.memory_space<vmem>>, vector<64x1xf32>
    %130 = vector.broadcast %129 : vector<64x1xf32> to vector<64x256xf32>
    %131 = arith.addf %128, %130 : vector<64x256xf32>
    %cst_90 = arith.constant 1.000000e-01 : f32
    %132 = vector.broadcast %cst_90 : f32 to vector<64x256xf32>
    %133 = arith.mulf %132, %131 : vector<64x256xf32>
    %134 = arith.maximumf %131, %133 : vector<64x256xf32>
    %c0_91 = arith.constant 0 : index
    %c0_92 = arith.constant 0 : index
    %c0_93 = arith.constant 0 : index
    %135 = vector.load %arg8[%c0_91, %c0_92, %c0_93] : memref<1x64x256xf32, #tpu.memory_space<vmem>>, vector<1x64x256xf32>
    %136 = vector.shape_cast %135 : vector<1x64x256xf32> to vector<64x256xf32>
    %137 = vector.shape_cast %134 : vector<64x256xf32> to vector<1x64x256xf32>
    tpu.vector_store %arg8[%c0_91, %c0_92, %c0_93], %137 {strides = array<i32>} : memref<1x64x256xf32, #tpu.memory_space<vmem>>, vector<1x64x256xf32>,
    return
  }
  func.func @transform_0(%arg0: i32) -> (i32, i32, i32) {
    %c0_i32 = arith.constant 0 : i32
    %c0_i32_0 = arith.constant 0 : i32
    %c0_i32_1 = arith.constant 0 : i32
    return %arg0, %c0_i32, %c0_i32_0 : i32, i32, i32
  }
  func.func @transform_1(%arg0: i32) -> (i32, i32) {
    %c0_i32 = arith.constant 0 : i32
    %c0_i32_0 = arith.constant 0 : i32
    %c0_i32_1 = arith.constant 0 : i32
    return %c0_i32, %c0_i32_0 : i32, i32
  }
  func.func @transform_2(%arg0: i32) -> (i32, i32) {
    %c0_i32 = arith.constant 0 : i32
    %c0_i32_0 = arith.constant 0 : i32
    %c0_i32_1 = arith.constant 0 : i32
    return %c0_i32, %c0_i32_0 : i32, i32
  }
  func.func @transform_3(%arg0: i32) -> (i32, i32) {
    %c0_i32 = arith.constant 0 : i32
    %c0_i32_0 = arith.constant 0 : i32
    %c0_i32_1 = arith.constant 0 : i32
    return %c0_i32, %c0_i32_0 : i32, i32
  }
  func.func @transform_4(%arg0: i32) -> (i32, i32) {
    %c0_i32 = arith.constant 0 : i32
    %c0_i32_0 = arith.constant 0 : i32
    %c0_i32_1 = arith.constant 0 : i32
    return %c0_i32, %c0_i32_0 : i32, i32
  }
  func.func @transform_5(%arg0: i32) -> (i32, i32) {
    %c0_i32 = arith.constant 0 : i32
    %c0_i32_0 = arith.constant 0 : i32
    %c0_i32_1 = arith.constant 0 : i32
    return %c0_i32, %c0_i32_0 : i32, i32
  }
  func.func @transform_6(%arg0: i32) -> (i32, i32) {
    %c0_i32 = arith.constant 0 : i32
    %c0_i32_0 = arith.constant 0 : i32
    %c0_i32_1 = arith.constant 0 : i32
    return %c0_i32, %c0_i32_0 : i32, i32
  }
  func.func @transform_7(%arg0: i32) -> (i32, i32, i32) {
    %c0_i32 = arith.constant 0 : i32
    %c0_i32_0 = arith.constant 0 : i32
    %c0_i32_1 = arith.constant 0 : i32
    return %arg0, %c0_i32, %c0_i32_0 : i32, i32, i32
  }
}

</mosaic_0001>

<bundles_post_ra>
// kernel: conv_block_forward.1
= control target key start
LH: loop header
LB: loop body
LE: loop exit
PB: predicated region body
PF: predicated region fallthrough
CT: control target
= control target key end

     0   :  { %s6166_s24 = smov 0   ;;  %s8532_s0 = inlined_call_operand.vmem [shape: f32[2,64,256], index: 0, kind: input, shape index: {}]   ;;  %s8533_s1 = inlined_call_operand.vmem [shape: bf16[64,576], index: 1, kind: input, shape index: {}]   ;;  %s8534_s2 = inlined_call_operand.vmem [shape: f32[64,1], index: 2, kind: input, shape index: {}]   ;;  %s8535_s3 = inlined_call_operand.vmem [shape: f32[64,1], index: 3, kind: input, shape index: {}]   ;;  %s8536_s4 = inlined_call_operand.vmem [shape: bf16[64,576], index: 4, kind: input, shape index: {}]   ;;  %s8537_s5 = inlined_call_operand.vmem [shape: f32[64,1], index: 5, kind: input, shape index: {}]   ;;  %s8538_s6 = inlined_call_operand.vmem [shape: f32[64,1], index: 6, kind: input, shape index: {}]   ;;  %s8539_s7 = inlined_call_operand.vmem [shape: f32[2,64,256], index: 7, kind: output, shape index: {}]  }
   0x1 LB: > { %s5086_s25 = sadd.s32 4294967295, %s6113_s24   ;;  %p5090_p0 = scmp.ge.s32.totalorder %s6113_s24, 1  ;;  %s6113_s24 = sphi %s6166_s24, %s17_s24  }
   0x2   : > { %p237_p1 = scmp.lt.s32.totalorder %s6113_s24, 3 }
   0x4   : > { %p238_p2 = pnand %p5090_p0, %p237_p1 }
   0x6   : > { %241 = sbr.rel (%p238_p2) target bundleno = 1568 (0x620), region = 48 }
   0xb   : > { %p269_p3 = scmp.lt.s32.totalorder %s5086_s25, 1  ;;  %v280_v0 = vlaneseq  ;;  %v8542_v7 = vmov 0.0   ;;  %s6116_s30 = smov 16   ;;  %vm506_vm4 = vcmask 1043456   ;;  %vm645_vm5 = vcmask 130048  }
   0xc   : > { %s6117_s8 = smov 111   ;;  %s6118_s9 = smov 113   ;;  %vm397_vm6 = vcmask 908288   ;;  %vm707_vm7 = vcmask 924672   ;;  %vm877_vm8 = vcmask 1039360   ;;  %vm508_vm9 = vcmask 138240  }
   0xd   : > { %s8600_s25 = smov (!%p269_p3, %s5086_s25), 1  ;;  %v281_v1 = vand.u32 127, %v280_v0  ;;  %s6119_s10 = smov 127   ;;  %vm817_vm10 = vcmask 121856   ;;  %vm987_vm11 = vcmask 7168   ;;  %vm1496_vm12 = vcmask 916480  }
   0xe   : > { %s5853_s26 = sshll.u32 %s8600_s25, 7  ;;  %s6120_s11 = smov 17   ;;  %vm2254_vm13 = vcmask 523264  }
   0xf   : > { %v282_v2 = vadd.s32 128, %v281_v1  ;;  %v287_v3 = vand.u32 15, %v281_v1  ;;  %s6182_s29 = scalar_lea.vmem %s8532_s0, %s5853_s26  ;;  %s6121_s12 = smov 15  }
  0x10   : > { %v6185_v4 = vld [vmem:[%s6182_s29 + $0x10] sm:$0xff]  ;;  %v6188_v5 = vld [vmem:[%s6182_s29 + $0x8] sm:$0xff]  ;;  %v6195_v10 = vld [vmem:[%s6182_s29] sm:$0xff]  ;;  %s6122_s13 = smov 1   ;;  %s6123_s14 = smov 112  }
  0x11   : > { %v294_v6 = vand.u32 15, %v282_v2  ;;  %v566_v8 = vpack.c.bf16 %v6185_v4, %v8542_v7  ;;  %v565_v9 = vpack.c.bf16 %v6188_v5, %v6188_v5  ;;  %vm307_vm0 = vcmp.ne.s32.totalorder %v287_v3, 0  ;;  %v6204_v14 = vld [vmem:[%s6182_s29 + $0x28] sm:$0xff]  ;;  %v6208_v15 = vld [vmem:[%s6182_s29 + $0x18] sm:$0xff]  ;;  %v6220_v19 = vld [vmem:[%s6182_s29 + $0x20] sm:$0xff]  ;;  %s8440_s28 = scalar_lea.vmem %s8539_s7, %s5853_s26 }
  0x12   : > { %v564_v11 = vpack.c.bf16 %v6195_v10, %v8542_v7  ;;  %v5095_v12 = vsel %vm307_vm0, 1.0, %v8542_v7  ;;  %v569_v17 = vpack.c.bf16 %v6204_v14, %v6204_v14  ;;  %v567_v18 = vpack.c.bf16 %v6208_v15, %v6208_v15  ;;  %v6223_v20 = vld [vmem:[%s6182_s29 + $0x40] sm:$0xff]  ;;  %v6227_v21 = vld [vmem:[%s6182_s29 + $0x30] sm:$0xff]  ;;  %v6238_v25 = vld [vmem:[%s6182_s29 + $0x38] sm:$0xff] }
  0x13   : > { %vm308_vm1 = vcmp.ne.s32.totalorder %v294_v6, 0  ;;  %600 = vrot.lane.b32.xlu1 %v566_v8, %s6116_s30  ;;  %598 = vrot.lane.b32.xlu0 %v565_v9, %s6116_s30  ;;  %v568_v22 = vpack.c.bf16 %v6220_v19, %v8542_v7  ;;  %v572_v23 = vpack.c.bf16 %v6223_v20, %v8542_v7  ;;  %v570_v24 = vpack.c.bf16 %v6227_v21, %v8542_v7  ;;  %v6241_v26 = vld [vmem:[%s6182_s29 + $0x58] sm:$0xff]  ;;  %v6245_v27 = vld [vmem:[%s6182_s29 + $0x48] sm:$0xff] }
  0x14   : > { %v5096_v13 = vsel %vm308_vm1, 1.0, %v8542_v7  ;;  %596 = vrot.lane.b32.xlu2 %v564_v11, %s6116_s30  ;;  %v571_v28 = vpack.c.bf16 %v6238_v25, %v6238_v25  ;;  %v575_v29 = vpack.c.bf16 %v6241_v26, %v6241_v26  ;;  %v573_v30 = vpack.c.bf16 %v6245_v27, %v6245_v27  ;;  %v6256_v31 = vld [vmem:[%s6182_s29 + $0x50] sm:$0xff]  ;;  %v6263_v33 = vld [vmem:[%s6182_s29 + $0x60] sm:$0xff]  ;;  %v6274_v37 = vld [vmem:[%s6182_s29 + $0x68] sm:$0xff] }
  0x15   : > { %v6210_v16 = vpack.i.bf16 %v5096_v13, %v5095_v12  ;;  %v6259_v32 = vld [vmem:[%s6182_s29 + $0x70] sm:$0xff]  ;;  %v574_v34 = vpack.c.bf16 %v6256_v31, %v8542_v7  ;;  %v576_v36 = vpack.c.bf16 %v6263_v33, %v8542_v7  ;;  %v6278_v38 = vld [vmem:[%s6182_s29 + $0x78] sm:$0xff]  ;;  %v577_v39 = vpack.c.bf16 %v6274_v37, %v6274_v37 }
  0x16   : > { %v578_v35 = vpack.c.bf16 %v6259_v32, %v8542_v7  ;;  %v579_v40 = vpack.c.bf16 %v6278_v38, %v6278_v38  ;;  %vm313_vm2 = vcmp.ne.s32.totalorder %v287_v3, 15  ;;  %vm314_vm3 = vcmp.ne.s32.totalorder %v294_v6, 15 }
  0x17   : > { %v5097_v41 = vsel %vm313_vm2, 1.0, %v8542_v7  ;;  %v5098_v42 = vsel %vm314_vm3, 1.0, %v8542_v7 }
  0x18   : > { %v6288_v43 = vpack.i.bf16 %v5098_v42, %v5097_v41 }
  0x1b   : > { %6059 = vrot.lane.b32.xlu0 %v6210_v16, %s6117_s8  ;;  %606 = vrot.lane.b32.xlu1 %v569_v17, %s6116_s30 }
  0x1c   : > { %602 = vrot.lane.b32.xlu2 %v567_v18, %s6116_s30 }
  0x23   : > { %604 = vrot.lane.b32.xlu0 %v568_v22, %s6116_s30  ;;  %612 = vrot.lane.b32.xlu1 %v572_v23, %s6116_s30 }
  0x24   : > { %608 = vrot.lane.b32.xlu2 %v570_v24, %s6116_s30 }
  0x2b   : > { %610 = vrot.lane.b32.xlu0 %v571_v28, %s6116_s30  ;;  %618 = vrot.lane.b32.xlu1 %v575_v29, %s6116_s30 }
  0x2c   : > { %614 = vrot.lane.b32.xlu2 %v573_v30, %s6116_s30 }
  0x33   : > { %616 = vrot.lane.b32.xlu0 %v574_v34, %s6116_s30  ;;  %624 = vrot.lane.b32.xlu1 %v578_v35, %s6116_s30 }
  0x34   : > { %620 = vrot.lane.b32.xlu2 %v576_v36, %s6116_s30 }
  0x3b   : > { %622 = vrot.lane.b32.xlu0 %v577_v39, %s6116_s30  ;;  %6069 = vrot.lane.b32.xlu1 %v6210_v16, %s6119_s10 }
  0x3c   : > { %626 = vrot.lane.b32.xlu2 %v579_v40, %s6116_s30 }
  0x43   : > { %6064 = vrot.lane.b32.xlu0 %v6288_v43, %s6118_s9 }
  0x6e   : > { %v597_v44 = vpop.permute.xlu2 %596 }
  0x6f   : > { %v628_v47 = vrot.slane %v597_v44, 4 }
  0x76   : > { %v603_v45 = vpop.permute.xlu2 %602 }
  0x77   : > { %v631_v48 = vrot.slane %v603_v45, 4 }
  0x7e   : > { %v609_v46 = vpop.permute.xlu2 %608 }
  0x7f   : > { %v634_v36 = vrot.slane %v609_v46, 4 }
  0x85   : > { %v601_v49 = vpop.permute.xlu1 %600  ;;  %v599_v50 = vpop.permute.xlu0 %598 }
  0x86   : > { %v630_v51 = vrot.slane %v601_v49, 4  ;;  %v629_v52 = vrot.slane %v599_v50, 4  ;;  %v615_v57 = vpop.permute.xlu2 %614 }
  0x87   : > { %v637_v6 = vrot.slane %v615_v57, 4 }
  0x88   : > { %v644_v53 = vsel %vm506_vm4, %v628_v47, %v629_v52  ;;  %v647_v54 = vsel %vm506_vm4, %v630_v51, %v631_v48 }
  0x89   : > { %v646_v55 = vsel %vm645_vm5, %v597_v44, %v644_v53  ;;  %v648_v56 = vsel %vm645_vm5, %v601_v49, %v647_v54 }
  0x8a   : > { %669 = vst [vmem:[#allocation3 + $0x40] sm:$0xff] %v646_v55 }
  0x8b   : > { %670 = vst [vmem:[#allocation3 + $0x48] sm:$0xff] %v648_v56 }
  0x8d   : > { %v6298_v58 = vpop.permute.xlu0 %6059  ;;  %v607_v59 = vpop.permute.xlu1 %606 }
  0x8e   : > { %v6301_v60 = vunpack.i.h.bf16 %v6298_v58  ;;  %v633_v3 = vrot.slane %v607_v59, 4  ;;  %v621_v22 = vpop.permute.xlu2 %620 }
  0x90   : > { %v410_v61 = vmul.f32 %v6301_v60, %v6204_v14  ;;  %v404_v62 = vmul.f32 %v6301_v60, %v6188_v5  ;;  %v407_v63 = vmul.f32 %v6301_v60, %v6208_v15  ;;  %v419_v12 = vmul.f32 %v6301_v60, %v6241_v26 }
  0x91   : > { %v416_v13 = vmul.f32 %v6301_v60, %v6245_v27  ;;  %v413_v18 = vmul.f32 %v6301_v60, %v6238_v25  ;;  %v425_v42 = vmul.f32 %v6301_v60, %v6278_v38  ;;  %v422_v44 = vmul.f32 %v6301_v60, %v6274_v37 }
  0x92   : > { %v431_v0 = vpack.c.bf16 %v410_v61, %v410_v61  ;;  %v427_v1 = vpack.c.bf16 %v404_v62, %v404_v62  ;;  %v429_v2 = vpack.c.bf16 %v407_v63, %v407_v63  ;;  %v437_v30 = vpack.c.bf16 %v419_v12, %v419_v12 }
  0x93   : > { %v435_v34 = vpack.c.bf16 %v416_v13, %v416_v13  ;;  %v433_v35 = vpack.c.bf16 %v413_v18, %v413_v18  ;;  %v441_v49 = vpack.c.bf16 %v425_v42, %v425_v42  ;;  %v439_v50 = vpack.c.bf16 %v422_v44, %v422_v44 }
  0x94   : > { %468 = vrot.lane.b32.xlu0 %v431_v0, %s6120_s11  ;;  %460 = vrot.lane.b32.xlu1 %v427_v1, %s6120_s11  ;;  %v640_v62 = vrot.slane %v621_v22, 4 }
  0x95   : > { %464 = vrot.lane.b32.xlu2 %v429_v2, %s6120_s11  ;;  %v605_v8 = vpop.permute.xlu0 %604  ;;  %v613_v9 = vpop.permute.xlu1 %612 }
  0x96   : > { %v632_v11 = vrot.slane %v605_v8, 4  ;;  %v636_v17 = vrot.slane %v613_v9, 4  ;;  %v627_v48 = vpop.permute.xlu2 %626 }
  0x97   : > { %v643_v52 = vrot.slane %v627_v48, 4  ;;  %v5884_v48 = vld [vmem:[#allocation3 + $0x44] sm:$0xf0] }
  0x98   : > { %v649_v23 = vsel %vm506_vm4, %v632_v11, %v633_v3  ;;  %v653_v24 = vsel %vm506_vm4, %v636_v17, %v637_v6 }
  0x99   : > { %v650_v28 = vsel %vm645_vm5, %v605_v8, %v649_v23  ;;  %v654_v29 = vsel %vm645_vm5, %v613_v9, %v653_v24 }
  0x9a   : > { %671 = vst [vmem:[#allocation3 + $0x50] sm:$0xff] %v650_v28 }
  0x9b   : > { %673 = vst [vmem:[#allocation3 + $0x60] sm:$0xff] %v654_v29 }
  0x9c   : > { %480 = vrot.lane.b32.xlu0 %v437_v30, %s6120_s11  ;;  %476 = vrot.lane.b32.xlu1 %v435_v34, %s6120_s11  ;;  %v6061_v34 = vunpack.i.l.bf16 %v6298_v58  ;;  %v5213_v58 = vld [vmem:[#allocation3 + $0x40] sm:$0xf] }
  0x9d   : > { %472 = vrot.lane.b32.xlu2 %v433_v35, %s6120_s11  ;;  %v611_v39 = vpop.permute.xlu0 %610  ;;  %v619_v40 = vpop.permute.xlu1 %618 }
  0x9e   : > { %v635_v41 = vrot.slane %v611_v39, 4  ;;  %v639_v51 = vrot.slane %v619_v40, 4  ;;  %v6362_v44 = vsel %vm397_vm6, %v6061_v34, %v6301_v60 }
  0xa0   : > { %v651_v45 = vsel %vm506_vm4, %v634_v36, %v635_v41 }
  0xa1   : > { %v652_v47 = vsel %vm645_vm5, %v609_v46, %v651_v45  ;;  %v5221_v42 = vld [vmem:[#allocation3 + $0x50] sm:$0xf] }
  0xa2   : > { %672 = vst [vmem:[#allocation3 + $0x58] sm:$0xff] %v652_v47  ;;  %v5229_v24 = vld [vmem:[#allocation3 + $0x60] sm:$0xf] }
  0xa4   : > { %488 = vrot.lane.b32.xlu1 %v441_v49, %s6120_s11  ;;  %v6367_v49 = vmul.f32 0.0, %v6061_v34 }
  0xa5   : > { %484 = vrot.lane.b32.xlu2 %v439_v50, %s6120_s11  ;;  %v617_v53 = vpop.permute.xlu0 %616  ;;  %v625_v54 = vpop.permute.xlu1 %624  ;;  %v406_v50 = vmul.f32 %v6362_v44, %v6185_v4 }
  0xa6   : > { %v638_v55 = vrot.slane %v617_v53, 4  ;;  %v642_v56 = vrot.slane %v625_v54, 4 }
  0xa8   : > { %v655_v57 = vsel %vm506_vm4, %v638_v55, %v639_v51  ;;  %v659_v59 = vsel %vm506_vm4, %v642_v56, %v643_v52  ;;  %v403_v51 = vmul.f32 %v6362_v44, %v6195_v10  ;;  %v5214_v52 = vor.u32 %v5884_v48, %v5213_v58 }
  0xa9   : > { %v656_v46 = vsel %vm645_vm5, %v617_v53, %v655_v57  ;;  %v660_v61 = vsel %vm645_vm5, %v625_v54, %v659_v59  ;;  %v5886_v39 = vld [vmem:[#allocation3 + $0x54] sm:$0xf0]  ;;  %v428_v54 = vpack.c.bf16 %v406_v50, %v6367_v49  ;;  %v412_v57 = vmul.f32 %v6362_v44, %v6227_v21 }
  0xaa   : > { %674 = vst [vmem:[#allocation3 + $0x68] sm:$0xff] %v656_v46  ;;  %v5222_v47 = vor.u32 %v5886_v39, %v5221_v42  ;;  %v426_v55 = vpack.c.bf16 %v403_v51, %v6367_v49  ;;  %v415_v59 = vmul.f32 %v6362_v44, %v6223_v20 }
  0xab   : > { %676 = vst [vmem:[#allocation3 + $0x78] sm:$0xff] %v660_v61  ;;  %v432_v61 = vpack.c.bf16 %v412_v57, %v6367_v49 }
  0xad   : > { %v623_v63 = vpop.permute.xlu0 %622  ;;  %v6070_v39 = vpop.permute.xlu1 %6069 }
  0xae   : > { %v641_v0 = vrot.slane %v623_v63, 4  ;;  %v6071_v42 = vunpack.i.l.bf16 %v6070_v39 }
  0xb0   : > { %v657_v1 = vsel %vm506_vm4, %v640_v62, %v641_v0  ;;  %v434_v62 = vpack.c.bf16 %v415_v59, %v6367_v49  ;;  %v421_v0 = vmul.f32 %v6362_v44, %v6263_v33 }
  0xb1   : > { %v658_v2 = vsel %vm645_vm5, %v621_v22, %v657_v1  ;;  %v5888_v28 = vld [vmem:[#allocation3 + $0x64] sm:$0xf0]  ;;  %v424_v1 = vmul.f32 %v6362_v44, %v6259_v32 }
  0xb2   : > { %675 = vst [vmem:[#allocation3 + $0x70] sm:$0xff] %v658_v2  ;;  %v5890_v8 = vld [vmem:[#allocation3 + $0x74] sm:$0xf0]  ;;  %v5230_v35 = vor.u32 %v5888_v28, %v5229_v24 }
  0xb5   : > { %v6339_v3 = vpop.permute.xlu0 %6064 }
  0xb6   : > { %v6342_v6 = vunpack.i.h.bf16 %v6339_v3  ;;  %v6066_v2 = vunpack.i.l.bf16 %v6339_v3 }
  0xb8   : > { %v720_v9 = vmul.f32 %v6342_v6, %v6204_v14  ;;  %v717_v11 = vmul.f32 %v6342_v6, %v6208_v15  ;;  %v714_v12 = vmul.f32 %v6342_v6, %v6188_v5  ;;  %v732_v29 = vmul.f32 %v6342_v6, %v6274_v37 }
  0xb9   : > { %v5237_v13 = vld [vmem:[#allocation3 + $0x70] sm:$0xf]  ;;  %v729_v30 = vmul.f32 %v6342_v6, %v6241_v26  ;;  %v723_v36 = vmul.f32 %v6342_v6, %v6238_v25  ;;  %v726_v53 = vmul.f32 %v6342_v6, %v6245_v27  ;;  %v735_v46 = vmul.f32 %v6342_v6, %v6278_v38 }
  0xba   : > { %v741_v17 = vpack.c.bf16 %v720_v9, %v720_v9  ;;  %v739_v18 = vpack.c.bf16 %v717_v11, %v717_v11  ;;  %v5238_v22 = vor.u32 %v5890_v8, %v5237_v13  ;;  %v737_v23 = vpack.c.bf16 %v714_v12, %v714_v12 }
  0xbb   : > { %v749_v40 = vpack.c.bf16 %v732_v29, %v732_v29  ;;  %v747_v41 = vpack.c.bf16 %v729_v30, %v729_v30  ;;  %v743_v45 = vpack.c.bf16 %v723_v36, %v723_v36  ;;  %v745_v56 = vpack.c.bf16 %v726_v53, %v726_v53 }
  0xbc   : > { %778 = vrot.lane.b32.xlu0 %v741_v17, %s6121_s12  ;;  %774 = vrot.lane.b32.xlu1 %v739_v18, %s6121_s12  ;;  %v751_v63 = vpack.c.bf16 %v735_v46, %v735_v46  ;;  %v409_v8 = vmul.f32 %v6362_v44, %v6220_v19  ;;  %v438_v9 = vpack.c.bf16 %v421_v0, %v6367_v49  ;;  %v6408_v3 = vmul.f32 0.0, %v6066_v2 }
  0xbd   : > { %770 = vrot.lane.b32.xlu2 %v737_v23, %s6121_s12  ;;  %2267 = vmatpush.bf16.msra.mxu0 %v5238_v22  ;;  %v440_v11 = vpack.c.bf16 %v424_v1, %v6367_v49  ;;  %v6402_v12 = vsel %vm707_vm7, %v6066_v2, %v6342_v6  ;;  %v418_v22 = vmul.f32 %v6362_v44, %v6256_v31  ;;  %v6449_v53 = vmul.f32 0.0, %v6071_v42 }
  0xbe   : > { %v430_v13 = vpack.c.bf16 %v409_v8, %v6367_v49  ;;  %v713_v17 = vmul.f32 %v6402_v12, %v6195_v10  ;;  %v716_v18 = vmul.f32 %v6402_v12, %v6185_v4  ;;  %v722_v29 = vmul.f32 %v6402_v12, %v6227_v21 }
  0xbf   : > { %v436_v28 = vpack.c.bf16 %v418_v22, %v6367_v49  ;;  %v725_v30 = vmul.f32 %v6402_v12, %v6223_v20  ;;  %v719_v34 = vmul.f32 %v6402_v12, %v6220_v19  ;;  %v731_v58 = vmul.f32 %v6402_v12, %v6263_v33 }
  0xc0   : > { %v736_v23 = vpack.c.bf16 %v713_v17, %v6408_v3  ;;  %v738_v24 = vpack.c.bf16 %v716_v18, %v6408_v3 }
  0xc1   : > { %2268 = vmatpush.bf16.msra.mxu0 %v5230_v35  ;;  %v742_v35 = vpack.c.bf16 %v722_v29, %v6408_v3  ;;  %v744_v36 = vpack.c.bf16 %v725_v30, %v6408_v3 }
  0xc4   : > { %794 = vrot.lane.b32.xlu0 %v749_v40, %s6121_s12  ;;  %790 = vrot.lane.b32.xlu1 %v747_v41, %s6121_s12  ;;  %v740_v40 = vpack.c.bf16 %v719_v34, %v6408_v3  ;;  %v6434_v41 = vunpack.i.h.bf16 %v6070_v39 }
  0xc5   : > { %782 = vrot.lane.b32.xlu2 %v743_v45, %s6121_s12  ;;  %2269 = vmatpush.bf16.msra.mxu0 %v5222_v47  ;;  %v734_v45 = vmul.f32 %v6402_v12, %v6259_v32  ;;  %v728_v47 = vmul.f32 %v6402_v12, %v6256_v31 }
  0xc6   : > { %v6444_v48 = vsel %vm877_vm8, %v6071_v42, %v6434_v41  ;;  %v905_v17 = vmul.f32 %v6434_v41, %v6278_v38  ;;  %v896_v22 = vmul.f32 %v6434_v41, %v6245_v27  ;;  %v899_v30 = vmul.f32 %v6434_v41, %v6241_v26 }
  0xc7   : > { %v750_v50 = vpack.c.bf16 %v734_v45, %v6408_v3  ;;  %v746_v51 = vpack.c.bf16 %v728_v47, %v6408_v3  ;;  %v898_v34 = vmul.f32 %v6444_v48, %v6256_v31 }
  0xc8   : > { %v915_v29 = vpack.c.bf16 %v896_v22, %v896_v22  ;;  %v917_v39 = vpack.c.bf16 %v899_v30, %v899_v30 }
  0xc9   : > { %2270 = vmatpush.bf16.msra.mxu0 %v5214_v52  ;;  %v748_v52 = vpack.c.bf16 %v731_v58, %v6408_v3  ;;  %v893_v58 = vmul.f32 %v6434_v41, %v6238_v25 }
  0xcc   : > { %462 = vrot.lane.b32.xlu1 %v428_v54, %s6120_s11  ;;  %458 = vrot.lane.b32.xlu0 %v426_v55, %s6120_s11  ;;  %v884_v54 = vmul.f32 %v6434_v41, %v6188_v5  ;;  %v883_v55 = vmul.f32 %v6444_v48, %v6195_v10  ;;  %v889_v5 = vmul.f32 %v6444_v48, %v6220_v19 }
  0xcd   : > { %786 = vrot.lane.b32.xlu2 %v745_v56, %s6121_s12  ;;  %v886_v56 = vmul.f32 %v6444_v48, %v6185_v4  ;;  %v887_v4 = vmul.f32 %v6434_v41, %v6208_v15  ;;  %v902_v19 = vmul.f32 %v6434_v41, %v6274_v37  ;;  %v901_v15 = vmul.f32 %v6444_v48, %v6263_v33 }
  0xce   : > { %v907_v57 = vpack.c.bf16 %v884_v54, %v884_v54  ;;  %v906_v59 = vpack.c.bf16 %v883_v55, %v6449_v53 }
  0xcf   : > { %v908_v46 = vpack.c.bf16 %v886_v56, %v6449_v53  ;;  %v909_v0 = vpack.c.bf16 %v887_v4, %v887_v4  ;;  %v919_v8 = vpack.c.bf16 %v902_v19, %v902_v19 }
  0xd4   : > { %470 = vrot.lane.b32.xlu1 %v432_v61, %s6120_s11  ;;  %474 = vrot.lane.b32.xlu0 %v434_v62, %s6120_s11  ;;  %v890_v62 = vmul.f32 %v6434_v41, %v6204_v14  ;;  %v904_v14 = vmul.f32 %v6444_v48, %v6259_v32 }
  0xd5   : > { %798 = vrot.lane.b32.xlu2 %v751_v63, %s6121_s12  ;;  %v910_v63 = vpack.c.bf16 %v889_v5, %v6449_v53 }
  0xd6   : > { %v911_v1 = vpack.c.bf16 %v890_v62, %v890_v62 }
  0xdc   : > { %482 = vrot.lane.b32.xlu1 %v438_v9, %s6120_s11  ;;  %486 = vrot.lane.b32.xlu0 %v440_v11, %s6120_s11  ;;  %v918_v9 = vpack.c.bf16 %v901_v15, %v6449_v53  ;;  %v920_v11 = vpack.c.bf16 %v904_v14, %v6449_v53 }
  0xdd   : > { %466 = vrot.lane.b32.xlu2 %v430_v13, %s6120_s11  ;;  %v895_v13 = vmul.f32 %v6444_v48, %v6223_v20 }
  0xe4   : > { %768 = vrot.lane.b32.xlu1 %v736_v23, %s6121_s12  ;;  %772 = vrot.lane.b32.xlu0 %v738_v24, %s6121_s12  ;;  %v914_v24 = vpack.c.bf16 %v895_v13, %v6449_v53 }
  0xe5   : > { %478 = vrot.lane.b32.xlu2 %v436_v28, %s6120_s11  ;;  %v921_v28 = vpack.c.bf16 %v905_v17, %v905_v17 }
  0xec   : > { %780 = vrot.lane.b32.xlu1 %v742_v35, %s6121_s12  ;;  %784 = vrot.lane.b32.xlu0 %v744_v36, %s6121_s12  ;;  %v892_v36 = vmul.f32 %v6444_v48, %v6227_v21 }
  0xed   : > { %776 = vrot.lane.b32.xlu2 %v740_v40, %s6121_s12  ;;  %v916_v40 = vpack.c.bf16 %v898_v34, %v6449_v53 }
  0xee   : > { %v912_v42 = vpack.c.bf16 %v892_v36, %v6449_v53 }
  0xef   : > { %v6462_v61 = vpop.permute.xlu2 %464 }
  0xf0   : > { %v493_v19 = vrot.slane %v6462_v61, 4 }
  0xf4   : > { %796 = vrot.lane.b32.xlu1 %v750_v50, %s6121_s12  ;;  %788 = vrot.lane.b32.xlu0 %v746_v51, %s6121_s12  ;;  %v913_v51 = vpack.c.bf16 %v893_v58, %v893_v58 }
  0xf5   : > { %792 = vrot.lane.b32.xlu2 %v748_v52, %s6121_s12 }
  0xf7   : > { %v6476_v2 = vpop.permute.xlu2 %472 }
  0xf8   : > { %v497_v34 = vrot.slane %v6476_v2, 4 }
  0xfc   : > { %940 = vrot.lane.b32.xlu1 %v907_v57, %s6122_s13  ;;  %938 = vrot.lane.b32.xlu0 %v906_v59, %s6122_s13 }
  0xfd   : > { %942 = vrot.lane.b32.xlu2 %v908_v46, %s6122_s13 }
  0xff   : > { %v6494_v18 = vpop.permute.xlu2 %484 }
 0x104   : > { %946 = vrot.lane.b32.xlu1 %v910_v63, %s6122_s13  ;;  %944 = vrot.lane.b32.xlu0 %v909_v0, %s6122_s13 }
 0x105   : > { %948 = vrot.lane.b32.xlu2 %v911_v1, %s6122_s13 }
 0x106   : > { %v461_v23 = vpop.permute.xlu1 %460  ;;  %v469_v45 = vpop.permute.xlu0 %468 }
 0x107   : > { %v495_v5 = vrot.slane %v469_v45, 4  ;;  %v491_v15 = vrot.slane %v461_v23, 4 }
 0x10c   : > { %964 = vrot.lane.b32.xlu1 %v919_v8, %s6122_s13  ;;  %962 = vrot.lane.b32.xlu0 %v918_v9, %s6122_s13 }
 0x10d   : > { %966 = vrot.lane.b32.xlu2 %v920_v11, %s6122_s13 }
 0x10e   : > { %v477_v47 = vpop.permute.xlu1 %476  ;;  %v481_v21 = vpop.permute.xlu0 %480 }
 0x10f   : > { %v501_v11 = vrot.slane %v481_v21, 4  ;;  %v499_v36 = vrot.slane %v477_v47, 4 }
 0x114   : > { %954 = vrot.lane.b32.xlu1 %v914_v24, %s6122_s13  ;;  %968 = vrot.lane.b32.xlu0 %v921_v28, %s6122_s13 }
 0x115   : > { %956 = vrot.lane.b32.xlu2 %v915_v29, %s6122_s13 }
 0x116   : > { %v6522_v52 = vpop.permute.xlu1 %488 }
 0x117   : > { %v6506_v35 = vpop.permute.xlu2 %770 }
 0x11c   : > { %960 = vrot.lane.b32.xlu1 %v917_v39, %s6122_s13  ;;  %958 = vrot.lane.b32.xlu0 %v916_v40, %s6122_s13 }
 0x11d   : > { %950 = vrot.lane.b32.xlu2 %v912_v42, %s6122_s13 }
 0x11f   : > { %v6517_v50 = vpop.permute.xlu2 %782 }
 0x124   : > { %6074 = vrot.lane.b32.xlu1 %v6288_v43, %s6122_s13  ;;  %952 = vrot.lane.b32.xlu0 %v913_v51, %s6122_s13 }
 0x125   : > { %6079 = vrot.lane.b32.xlu2 %v6210_v16, %s6121_s12 }
 0x127   : > { %v6524_v54 = vpop.permute.xlu2 %786 }
 0x12c   : > { %6084 = vrot.lane.b32.xlu0 %v6288_v43, %s6120_s11  ;;  %v6586_v43 = vpack.c.bf16 %v6274_v37, %v6263_v33 }
 0x12e   : > { %v779_v55 = vpop.permute.xlu0 %778  ;;  %v6526_v56 = vpop.permute.xlu1 %774  ;;  %1049 = vst [vmem:[#allocation3 + $0x130] sm:$0xff] %v6586_v43 }
 0x12f   : > { %v6528_v57 = vpop.permute.xlu2 %798  ;;  %v805_v45 = vrot.slane %v779_v55, 4  ;;  %v503_v55 = vrot.slane %v6494_v18, 4 }
 0x136   : > { %v795_v59 = vpop.permute.xlu0 %794  ;;  %v6530_v25 = vpop.permute.xlu1 %790 }
 0x137   : > { %v467_v46 = vpop.permute.xlu2 %466 }
 0x138   : > { %v494_v4 = vrot.slane %v467_v46, 4 }
 0x13a   : > { %v512_v62 = vsel %vm506_vm4, %v494_v4, %v495_v5 }
 0x13b   : > { %v513_v63 = vsel %vm508_vm9, %v467_v46, %v512_v62 }
 0x13c   : > { %534 = vst [vmem:[#allocation3 + $0x10] sm:$0xff] %v513_v63  ;;  %v505_v63 = vrot.slane %v6522_v52, 4 }
 0x13e   : > { %v463_v0 = vpop.permute.xlu1 %462  ;;  %v459_v1 = vpop.permute.xlu0 %458 }
 0x13f   : > { %v492_v14 = vrot.slane %v463_v0, 4  ;;  %v479_v8 = vpop.permute.xlu2 %478  ;;  %v490_v9 = vrot.slane %v459_v1, 4 }
 0x140   : > { %v500_v13 = vrot.slane %v479_v8, 4 }
 0x141   : > { %v510_v17 = vsel %vm506_vm4, %v492_v14, %v493_v19  ;;  %v507_v22 = vsel %vm506_vm4, %v490_v9, %v491_v15  ;;  %v813_v15 = vrot.slane %v795_v59, 4  ;;  %v801_v59 = vrot.slane %v6506_v35, 4 }
 0x142   : > { %v511_v24 = vsel %vm508_vm9, %v463_v0, %v510_v17  ;;  %v518_v28 = vsel %vm506_vm4, %v500_v13, %v501_v11  ;;  %v509_v29 = vsel %vm508_vm9, %v459_v1, %v507_v22 }
 0x143   : > { %533 = vst [vmem:[#allocation3 + $0x8] sm:$0xff] %v511_v24  ;;  %v519_v30 = vsel %vm508_vm9, %v479_v8, %v518_v28  ;;  %v803_v24 = vrot.slane %v6526_v56, 4  ;;  %v807_v56 = vrot.slane %v6517_v50, 4  ;;  %v5189_v50 = vld [vmem:[#allocation3 + $0x10] sm:$0xf] }
 0x144   : > { %537 = vst [vmem:[#allocation3 + $0x28] sm:$0xff] %v519_v30 }
 0x145   : > { %532 = vst [vmem:[#allocation3] sm:$0xff] %v509_v29 }
 0x146   : > { %v471_v61 = vpop.permute.xlu1 %470  ;;  %v475_v23 = vpop.permute.xlu0 %474 }
 0x147   : > { %v496_v39 = vrot.slane %v471_v61, 4  ;;  %v777_v40 = vpop.permute.xlu2 %776  ;;  %v498_v42 = vrot.slane %v475_v23, 4 }
 0x148   : > { %v804_v58 = vrot.slane %v777_v40, 4 }
 0x149   : > { %v514_v51 = vsel %vm506_vm4, %v496_v39, %v497_v34  ;;  %v516_v21 = vsel %vm506_vm4, %v498_v42, %v499_v36 }
 0x14a   : > { %v515_v46 = vsel %vm508_vm9, %v471_v61, %v514_v51  ;;  %v821_v5 = vsel %vm506_vm4, %v804_v58, %v805_v45  ;;  %v517_v4 = vsel %vm508_vm9, %v475_v23, %v516_v21  ;;  %v809_v58 = vrot.slane %v6524_v54, 4 }
 0x14b   : > { %535 = vst [vmem:[#allocation3 + $0x18] sm:$0xff] %v515_v46  ;;  %v822_v2 = vsel %vm817_vm10, %v777_v40, %v821_v5  ;;  %v5880_v46 = vld [vmem:[#allocation3 + $0x24] sm:$0xf0] }
 0x14c   : > { %843 = vst [vmem:[#allocation3 + $0x90] sm:$0xff] %v822_v2 }
 0x14d   : > { %536 = vst [vmem:[#allocation3 + $0x20] sm:$0xff] %v517_v4 }
 0x14e   : > { %v483_v47 = vpop.permute.xlu1 %482  ;;  %v487_v62 = vpop.permute.xlu0 %486 }
 0x14f   : > { %v502_v0 = vrot.slane %v483_v47, 4  ;;  %v793_v1 = vpop.permute.xlu2 %792  ;;  %v504_v19 = vrot.slane %v487_v62, 4 }
 0x150   : > { %v812_v14 = vrot.slane %v793_v1, 4 }
 0x151   : > { %v520_v8 = vsel %vm506_vm4, %v502_v0, %v503_v55  ;;  %v522_v9 = vsel %vm506_vm4, %v504_v19, %v505_v63  ;;  %v5181_v19 = vld [vmem:[#allocation3] sm:$0xf] }
 0x152   : > { %v521_v11 = vsel %vm508_vm9, %v483_v47, %v520_v8  ;;  %v829_v13 = vsel %vm506_vm4, %v812_v14, %v813_v15  ;;  %v523_v17 = vsel %vm508_vm9, %v487_v62, %v522_v9  ;;  %v5878_v55 = vld [vmem:[#allocation3 + $0x14] sm:$0xf0]  ;;  %v5876_v15 = vld [vmem:[#allocation3 + $0x4] sm:$0xf0]  ;;  %v815_v14 = vrot.slane %v6528_v57, 4 }
 0x153   : > { %538 = vst [vmem:[#allocation3 + $0x30] sm:$0xff] %v521_v11  ;;  %v830_v18 = vsel %vm817_vm10, %v793_v1, %v829_v13  ;;  %v5190_v54 = vor.u32 %v5878_v55, %v5189_v50  ;;  %v811_v8 = vrot.slane %v6530_v25, 4 }
 0x154   : > { %847 = vst [vmem:[#allocation3 + $0xb0] sm:$0xff] %v830_v18  ;;  %v5197_v35 = vld [vmem:[#allocation3 + $0x20] sm:$0xf]  ;;  %v5182_v18 = vor.u32 %v5876_v15, %v5181_v19 }
 0x155   : > { %539 = vst [vmem:[#allocation3 + $0x38] sm:$0xff] %v523_v17  ;;  %v5198_v2 = vor.u32 %v5880_v46, %v5197_v35 }
 0x156   : > { %v769_v52 = vpop.permute.xlu1 %768  ;;  %v773_v22 = vpop.permute.xlu0 %772 }
 0x157   : > { %v800_v28 = vrot.slane %v769_v52, 4  ;;  %v802_v29 = vrot.slane %v773_v22, 4  ;;  %v943_v63 = vpop.permute.xlu2 %942 }
 0x159   : > { %v816_v30 = vsel %vm506_vm4, %v800_v28, %v801_v59  ;;  %v819_v61 = vsel %vm506_vm4, %v802_v29, %v803_v24 }
 0x15a   : > { %v818_v23 = vsel %vm817_vm10, %v769_v52, %v816_v30  ;;  %v820_v34 = vsel %vm817_vm10, %v773_v22, %v819_v61  ;;  %v5205_v36 = vld [vmem:[#allocation3 + $0x30] sm:$0xf] }
 0x15b   : > { %841 = vst [vmem:[#allocation3 + $0x80] sm:$0xff] %v818_v23 }
 0x15c   : > { %842 = vst [vmem:[#allocation3 + $0x88] sm:$0xff] %v820_v34  ;;  %v5882_v39 = vld [vmem:[#allocation3 + $0x34] sm:$0xf0]  ;;  %v972_v34 = vrot.slane %v943_v63, 4 }
 0x15d   : > { %v5206_v40 = vor.u32 %v5882_v39, %v5205_v36 }
 0x15e   : > { %v781_v42 = vpop.permute.xlu1 %780  ;;  %v785_v45 = vpop.permute.xlu0 %784 }
 0x15f   : > { %2271 = vmatpush.bf16.msra.mxu0 %v5206_v40  ;;  %v806_v51 = vrot.slane %v781_v42, 4  ;;  %v808_v21 = vrot.slane %v785_v45, 4  ;;  %v949_v28 = vpop.permute.xlu2 %948 }
 0x160   : > { %v975_v36 = vrot.slane %v949_v28, 4 }
 0x161   : > { %v823_v5 = vsel %vm506_vm4, %v806_v51, %v807_v56  ;;  %v825_v4 = vsel %vm506_vm4, %v808_v21, %v809_v58 }
 0x162   : > { %v824_v47 = vsel %vm817_vm10, %v781_v42, %v823_v5  ;;  %v826_v62 = vsel %vm817_vm10, %v785_v45, %v825_v4 }
 0x163   : > { %844 = vst [vmem:[#allocation3 + $0x98] sm:$0xff] %v824_v47  ;;  %2272 = vmatpush.bf16.msra.mxu0 %v5198_v2 }
 0x164   : > { %845 = vst [vmem:[#allocation3 + $0xa0] sm:$0xff] %v826_v62 }
 0x166   : > { %v797_v0 = vpop.permute.xlu1 %796  ;;  %v789_v1 = vpop.permute.xlu0 %788 }
 0x167   : > { %2273 = vmatpush.bf16.msra.mxu0 %v5190_v54  ;;  %v814_v9 = vrot.slane %v797_v0, 4  ;;  %v810_v11 = vrot.slane %v789_v1, 4  ;;  %v967_v45 = vpop.permute.xlu2 %966 }
 0x168   : > { %v984_v55 = vrot.slane %v967_v45, 4 }
 0x169   : > { %v831_v13 = vsel %vm506_vm4, %v814_v9, %v815_v14  ;;  %v827_v17 = vsel %vm506_vm4, %v810_v11, %v811_v8  ;;  %v6597_v9 = vpack.c.bf16 %v6278_v38, %v6259_v32 }
 0x16a   : > { %v832_v52 = vsel %vm817_vm10, %v797_v0, %v831_v13  ;;  %v828_v22 = vsel %vm817_vm10, %v789_v1, %v827_v17 }
 0x16b   : > { %848 = vst [vmem:[#allocation3 + $0xb8] sm:$0xff] %v832_v52  ;;  %2274 = vmatpush.bf16.msra.mxu0 %v5182_v18 }
 0x16c   : > { %846 = vst [vmem:[#allocation3 + $0xa8] sm:$0xff] %v828_v22 }
 0x16d   : > { %1050 = vst [vmem:[#allocation3 + $0x138] sm:$0xff] %v6597_v9 }
 0x16e   : > { %v941_v59 = vpop.permute.xlu1 %940  ;;  %v939_v24 = vpop.permute.xlu0 %938 }
 0x16f   : > { %v971_v57 = vrot.slane %v941_v59, 4  ;;  %v970_v25 = vrot.slane %v939_v24, 4  ;;  %v957_v2 = vpop.permute.xlu2 %956 }
 0x170   : > { %v979_v50 = vrot.slane %v957_v2, 4 }
 0x171   : > { %v986_v29 = vsel %vm506_vm4, %v970_v25, %v971_v57 }
 0x172   : > { %v988_v30 = vsel %vm987_vm11, %v939_v24, %v986_v29 }
 0x173   : > { %1011 = vst [vmem:[#allocation3 + $0xc0] sm:$0xff] %v988_v30 }
 0x176   : > { %v947_v61 = vpop.permute.xlu1 %946  ;;  %v945_v23 = vpop.permute.xlu0 %944 }
 0x177   : > { %v974_v39 = vrot.slane %v947_v61, 4  ;;  %v973_v40 = vrot.slane %v945_v23, 4  ;;  %v951_v59 = vpop.permute.xlu2 %950 }
 0x178   : > { %v976_v28 = vrot.slane %v951_v59, 4 }
 0x179   : > { %v991_v16 = vsel %vm506_vm4, %v974_v39, %v975_v36  ;;  %v989_v42 = vsel %vm506_vm4, %v972_v34, %v973_v40 }
 0x17a   : > { %v992_v35 = vsel %vm987_vm11, %v947_v61, %v991_v16  ;;  %v990_v56 = vsel %vm987_vm11, %v943_v63, %v989_v42 }
 0x17b   : > { %1013 = vst [vmem:[#allocation3 + $0xd0] sm:$0xff] %v992_v35 }
 0x17c   : > { %1012 = vst [vmem:[#allocation3 + $0xc8] sm:$0xff] %v990_v56 }
 0x17e   : > { %v965_v58 = vpop.permute.xlu1 %964  ;;  %v963_v51 = vpop.permute.xlu0 %962 }
 0x17f   : > { %v983_v21 = vrot.slane %v965_v58, 4  ;;  %v982_v46 = vrot.slane %v963_v51, 4 }
 0x181   : > { %v999_v5 = vsel %vm506_vm4, %v982_v46, %v983_v21 }
 0x182   : > { %v1000_v4 = vsel %vm987_vm11, %v963_v51, %v999_v5 }
 0x183   : > { %1017 = vst [vmem:[#allocation3 + $0xf0] sm:$0xff] %v1000_v4  ;;  %v5285_v4 = vld [vmem:[#allocation3 + $0xd0] sm:$0xf] }
 0x186   : > { %v955_v47 = vpop.permute.xlu1 %954  ;;  %v969_v62 = vpop.permute.xlu0 %968 }
 0x187   : > { %v978_v63 = vrot.slane %v955_v47, 4  ;;  %v985_v54 = vrot.slane %v969_v62, 4 }
 0x189   : > { %v995_v0 = vsel %vm506_vm4, %v978_v63, %v979_v50  ;;  %v1001_v1 = vsel %vm506_vm4, %v984_v55, %v985_v54  ;;  %v5900_v55 = vld [vmem:[#allocation3 + $0xc4] sm:$0xf0] }
 0x18a   : > { %v996_v19 = vsel %vm987_vm11, %v955_v47, %v995_v0  ;;  %v1002_v15 = vsel %vm987_vm11, %v967_v45, %v1001_v1  ;;  %v5301_v52 = vld [vmem:[#allocation3 + $0xf0] sm:$0xf]  ;;  %v6613_v45 = vld [vmem:[%s6182_s29 + $0x8] sm:$0xff] }
 0x18b   : > { %1015 = vst [vmem:[#allocation3 + $0xe0] sm:$0xff] %v996_v19  ;;  %v5896_v63 = vld [vmem:[#allocation3 + $0xa4] sm:$0xf0]  ;;  %v6653_v0 = vld [vmem:[%s6182_s29 + $0x50] sm:$0xff]  ;;  %v6658_v19 = vld [vmem:[%s6182_s29 + $0x58] sm:$0xff] }
 0x18c   : > { %1018 = vst [vmem:[#allocation3 + $0xf8] sm:$0xff] %v1002_v15 }
 0x18e   : > { %v961_v14 = vpop.permute.xlu1 %960  ;;  %v959_v8 = vpop.permute.xlu0 %958 }
 0x18f   : > { %v981_v11 = vrot.slane %v961_v14, 4  ;;  %v980_v13 = vrot.slane %v959_v8, 4  ;;  %v5894_v14 = vld [vmem:[#allocation3 + $0x94] sm:$0xf0] }
 0x191   : > { %v997_v17 = vsel %vm506_vm4, %v980_v13, %v981_v11  ;;  %v6668_v11 = vld [vmem:[%s6182_s29 + $0x48] sm:$0xff] }
 0x192   : > { %v998_v18 = vsel %vm987_vm11, %v959_v8, %v997_v17  ;;  %v5293_v16 = vld [vmem:[#allocation3 + $0xe0] sm:$0xf]  ;;  %v5253_v17 = vld [vmem:[#allocation3 + $0x90] sm:$0xf] }
 0x193   : > { %1016 = vst [vmem:[#allocation3 + $0xe8] sm:$0xff] %v998_v18  ;;  %v5906_v22 = vld [vmem:[#allocation3 + $0xf4] sm:$0xf0]  ;;  %v6663_v8 = vld [vmem:[%s6182_s29 + $0x40] sm:$0xff] }
 0x194   : > { %v5302_v24 = vor.u32 %v5906_v22, %v5301_v52  ;;  %v5254_v52 = vor.u32 %v5894_v14, %v5253_v17  ;;  %v6673_v22 = vld [vmem:[%s6182_s29 + $0x30] sm:$0xff]  ;;  %v5191_v14 = vld [vmem:[#allocation3 + $0x18] sm:$0xf0]  ;;  %v5875_v17 = vld [vmem:[#allocation3 + $0x4] sm:$0xf] }
 0x196   : > { %2296 = vmatpush.bf16.msra.mxu1 %v5302_v24  ;;  %v6075_v57 = vpop.permute.xlu1 %6074  ;;  %v953_v25 = vpop.permute.xlu0 %952 }
 0x197   : > { %v6077_v29 = vunpack.i.h.bf16 %v6075_v57  ;;  %v6602_v30 = vunpack.i.l.bf16 %v6075_v57  ;;  %v977_v61 = vrot.slane %v953_v25, 4  ;;  %v5245_v25 = vld [vmem:[#allocation3 + $0x80] sm:$0xf] }
 0x199   : > { %v1086_v23 = vmul.f32 0.0, %v6077_v29  ;;  %v6606_v34 = vsel %vm987_vm11, %v6602_v30, %v6077_v29  ;;  %v993_v36 = vsel %vm506_vm4, %v976_v28, %v977_v61  ;;  %v1084_v39 = vmul.f32 %v6602_v30, %v6195_v10  ;;  %v5892_v28 = vld [vmem:[#allocation3 + $0x84] sm:$0xf0]  ;;  %v5889_v29 = vld [vmem:[#allocation3 + $0x74] sm:$0xf] }
 0x19a   : > { %v994_v40 = vsel %vm987_vm11, %v951_v59, %v993_v36  ;;  %v5904_v42 = vld [vmem:[#allocation3 + $0xe4] sm:$0xf0]  ;;  %v1085_v35 = vmul.f32 %v6613_v45, %v6606_v34  ;;  %v1102_v56 = vmul.f32 %v6602_v30, %v6263_v33  ;;  %v1103_v58 = vmul.f32 %v6606_v34, %v6274_v37  ;;  %v6676_v59 = vld [vmem:[%s6182_s29 + $0x38] sm:$0xff]  ;;  %v6688_v36 = vld [vmem:[%s6182_s29 + $0x20] sm:$0xff] }
 0x19b   : > { %v6621_v51 = vpack.c.bf16 %v1086_v23, %v1086_v23  ;;  %1014 = vst [vmem:[#allocation3 + $0xd8] sm:$0xff] %v994_v40  ;;  %v5294_v21 = vor.u32 %v5904_v42, %v5293_v16  ;;  %v6629_v33 = vpack.c.bf16 %v6245_v27, %v6223_v20  ;;  %v1105_v37 = vmul.f32 %v6602_v30, %v6259_v32  ;;  %v5277_v27 = vld [vmem:[#allocation3 + $0xc0] sm:$0xf]  ;;  %v5239_v61 = vld [vmem:[#allocation3 + $0x78] sm:$0xf0]  ;;  %v6685_v23 = vld [vmem:[%s6182_s29 + $0x28] sm:$0xff] }
 0x19c   : > { %v1108_v10 = vpack.c.bf16 %v1085_v35, %v1084_v39  ;;  %v1120_v46 = vpack.c.bf16 %v1103_v58, %v1102_v56  ;;  %v1106_v5 = vmul.f32 %v6606_v34, %v6278_v38  ;;  %v6640_v20 = vpack.c.bf16 %v6241_v26, %v6256_v31  ;;  %v5898_v38 = vld [vmem:[#allocation3 + $0xb4] sm:$0xf0]  ;;  %v5261_v31 = vld [vmem:[#allocation3 + $0xa0] sm:$0xf]  ;;  %v5887_v42 = vld [vmem:[#allocation3 + $0x64] sm:$0xf] }
 0x19d   : > { %1166 = vrot.lane.b32.xlu0 %v6621_v51, %s6119_s10  ;;  %2297 = vmatpush.bf16.msra.mxu1 %v5294_v21  ;;  %1047 = vst [vmem:[#allocation3 + $0x120] sm:$0xff] %v6629_v33  ;;  %v5278_v32 = vor.u32 %v5900_v55, %v5277_v27  ;;  %v8540_v26 = vmov 0.0|0.0   ;;  %v5262_v54 = vor.u32 %v5896_v63, %v5261_v31  ;;  %v5231_v35 = vld [vmem:[#allocation3 + $0x68] sm:$0xf0]  ;;  %v5223_v58 = vld [vmem:[#allocation3 + $0x58] sm:$0xf0] }
 0x19e   : > { %1140 = vrot.lane.b32.xlu1 %v1108_v10, %s6119_s10  ;;  %1164 = vrot.lane.b32.xlu2 %v1120_v46, %s6119_s10  ;;  %v1122_v62 = vpack.c.bf16 %v1106_v5, %v1105_v37  ;;  %1048 = vst [vmem:[#allocation3 + $0x128] sm:$0xff] %v6640_v20  ;;  %v1099_v1 = vmul.f32 %v6653_v0, %v6602_v30  ;;  %v5885_v46 = vld [vmem:[#allocation3 + $0x54] sm:$0xf]  ;;  %v5883_v5 = vld [vmem:[#allocation3 + $0x44] sm:$0xf] }
 0x19f   : > { %v1100_v15 = vmul.f32 %v6658_v19, %v6606_v34  ;;  %v1097_v13 = vmul.f32 %v6668_v11, %v6606_v34  ;;  %v6680_v24 = vpack.c.bf16 %v6676_v59, %v6673_v22  ;;  %v1037_v39 = vpack.c.bf16 %v6685_v23, %v6688_v36  ;;  %v6711_v55 = vld [vmem:[%s6182_s29] sm:$0xff]  ;;  %v5199_v63 = vld [vmem:[#allocation3 + $0x28] sm:$0xf0] }
 0x1a0   : > { %v5246_v40 = vor.u32 %v5892_v28, %v5245_v25  ;;  %v5242_v16 = vor.u32 %v5889_v29, %v5239_v61  ;;  %v5234_v56 = vor.u32 %v5887_v42, %v5231_v35  ;;  %v1090_v21 = vmul.f32 %v6688_v36, %v6602_v30  ;;  %v6080_v29 = vpop.permute.xlu2 %6079  ;;  %v6104_v42 = vld [vmem:[%s6182_s29 + $0x68] sm:$0xff] }
 0x1a1   : > { %v1118_v18 = vpack.c.bf16 %v1100_v15, %v1099_v1  ;;  %1046 = vst [vmem:[#allocation3 + $0x118] sm:$0xff] %v6680_v24  ;;  %v1091_v10 = vmul.f32 %v6685_v23, %v6606_v34  ;;  %v5226_v37 = vor.u32 %v5885_v46, %v5223_v58  ;;  %v1035_v27 = vpack.c.bf16 %v6613_v45, %v6711_v55  ;;  %v6725_v1 = vld [vmem:[%s6182_s29 + $0x18] sm:$0xff] }
 0x1a2   : > { %v5902_v2 = vld [vmem:[#allocation3 + $0xd4] sm:$0xf0]  ;;  %1045 = vst [vmem:[#allocation3 + $0x110] sm:$0xff] %v1037_v39  ;;  %v1088_v25 = vmul.f32 %v6725_v1, %v6606_v34  ;;  %v6746_v61 = vunpack.i.l.bf16 %v6080_v29 }
 0x1a3   : > { %v5286_v47 = vor.u32 %v5902_v2, %v5285_v4  ;;  %v5215_v4 = vld [vmem:[#allocation3 + $0x48] sm:$0xf0]  ;;  %v1112_v2 = vpack.c.bf16 %v1091_v10, %v1090_v21  ;;  %1043 = vst [vmem:[#allocation3 + $0x100] sm:$0xff] %v1035_v27  ;;  %v6105_v21 = vld [vmem:[%s6182_s29 + $0x70] sm:$0xff]  ;;  %v6106_v46 = vld [vmem:[%s6182_s29 + $0x78] sm:$0xff] }
 0x1a4   : > { %8563 = vst [vmem:[#allocation4_spill] sm:$0xff] %v6746_v61  ;;  %v1275_v10 = vmul.f32 %v6105_v21, %v6746_v61 }
 0x1a5   : > { %1471 = vrot.lane.b32.xlu0 %v6586_v43, %s6123_s14  ;;  %2298 = vmatpush.bf16.msra.mxu1 %v5286_v47  ;;  %v5269_v43 = vld [vmem:[#allocation3 + $0xb0] sm:$0xf]  ;;  %v5218_v47 = vor.u32 %v5883_v5, %v5215_v4 }
 0x1a6   : > { %1168 = vrot.lane.b32.xlu1 %v1122_v62, %s6119_s10  ;;  %1170 = vrot.lane.b32.xlu2 %v6621_v51, %s6119_s10  ;;  %v5270_v50 = vor.u32 %v5898_v38, %v5269_v43  ;;  %v5207_v62 = vld [vmem:[#allocation3 + $0x38] sm:$0xf0]  ;;  %v1094_v38 = vmul.f32 %v6676_v59, %v6606_v34  ;;  %v5879_v43 = vld [vmem:[#allocation3 + $0x24] sm:$0xf] }
 0x1a7   : > { %v5202_v31 = vor.u32 %v5879_v43, %v5199_v63 }
 0x1a9   : > { %2299 = vmatpush.bf16.msra.mxu1 %v5278_v32  ;;  %v1093_v32 = vmul.f32 %v6673_v22, %v6602_v30 }
 0x1ad   : > { %1477 = vrot.lane.b32.xlu0 %v8540_v26, %s6123_s14  ;;  %2300 = vmatpush.bf16.msra.mxu1 %v5270_v50  ;;  %v1114_v50 = vpack.c.bf16 %v1094_v38, %v1093_v32  ;;  %v6085_v38 = vpop.permute.xlu0 %6084 }
 0x1ae   : > { %1473 = vrot.lane.b32.xlu1 %v8540_v26, %s6123_s14  ;;  %1475 = vrot.lane.b32.xlu2 %v6597_v9, %s6123_s14  ;;  %v1096_v9 = vmul.f32 %v6663_v8, %v6602_v30  ;;  %v6087_v43 = vunpack.i.h.bf16 %v6085_v38 }
 0x1b0   : > { %v1116_v57 = vpack.c.bf16 %v1097_v13, %v1096_v9  ;;  %v5877_v9 = vld [vmem:[#allocation3 + $0x14] sm:$0xf] }
 0x1b1   : > { %2301 = vmatpush.bf16.msra.mxu1 %v5262_v54  ;;  %v6722_v54 = vld [vmem:[%s6182_s29 + $0x10] sm:$0xff]  ;;  %v5194_v13 = vor.u32 %v5877_v9, %v5191_v14 }
 0x1b2   : > { %v1036_v15 = vpack.c.bf16 %v6725_v1, %v6722_v54 }
 0x1b4   : > { %1044 = vst [vmem:[#allocation3 + $0x108] sm:$0xff] %v1036_v15 }
 0x1b5   : > { %1160 = vrot.lane.b32.xlu0 %v1118_v18, %s6119_s10  ;;  %2302 = vmatpush.bf16.msra.mxu1 %v5254_v52  ;;  %v5183_v18 = vld [vmem:[#allocation3 + $0x8] sm:$0xf0] }
 0x1b6   : > { %1156 = vrot.lane.b32.xlu1 %v1116_v57, %s6119_s10  ;;  %1158 = vrot.lane.b32.xlu2 %v6621_v51, %s6119_s10  ;;  %v5186_v52 = vor.u32 %v5875_v17, %v5183_v18  ;;  %v1087_v57 = vmul.f32 %v6722_v54, %v6602_v30 }
 0x1b8   : > { %v1110_v28 = vpack.c.bf16 %v1088_v25, %v1087_v57 }
 0x1b9   : > { %2303 = vmatpush.bf16.msra.mxu1 %v5246_v40  ;;  %v6103_v40 = vld [vmem:[%s6182_s29 + $0x60] sm:$0xff] }
 0x1bd   : > { %2412 = vmatpush.bf16.msrb.mxu1 %v5242_v16  ;;  %1465 = vrot.lane.b32.xlu0 %v8540_v26, %s6123_s14  ;;  %v1272_v16 = vmul.f32 %v6103_v40, %v6746_v61 }
 0x1be   : > { %1162 = vrot.lane.b32.xlu1 %v6621_v51, %s6119_s10  ;;  %1463 = vrot.lane.b32.xlu2 %v6629_v33, %s6123_s14  ;;  %v5881_v33 = vld [vmem:[#allocation3 + $0x34] sm:$0xf] }
 0x1c1   : > { %2413 = vmatpush.bf16.msrb.mxu1 %v5234_v56 }
 0x1c5   : > { %2414 = vmatpush.bf16.msrb.mxu1 %v5226_v37  ;;  %1148 = vrot.lane.b32.xlu0 %v1112_v2, %s6119_s10  ;;  %v1269_v2 = vmul.f32 %v6653_v0, %v6746_v61 }
 0x1c6   : > { %1467 = vrot.lane.b32.xlu1 %v6640_v20, %s6123_s14  ;;  %1469 = vrot.lane.b32.xlu2 %v8540_v26, %s6123_s14  ;;  %v5210_v20 = vor.u32 %v5881_v33, %v5207_v62  ;;  %v1266_v62 = vmul.f32 %v6663_v8, %v6746_v61 }
 0x1c9   : > { %2415 = vmatpush.bf16.msrb.mxu1 %v5218_v47 }
 0x1cd   : > { %2416 = vmatpush.bf16.msrb.mxu1 %v5210_v20  ;;  %1154 = vrot.lane.b32.xlu0 %v6621_v51, %s6119_s10 }
 0x1ce   : > { %1150 = vrot.lane.b32.xlu1 %v6621_v51, %s6119_s10  ;;  %1152 = vrot.lane.b32.xlu2 %v1114_v50, %s6119_s10  ;;  %v6788_v50 = vunpack.i.l.bf16 %v6085_v38 }
 0x1d0   : > { %8566 = vst [vmem:[#allocation7_spill] sm:$0xff] %v6788_v50  ;;  %v6796_v14 = vsel %vm508_vm9, %v6788_v50, %v6087_v43 }
 0x1d1   : > { %2417 = vmatpush.bf16.msrb.mxu1 %v5202_v31  ;;  %v1260_v31 = vmul.f32 %v6688_v36, %v6746_v61  ;;  %8567 = vst [vmem:[#allocation8_spill] sm:$0xff] %v6796_v14  ;;  %v1580_v17 = vmul.f32 %v6104_v42, %v6796_v14 }
 0x1d5   : > { %2418 = vmatpush.bf16.msrb.mxu1 %v5194_v13  ;;  %1459 = vrot.lane.b32.xlu0 %v6680_v24, %s6123_s14  ;;  %v6082_v24 = vunpack.i.h.bf16 %v6080_v29  ;;  %v1579_v13 = vmul.f32 %v6103_v40, %v6788_v50  ;;  %v1563_v29 = vmul.f32 0.0, %v6087_v43  ;;  %v1583_v40 = vmul.f32 %v6106_v46, %v6796_v14 }
 0x1d6   : > { %1455 = vrot.lane.b32.xlu1 %v1037_v39, %s6123_s14  ;;  %1457 = vrot.lane.b32.xlu2 %v8540_v26, %s6123_s14 }
 0x1d7   : > { %v6750_v39 = vsel %vm817_vm10, %v6746_v61, %v6082_v24  ;;  %v1256_v58 = vmul.f32 0.0, %v6082_v24  ;;  %v1597_v25 = vpack.c.bf16 %v1580_v17, %v1579_v13  ;;  %v1582_v24 = vmul.f32 %v6105_v21, %v6788_v50 }
 0x1d8   : > { %8564 = vst [vmem:[#allocation5_spill] sm:$0xff] %v6750_v39  ;;  %v1273_v35 = vmul.f32 %v6104_v42, %v6750_v39  ;;  %v1276_v37 = vmul.f32 %v6106_v46, %v6750_v39  ;;  %v1270_v47 = vmul.f32 %v6658_v19, %v6750_v39  ;;  %v1264_v57 = vmul.f32 %v6676_v59, %v6750_v39 }
 0x1d9   : > { %2419 = vmatpush.bf16.msrb.mxu1 %v5186_v52  ;;  %v6769_v5 = vpack.c.bf16 %v1256_v58, %v1256_v58  ;;  %v1263_v52 = vmul.f32 %v6673_v22, %v6746_v61  ;;  %v1257_v46 = vmul.f32 %v6722_v54, %v6746_v61 }
 0x1da   : > { %v1290_v56 = vpack.c.bf16 %v1273_v35, %v1272_v16  ;;  %v1292_v4 = vpack.c.bf16 %v1276_v37, %v1275_v10  ;;  %v1288_v32 = vpack.c.bf16 %v1270_v47, %v1269_v2  ;;  %v6819_v10 = vpack.c.bf16 %v1563_v29, %v1563_v29 }
 0x1db   : > { %8565 = vst [vmem:[#allocation6_spill] sm:$0xff] %v6769_v5  ;;  %v1258_v47 = vmul.f32 %v6725_v1, %v6750_v39  ;;  %v1574_v29 = vmul.f32 %v6668_v11, %v6796_v14 }
 0x1dc   : > { %8568 = vst [vmem:[#allocation9_spill] sm:$0xff] %v6819_v10 }
 0x1dd   : > { %1144 = vrot.lane.b32.xlu0 %v1110_v28, %s6119_s10  ;;  %v1284_v28 = vpack.c.bf16 %v1264_v57, %v1263_v52 }
 0x1de   : > { %1461 = vrot.lane.b32.xlu1 %v8540_v26, %s6123_s14  ;;  %1142 = vrot.lane.b32.xlu2 %v6621_v51, %s6119_s10 }
 0x1e5   : > { %1449 = vrot.lane.b32.xlu0 %v8540_v26, %s6123_s14 }
 0x1e6   : > { %1146 = vrot.lane.b32.xlu1 %v6621_v51, %s6119_s10  ;;  %1447 = vrot.lane.b32.xlu2 %v1035_v27, %s6123_s14  ;;  %v1267_v27 = vmul.f32 %v6668_v11, %v6750_v39 }
 0x1e8   : > { %v1286_v20 = vpack.c.bf16 %v1267_v27, %v1266_v62 }
 0x1ed   : > { %1334 = vrot.lane.b32.xlu0 %v1290_v56, %s6118_s9 }
 0x1ee   : > { %1451 = vrot.lane.b32.xlu1 %v1036_v15, %s6123_s14  ;;  %1453 = vrot.lane.b32.xlu2 %v8540_v26, %s6123_s14  ;;  %v1261_v15 = vmul.f32 %v6685_v23, %v6750_v39 }
 0x1f0   : > { %v1282_v9 = vpack.c.bf16 %v1261_v15, %v1260_v31  ;;  %v1280_v31 = vpack.c.bf16 %v1258_v47, %v1257_v46  ;;  %v6125_v46 = vmov 0  }
 0x1f1   : > { %6089 = vset.pattern.permute.xlu0 %v6125_v46  ;;  %6088 = vset.pattern.permute.xlu2 %v6125_v46 }
 0x1f2   : > { %6090 = vset.pattern.permute.xlu1 %v6125_v46 }
 0x1f5   : > { %1340 = vrot.lane.b32.xlu0 %v6769_v5, %s6118_s9 }
 0x1f6   : > { %1336 = vrot.lane.b32.xlu1 %v6769_v5, %s6118_s9  ;;  %1338 = vrot.lane.b32.xlu2 %v1292_v4, %s6118_s9  ;;  %v1599_v4 = vpack.c.bf16 %v1583_v40, %v1582_v24 }
 0x1f8   : > { %v1165_v33 = vpop.permute.xlu2 %1164 }
 0x1f9   : > { %v1184_v42 = vrot.slane %v1165_v33, 4 }
 0x1fd   : > { %1330 = vrot.lane.b32.xlu0 %v1288_v32, %s6118_s9  ;;  %v1255_v32 = vmul.f32 %v6613_v45, %v6750_v39 }
 0x1fe   : > { %1328 = vrot.lane.b32.xlu2 %v6769_v5, %s6118_s9  ;;  %1326 = vrot.lane.b32.xlu1 %v1286_v20, %s6118_s9 }
 0x200   : > { %v1171_v63 = vpop.permute.xlu2 %1170 }
 0x201   : > { %v1187_v38 = vrot.slane %v1171_v63, 4 }
 0x205   : > { %1320 = vrot.lane.b32.xlu0 %v6769_v5, %s6118_s9 }
 0x206   : > { %1332 = vrot.lane.b32.xlu1 %v6769_v5, %s6118_s9  ;;  %1318 = vrot.lane.b32.xlu2 %v1282_v9, %s6118_s9 }
 0x208   : > { %v1476_v18 = vpop.permute.xlu2 %1475 }
 0x209   : > { %v1493_v13 = vrot.slane %v1476_v18, 4 }
 0x20d   : > { %1641 = vrot.lane.b32.xlu0 %v1597_v25, %s6117_s8 }
 0x20e   : > { %1322 = vrot.lane.b32.xlu1 %v1284_v28, %s6118_s9  ;;  %1324 = vrot.lane.b32.xlu2 %v6769_v5, %s6118_s9  ;;  %v1573_v28 = vmul.f32 %v6663_v8, %v6788_v50 }
 0x20f   : > { %v1167_v16 = vpop.permute.xlu0 %1166 }
 0x210   : > { %v1185_v35 = vrot.slane %v1167_v16, 4  ;;  %v6815_v56 = vpop.permute.xlu1 %1140  ;;  %v6817_v58 = vpop.permute.xlu2 %1158 }
 0x212   : > { %v1201_v37 = vsel %vm506_vm4, %v1184_v42, %v1185_v35 }
 0x213   : > { %v1202_v2 = vsel %vm877_vm8, %v1165_v33, %v1201_v37  ;;  %v1254_v33 = vmul.f32 %v6711_v55, %v6746_v61  ;;  %v1593_v37 = vpack.c.bf16 %v1574_v29, %v1573_v28 }
 0x214   : > { %1219 = vst [vmem:[#allocation3 + $0x170] sm:$0xff] %v1202_v2 }
 0x215   : > { %1647 = vrot.lane.b32.xlu0 %v6819_v10, %s6117_s8  ;;  %v1278_v9 = vpack.c.bf16 %v1255_v32, %v1254_v33  ;;  %v1576_v33 = vmul.f32 %v6653_v0, %v6788_v50  ;;  %v1577_v32 = vmul.f32 %v6658_v19, %v6796_v14 }
 0x216   : > { %1643 = vrot.lane.b32.xlu1 %v6819_v10, %s6117_s8  ;;  %1645 = vrot.lane.b32.xlu2 %v1599_v4, %s6117_s8 }
 0x217   : > { %v1472_v21 = vpop.permute.xlu0 %1471 }
 0x218   : > { %v1169_v62 = vpop.permute.xlu1 %1168  ;;  %v6832_v27 = vpop.permute.xlu2 %1463  ;;  %v1491_v17 = vrot.slane %v1472_v21, 4 }
 0x219   : > { %v1186_v20 = vrot.slane %v1169_v62, 4 }
 0x21b   : > { %v1203_v43 = vsel %vm506_vm4, %v1186_v20, %v1187_v38  ;;  %v5365_v4 = vld [vmem:[#allocation3 + $0x170] sm:$0xf]  ;;  %v1181_v38 = vrot.slane %v6817_v58, 4 }
 0x21c   : > { %v1204_v15 = vsel %vm877_vm8, %v1169_v62, %v1203_v43 }
 0x21d   : > { %1220 = vst [vmem:[#allocation3 + $0x178] sm:$0xff] %v1204_v15  ;;  %1314 = vrot.lane.b32.xlu0 %v1280_v31, %s6118_s9  ;;  %v1595_v15 = vpack.c.bf16 %v1577_v32, %v1576_v33 }
 0x21e   : > { %1310 = vrot.lane.b32.xlu1 %v1278_v9, %s6118_s9  ;;  %1312 = vrot.lane.b32.xlu2 %v6769_v5, %s6118_s9 }
 0x21f   : > { %v1478_v52 = vpop.permute.xlu0 %1477 }
 0x220   : > { %v1494_v63 = vrot.slane %v1478_v52, 4  ;;  %v1474_v57 = vpop.permute.xlu1 %1473  ;;  %v6844_v25 = vpop.permute.xlu2 %1469 }
 0x221   : > { %v1492_v24 = vrot.slane %v1474_v57, 4  ;;  %v1571_v57 = vmul.f32 %v6676_v59, %v6796_v14 }
 0x222   : > { %v1510_v40 = vsel %vm506_vm4, %v1493_v13, %v1494_v63  ;;  %v1487_v13 = vrot.slane %v6832_v27, 4  ;;  %v1570_v63 = vmul.f32 %v6673_v22, %v6788_v50  ;;  %v1490_v22 = vrot.slane %v6844_v25, 4 }
 0x223   : > { %v1511_v16 = vsel %vm1496_vm12, %v1476_v18, %v1510_v40  ;;  %v1508_v42 = vsel %vm506_vm4, %v1491_v17, %v1492_v24  ;;  %v1567_v18 = vmul.f32 %v6688_v36, %v6788_v50 }
 0x224   : > { %1527 = vst [vmem:[#allocation3 + $0x1f8] sm:$0xff] %v1511_v16  ;;  %v1509_v35 = vsel %vm1496_vm12, %v1472_v21, %v1508_v42  ;;  %v5922_v2 = vld [vmem:[#allocation3 + $0x174] sm:$0xf0]  ;;  %v1568_v21 = vmul.f32 %v6685_v23, %v6796_v14 }
 0x225   : > { %1526 = vst [vmem:[#allocation3 + $0x1f0] sm:$0xff] %v1509_v35  ;;  %1635 = vrot.lane.b32.xlu0 %v6819_v10, %s6117_s8  ;;  %v5366_v8 = vor.u32 %v5922_v2, %v5365_v4  ;;  %v1591_v35 = vpack.c.bf16 %v1571_v57, %v1570_v63 }
 0x226   : > { %1316 = vrot.lane.b32.xlu1 %v6769_v5, %s6118_s9  ;;  %1633 = vrot.lane.b32.xlu2 %v1593_v37, %s6117_s8  ;;  %v1589_v43 = vpack.c.bf16 %v1568_v21, %v1567_v18  ;;  %v1565_v37 = vmul.f32 %v6725_v1, %v6796_v14  ;;  %v1172_v18 = vrot.slane %v6815_v56, 4 }
 0x227   : > { %2325 = vmatpush.bf16.msra.mxu2 %v5366_v8  ;;  %v1161_v11 = vpop.permute.xlu0 %1160  ;;  %v1561_v8 = vmul.f32 %v6711_v55, %v6788_v50 }
 0x228   : > { %v1157_v47 = vpop.permute.xlu1 %1156  ;;  %v6863_v62 = vpop.permute.xlu2 %1152  ;;  %v1182_v28 = vrot.slane %v1161_v11, 4 }
 0x229   : > { %v1180_v20 = vrot.slane %v1157_v47, 4 }
 0x22b   : > { %v1197_v36 = vsel %vm506_vm4, %v1180_v20, %v1181_v38  ;;  %v5938_v23 = vld [vmem:[#allocation3 + $0x1f4] sm:$0xf0] }
 0x22c   : > { %v1198_v31 = vsel %vm877_vm8, %v1157_v47, %v1197_v36  ;;  %v5429_v9 = vld [vmem:[#allocation3 + $0x1f0] sm:$0xf]  ;;  %v1178_v36 = vrot.slane %v6863_v62, 4 }
 0x22d   : > { %1217 = vst [vmem:[#allocation3 + $0x160] sm:$0xff] %v1198_v31  ;;  %1625 = vrot.lane.b32.xlu0 %v1589_v43, %s6117_s8  ;;  %v5430_v0 = vor.u32 %v5938_v23, %v5429_v9 }
 0x22e   : > { %1637 = vrot.lane.b32.xlu1 %v1595_v15, %s6117_s8  ;;  %1639 = vrot.lane.b32.xlu2 %v6819_v10, %s6117_s8 }
 0x22f   : > { %2354 = vmatpush.bf16.msra.mxu3 %v5430_v0  ;;  %v1466_v19 = vpop.permute.xlu0 %1465  ;;  %v2558_v0 = vld [vmem:[%s8534_s2 + $0x8] sm:$0xff] }
 0x230   : > { %v1488_v58 = vrot.slane %v1466_v19, 4  ;;  %v1163_v17 = vpop.permute.xlu1 %1162  ;;  %v6877_v52 = vpop.permute.xlu2 %1457 }
 0x231   : > { %v1183_v29 = vrot.slane %v1163_v17, 4 }
 0x232   : > { %v1504_v24 = vsel %vm506_vm4, %v1487_v13, %v1488_v58  ;;  %v2557_v58 = vld [vmem:[%s8534_s2] sm:$0xff] }
 0x233   : > { %v1505_v40 = vsel %vm1496_vm12, %v6832_v27, %v1504_v24  ;;  %v1199_v16 = vsel %vm506_vm4, %v1182_v28, %v1183_v29  ;;  %v1564_v27 = vmul.f32 %v6722_v54, %v6788_v50 }
 0x234   : > { %1524 = vst [vmem:[#allocation3 + $0x1e0] sm:$0xff] %v1505_v40  ;;  %v1200_v42 = vsel %vm877_vm8, %v1161_v11, %v1199_v16  ;;  %v1562_v11 = vmul.f32 %v6613_v45, %v6796_v14  ;;  %v5357_v38 = vld [vmem:[#allocation3 + $0x160] sm:$0xf] }
 0x235   : > { %1218 = vst [vmem:[#allocation3 + $0x168] sm:$0xff] %v1200_v42  ;;  %1631 = vrot.lane.b32.xlu0 %v6819_v10, %s6117_s8  ;;  %v1587_v54 = vpack.c.bf16 %v1565_v37, %v1564_v27  ;;  %v2563_v42 = vld [vmem:[%s8534_s2 + $0x30] sm:$0xff] }
 0x236   : > { %1627 = vrot.lane.b32.xlu1 %v6819_v10, %s6117_s8  ;;  %1629 = vrot.lane.b32.xlu2 %v1591_v35, %s6117_s8  ;;  %v1585_v32 = vpack.c.bf16 %v1562_v11, %v1561_v8 }
 0x237   : > { %v1149_v59 = vpop.permute.xlu0 %1148 }
 0x238   : > { %v1468_v4 = vpop.permute.xlu1 %1467  ;;  %v1143_v2 = vpop.permute.xlu2 %1142  ;;  %v1176_v31 = vrot.slane %v1149_v59, 4 }
 0x239   : > { %v1489_v21 = vrot.slane %v1468_v4, 4  ;;  %v1173_v46 = vrot.slane %v1143_v2, 4 }
 0x23b   : > { %v1506_v25 = vsel %vm506_vm4, %v1489_v21, %v1490_v22  ;;  %v1188_v47 = vsel %vm506_vm4, %v1172_v18, %v1173_v46  ;;  %v5421_v63 = vld [vmem:[#allocation3 + $0x1e0] sm:$0xf]  ;;  %v2560_v22 = vld [vmem:[%s8534_s2 + $0x18] sm:$0xff]  ;;  %v2622_v21 = vld [vmem:[%s8535_s3 + $0x8] sm:$0xff] }
 0x23c   : > { %v1507_v33 = vsel %vm1496_vm12, %v1468_v4, %v1506_v25  ;;  %v1190_v1 = vsel %vm877_vm8, %v6815_v56, %v1188_v47  ;;  %v5920_v55 = vld [vmem:[#allocation3 + $0x164] sm:$0xf0]  ;;  %v2561_v47 = vld [vmem:[%s8534_s2 + $0x20] sm:$0xff] }
 0x23d   : > { %1525 = vst [vmem:[#allocation3 + $0x1e8] sm:$0xff] %v1507_v33  ;;  %1621 = vrot.lane.b32.xlu0 %v1587_v54, %s6117_s8  ;;  %v5358_v45 = vor.u32 %v5920_v55, %v5357_v38  ;;  %v2562_v25 = vld [vmem:[%s8534_s2 + $0x28] sm:$0xff] }
 0x23e   : > { %1213 = vst [vmem:[#allocation3 + $0x140] sm:$0xff] %v1190_v1  ;;  %1619 = vrot.lane.b32.xlu2 %v6819_v10, %s6117_s8  ;;  %1617 = vrot.lane.b32.xlu1 %v1585_v32, %s6117_s8 }
 0x23f   : > { %2326 = vmatpush.bf16.msra.mxu2 %v5358_v45  ;;  %v1155_v20 = vpop.permute.xlu0 %1154 }
 0x240   : > { %v1179_v43 = vrot.slane %v1155_v20, 4  ;;  %v1151_v23 = vpop.permute.xlu1 %1150  ;;  %v1448_v56 = vpop.permute.xlu2 %1447 }
 0x241   : > { %v1177_v15 = vrot.slane %v1151_v23, 4  ;;  %v1479_v1 = vrot.slane %v1448_v56, 4 }
 0x242   : > { %v1195_v9 = vsel %vm506_vm4, %v1178_v36, %v1179_v43  ;;  %v2625_v43 = vld [vmem:[%s8535_s3 + $0x20] sm:$0xff] }
 0x243   : > { %v1196_v13 = vsel %vm877_vm8, %v6863_v62, %v1195_v9  ;;  %v1193_v19 = vsel %vm506_vm4, %v1176_v31, %v1177_v15  ;;  %v1484_v62 = vrot.slane %v6877_v52, 4  ;;  %v2621_v15 = vld [vmem:[%s8535_s3] sm:$0xff]  ;;  %v2564_v9 = vld [vmem:[%s8534_s2 + $0x38] sm:$0xff] }
 0x244   : > { %1216 = vst [vmem:[#allocation3 + $0x158] sm:$0xff] %v1196_v13  ;;  %v1194_v17 = vsel %vm877_vm8, %v1149_v59, %v1193_v19  ;;  %v5936_v57 = vld [vmem:[#allocation3 + $0x1e4] sm:$0xf0]  ;;  %v2559_v59 = vld [vmem:[%s8534_s2 + $0x10] sm:$0xff] }
 0x245   : > { %1215 = vst [vmem:[#allocation3 + $0x150] sm:$0xff] %v1194_v17  ;;  %2572 = vperm.xlu0 %6089, %v2558_v0   ;;  %v5422_v28 = vor.u32 %v5936_v57, %v5421_v63 }
 0x246   : > { %2567 = vperm.xlu2 %6088, %v2557_v58   ;;  %1623 = vrot.lane.b32.xlu1 %v6819_v10, %s6117_s8 }
 0x247   : > { %2355 = vmatpush.bf16.msra.mxu3 %v5422_v28  ;;  %v1460_v29 = vpop.permute.xlu0 %1459 }
 0x248   : > { %v1456_v24 = vpop.permute.xlu1 %1455  ;;  %v1454_v16 = vpop.permute.xlu2 %1453  ;;  %v1485_v2 = vrot.slane %v1460_v29, 4 }
 0x249   : > { %v1483_v40 = vrot.slane %v1456_v24, 4 }
 0x24b   : > { %v1500_v35 = vsel %vm506_vm4, %v1483_v40, %v1484_v62  ;;  %v5918_v52 = vld [vmem:[#allocation3 + $0x154] sm:$0xf0]  ;;  %v2623_v40 = vld [vmem:[%s8535_s3 + $0x10] sm:$0xff] }
 0x24c   : > { %v1501_v27 = vsel %vm1496_vm12, %v1456_v24, %v1500_v35  ;;  %v5349_v37 = vld [vmem:[#allocation3 + $0x150] sm:$0xf]  ;;  %v2628_v62 = vld [vmem:[%s8535_s3 + $0x38] sm:$0xff] }
 0x24d   : > { %1522 = vst [vmem:[#allocation3 + $0x1d0] sm:$0xff] %v1501_v27  ;;  %2597 = vperm.xlu0 %6089, %v2563_v42   ;;  %v5350_v4 = vor.u32 %v5918_v52, %v5349_v37  ;;  %v2624_v24 = vld [vmem:[%s8535_s3 + $0x18] sm:$0xff]  ;;  %v5341_v42 = vld [vmem:[#allocation3 + $0x140] sm:$0xf] }
 0x24e   : > { %2582 = vperm.xlu2 %6088, %v2560_v22   ;;  %2577 = vperm.xlu1 %6090, %v2559_v59   ;;  %v5333_v22 = vld [vmem:[#allocation3 + $0x130] sm:$0xf]  ;;  %v5914_v59 = vld [vmem:[#allocation3 + $0x134] sm:$0xf0] }
 0x24f   : > { %2327 = vmatpush.bf16.msra.mxu2 %v5350_v4  ;;  %v1145_v8 = vpop.permute.xlu0 %1144  ;;  %v5334_v4 = vor.u32 %v5914_v59, %v5333_v22  ;;  %v5109_v22 = vld [vmem:[%s8533_s1 + $0x8] sm:$0xf]  ;;  %v5858_v59 = vld [vmem:[%s8533_s1 + $0x18] sm:$0xf0] }
 0x250   : > { %v1462_v11 = vpop.permute.xlu1 %1461  ;;  %v6949_v33 = vpop.permute.xlu2 %1338  ;;  %v1174_v45 = vrot.slane %v1145_v8, 4 }
 0x251   : > { %v1486_v18 = vrot.slane %v1462_v11, 4  ;;  %v1356_v11 = vrot.slane %v6949_v33, 4 }
 0x253   : > { %v1502_v46 = vsel %vm506_vm4, %v1485_v2, %v1486_v18  ;;  %v5325_v2 = vld [vmem:[#allocation3 + $0x120] sm:$0xf] }
 0x254   : > { %v1503_v54 = vsel %vm1496_vm12, %v1460_v29, %v1502_v46  ;;  %v5413_v13 = vld [vmem:[#allocation3 + $0x1d0] sm:$0xf] }
 0x255   : > { %1523 = vst [vmem:[#allocation3 + $0x1d8] sm:$0xff] %v1503_v54  ;;  %2636 = vperm.xlu0 %6089, %v2622_v21  }
 0x256   : > { %2592 = vperm.xlu2 %6088, %v2562_v25   ;;  %2587 = vperm.xlu1 %6090, %v2561_v47   ;;  %v5101_v25 = vld [vmem:[%s8533_s1] sm:$0xf]  ;;  %v5857_v47 = vld [vmem:[%s8533_s1 + $0x10] sm:$0xf0] }
 0x257   : > { %v1450_v32 = vpop.permute.xlu0 %1449 }
 0x258   : > { %v1480_v38 = vrot.slane %v1450_v32, 4  ;;  %v1147_v55 = vpop.permute.xlu1 %1146  ;;  %v6964_v17 = vpop.permute.xlu2 %1328  ;;  %v5855_v32 = vld [vmem:[%s8533_s1 + $0x4] sm:$0xf] }
 0x259   : > { %v1175_v20 = vrot.slane %v1147_v55, 4 }
 0x25a   : > { %v1495_v36 = vsel %vm506_vm4, %v1479_v1, %v1480_v38  ;;  %v6986_v1 = vor.u32 %v5857_v47, %v5101_v25  ;;  %v5103_v38 = vld [vmem:[%s8533_s1 + $0x14] sm:$0xf0] }
 0x25b   : > { %v1497_v23 = vsel %vm1496_vm12, %v1448_v56, %v1495_v36  ;;  %v1191_v31 = vsel %vm506_vm4, %v1174_v45, %v1175_v20  ;;  %v1482_v56 = vrot.slane %v1454_v16, 4  ;;  %v2627_v45 = vld [vmem:[%s8535_s3 + $0x30] sm:$0xff]  ;;  %v6998_v20 = vor.u32 %v5855_v32, %v5103_v38  ;;  %v5862_v32 = vld [vmem:[%s8533_s1 + $0x38] sm:$0xf0] }
 0x25c   : > { %1520 = vst [vmem:[#allocation3 + $0x1c0] sm:$0xff] %v1497_v23  ;;  %v1192_v0 = vsel %vm877_vm8, %v1145_v8, %v1191_v31  ;;  %v5934_v19 = vld [vmem:[#allocation3 + $0x1d4] sm:$0xf0]  ;;  %v5912_v8 = vld [vmem:[#allocation3 + $0x124] sm:$0xf0]  ;;  %2275 = vmatmul.bf16.vlgmr.msra.gmra.mxu0 %v6986_v1 }
 0x25d   : > { %1214 = vst [vmem:[#allocation3 + $0x148] sm:$0xff] %v1192_v0  ;;  %2651 = vperm.xlu0 %6089, %v2625_v43   ;;  %v5414_v58 = vor.u32 %v5934_v19, %v5413_v13  ;;  %v2626_v23 = vld [vmem:[%s8535_s3 + $0x28] sm:$0xff]  ;;  %v5326_v31 = vor.u32 %v5912_v8, %v5325_v2  ;;  %2304 = vmatmul.bf16.vlgmr.msra.gmra.mxu1 %v6998_v20 }
 0x25e   : > { %2631 = vperm.xlu2 %6088, %v2621_v15   ;;  %2602 = vperm.xlu1 %6090, %v2564_v9   ;;  %v5317_v15 = vld [vmem:[#allocation3 + $0x110] sm:$0xf]  ;;  %v5910_v9 = vld [vmem:[#allocation3 + $0x114] sm:$0xf0]  ;;  %v7028_v2 = vor.u32 %v5858_v59, %v5109_v22  ;;  %v5863_v22 = vld [vmem:[%s8533_s1 + $0x40] sm:$0xf0] }
 0x25f   : > { %2356 = vmatpush.bf16.msra.mxu3 %v5414_v58  ;;  %v1335_v63 = vpop.permute.xlu0 %1334 }
 0x260   : > { %v1452_v57 = vpop.permute.xlu1 %1451  ;;  %v1354_v27 = vrot.slane %v1335_v63, 4  ;;  %v6978_v18 = vpop.permute.xlu2 %1318 }
 0x261   : > { %v1481_v28 = vrot.slane %v1452_v57, 4 }
 0x263   : > { %v1498_v29 = vsel %vm506_vm4, %v1481_v28, %v1482_v56  ;;  %v5405_v13 = vld [vmem:[#allocation3 + $0x1c0] sm:$0xf]  ;;  %v5318_v56 = vor.u32 %v5910_v9, %v5317_v15 }
 0x264   : > { %v1499_v16 = vsel %vm1496_vm12, %v1452_v57, %v1498_v29  ;;  %v5916_v35 = vld [vmem:[#allocation3 + $0x144] sm:$0xf0]  ;;  %v5309_v28 = vld [vmem:[#allocation3 + $0x100] sm:$0xf] }
 0x265   : > { %1521 = vst [vmem:[#allocation3 + $0x1c8] sm:$0xff] %v1499_v16  ;;  %2666 = vperm.xlu0 %6089, %v2628_v62   ;;  %v5342_v52 = vor.u32 %v5916_v35, %v5341_v42  ;;  %v5908_v62 = vld [vmem:[#allocation3 + $0x104] sm:$0xf0] }
 0x266   : > { %2646 = vperm.xlu2 %6088, %v2624_v24   ;;  %2641 = vperm.xlu1 %6090, %v2623_v40   ;;  %v5303_v40 = vld [vmem:[#allocation3 + $0xf8] sm:$0xf0]  ;;  %v5310_v16 = vor.u32 %v5908_v62, %v5309_v28  ;;  %v5279_v28 = vld [vmem:[#allocation3 + $0xc8] sm:$0xf0] }
 0x267   : > { %2328 = vmatpush.bf16.msra.mxu2 %v5342_v52  ;;  %v1341_v37 = vpop.permute.xlu0 %1340 }
 0x268   : > { %v1357_v21 = vrot.slane %v1341_v37, 4  ;;  %v1337_v46 = vpop.permute.xlu1 %1336  ;;  %v7012_v24 = vpop.permute.xlu2 %1324  ;;  %v5905_v37 = vld [vmem:[#allocation3 + $0xf4] sm:$0xf] }
 0x269   : > { %v1355_v54 = vrot.slane %v1337_v46, 4  ;;  %v1346_v46 = vrot.slane %v6978_v18, 4 }
 0x26a   : > { %v1373_v55 = vsel %vm506_vm4, %v1356_v11, %v1357_v21  ;;  %v5903_v11 = vld [vmem:[#allocation3 + $0xe4] sm:$0xf]  ;;  %v5295_v21 = vld [vmem:[#allocation3 + $0xe8] sm:$0xf0] }
 0x26b   : > { %v1374_v36 = vsel %vm707_vm7, %v6949_v33, %v1373_v55  ;;  %v1371_v43 = vsel %vm506_vm4, %v1354_v27, %v1355_v54  ;;  %2329 = vmatpush.bf16.msra.mxu2 %v5334_v4  ;;  %v5306_v4 = vor.u32 %v5905_v37, %v5303_v40  ;;  %v5121_v54 = vld [vmem:[%s8533_s1 + $0x28] sm:$0xf] }
 0x26c   : > { %1390 = vst [vmem:[#allocation3 + $0x1b8] sm:$0xff] %v1374_v36  ;;  %v1372_v0 = vsel %vm707_vm7, %v1335_v63, %v1371_v43  ;;  %v5932_v19 = vld [vmem:[#allocation3 + $0x1c4] sm:$0xf0]  ;;  %v1351_v63 = vrot.slane %v6964_v17, 4  ;;  %v5860_v36 = vld [vmem:[%s8533_s1 + $0x2c] sm:$0xf] }
 0x26d   : > { %1389 = vst [vmem:[#allocation3 + $0x1b0] sm:$0xff] %v1372_v0  ;;  %3487 = vrot.lane.b32.xlu0 %v6621_v51, %s6119_s10  ;;  %v5406_v33 = vor.u32 %v5932_v19, %v5405_v13  ;;  %v5123_v43 = vld [vmem:[%s8533_s1 + $0x3c] sm:$0xf0]  ;;  %v5287_v13 = vld [vmem:[#allocation3 + $0xd8] sm:$0xf0] }
 0x26e   : > { %2661 = vperm.xlu2 %6088, %v2627_v45   ;;  %2656 = vperm.xlu1 %6090, %v2626_v23   ;;  %v7037_v45 = vor.u32 %v5862_v32, %v5121_v54  ;;  %v7047_v15 = vor.u32 %v5860_v36, %v5123_v43 }
 0x26f   : > { %2330 = vmatpush.bf16.msra.mxu2 %v5326_v31  ;;  %2357 = vmatpush.bf16.msra.mxu3 %v5406_v33  ;;  %v1331_v58 = vpop.permute.xlu0 %1330  ;;  %v5298_v31 = vor.u32 %v5903_v11, %v5295_v21 }
 0x270   : > { %v1327_v57 = vpop.permute.xlu1 %1326  ;;  %v1352_v38 = vrot.slane %v1331_v58, 4  ;;  %2280 = vmatmul.bf16.gmra.mxu0 %v7037_v45  ;;  %v1646_v19 = vpop.permute.xlu2 %1645  ;;  %2309 = vmatmul.bf16.gmra.mxu1 %v7047_v15 }
 0x271   : > { %v1350_v29 = vrot.slane %v1327_v57, 4 }
 0x273   : > { %v1367_v42 = vsel %vm506_vm4, %v1350_v29, %v1351_v63  ;;  %2331 = vmatpush.bf16.msra.mxu2 %v5318_v56  ;;  %v5930_v35 = vld [vmem:[#allocation3 + $0x1b4] sm:$0xf0]  ;;  %v5901_v56 = vld [vmem:[#allocation3 + $0xd4] sm:$0xf]  ;;  %v5899_v29 = vld [vmem:[#allocation3 + $0xc4] sm:$0xf] }
 0x274   : > { %v1368_v52 = vsel %vm707_vm7, %v1327_v57, %v1367_v42  ;;  %v5397_v17 = vld [vmem:[#allocation3 + $0x1b0] sm:$0xf]  ;;  %v5282_v40 = vor.u32 %v5899_v29, %v5279_v28  ;;  %v5893_v29 = vld [vmem:[#allocation3 + $0x94] sm:$0xf] }
 0x275   : > { %1387 = vst [vmem:[#allocation3 + $0x1a0] sm:$0xff] %v1368_v52  ;;  %v5398_v27 = vor.u32 %v5930_v35, %v5397_v17  ;;  %3787 = vrot.lane.b32.xlu0 %v8540_v26, %s6123_s14  ;;  %v5129_v35 = vld [vmem:[%s8533_s1 + $0x30] sm:$0xf] }
 0x276   : > { %3491 = vrot.lane.b32.xlu2 %v6621_v51, %s6119_s10  ;;  %3783 = vrot.lane.b32.xlu1 %v8540_v26, %s6123_s14 }
 0x277   : > { %2332 = vmatpush.bf16.msra.mxu2 %v5310_v16  ;;  %2358 = vmatpush.bf16.msra.mxu3 %v5398_v27  ;;  %v1321_v8 = vpop.permute.xlu0 %1320  ;;  %v5271_v16 = vld [vmem:[#allocation3 + $0xb8] sm:$0xf0]  ;;  %v5897_v27 = vld [vmem:[#allocation3 + $0xb4] sm:$0xf] }
 0x278   : > { %v1347_v25 = vrot.slane %v1321_v8, 4  ;;  %v1333_v47 = vpop.permute.xlu1 %1332  ;;  %v1313_v37 = vpop.permute.xlu2 %1312  ;;  %v7070_v8 = vor.u32 %v5863_v22, %v5129_v35 }
 0x279   : > { %v1353_v55 = vrot.slane %v1333_v47, 4  ;;  %v1663_v47 = vrot.slane %v1646_v19, 4 }
 0x27a   : > { %v1363_v23 = vsel %vm506_vm4, %v1346_v46, %v1347_v25  ;;  %2333 = vmatmul.bf16.vlgmr.msra.gmra.mxu2 %v7028_v2  ;;  %v5895_v46 = vld [vmem:[#allocation3 + $0xa4] sm:$0xf]  ;;  %v5263_v25 = vld [vmem:[#allocation3 + $0xa8] sm:$0xf0] }
 0x27b   : > { %2441 = vmatpush.bf16.msrb.mxu2 %v5306_v4  ;;  %v1364_v9 = vsel %vm707_vm7, %v6978_v18, %v1363_v23  ;;  %v1369_v0 = vsel %vm506_vm4, %v1352_v38, %v1353_v55  ;;  %v5290_v18 = vor.u32 %v5901_v56, %v5287_v13  ;;  %v5274_v4 = vor.u32 %v5897_v27, %v5271_v16  ;;  %v5141_v38 = vld [vmem:[%s8533_s1 + $0x50] sm:$0xf]  ;;  %v5867_v55 = vld [vmem:[%s8533_s1 + $0x60] sm:$0xf0]  ;;  %v5865_v23 = vld [vmem:[%s8533_s1 + $0x54] sm:$0xf] }
 0x27c   : > { %1385 = vst [vmem:[#allocation3 + $0x190] sm:$0xff] %v1364_v9  ;;  %v1370_v33 = vsel %vm707_vm7, %v1331_v58, %v1369_v0  ;;  %v1349_v58 = vrot.slane %v7012_v24, 4  ;;  %v5389_v52 = vld [vmem:[#allocation3 + $0x1a0] sm:$0xf]  ;;  %v7080_v43 = vor.u32 %v5867_v55, %v5141_v38  ;;  %v5266_v0 = vor.u32 %v5895_v46, %v5263_v25  ;;  %v5247_v16 = vld [vmem:[#allocation3 + $0x88] sm:$0xf0] }
 0x27d   : > { %1388 = vst [vmem:[#allocation3 + $0x1a8] sm:$0xff] %v1370_v33  ;;  %3775 = vrot.lane.b32.xlu0 %v8540_v26, %s6123_s14 }
 0x27e   : > { %3479 = vrot.lane.b32.xlu2 %v6621_v51, %s6119_s10  ;;  %3483 = vrot.lane.b32.xlu1 %v6621_v51, %s6119_s10 }
 0x27f   : > { %2442 = vmatpush.bf16.msrb.mxu2 %v5298_v31  ;;  %v1642_v57 = vpop.permute.xlu0 %1641  ;;  %v5143_v31 = vld [vmem:[%s8533_s1 + $0x64] sm:$0xf0] }
 0x280   : > { %v1323_v62 = vpop.permute.xlu1 %1322  ;;  %v1661_v11 = vrot.slane %v1642_v57, 4  ;;  %v7090_v13 = vor.u32 %v5865_v23, %v5143_v31  ;;  %2285 = vmatmul.bf16.gmra.mxu0 %v7080_v43  ;;  %v1634_v35 = vpop.permute.xlu2 %1633  ;;  %v5161_v23 = vld [vmem:[%s8533_s1 + $0x78] sm:$0xf]  ;;  %v5872_v31 = vld [vmem:[%s8533_s1 + $0x88] sm:$0xf0] }
 0x281   : > { %v1348_v63 = vrot.slane %v1323_v62, 4  ;;  %v1657_v38 = vrot.slane %v1634_v35, 4 }
 0x282   : > { %2314 = vmatmul.bf16.gmra.mxu1 %v7090_v13 }
 0x283   : > { %2443 = vmatpush.bf16.msrb.mxu2 %v5290_v18  ;;  %v1365_v42 = vsel %vm506_vm4, %v1348_v63, %v1349_v58  ;;  %v5255_v18 = vld [vmem:[#allocation3 + $0x98] sm:$0xf0] }
 0x284   : > { %v1366_v59 = vsel %vm707_vm7, %v1323_v62, %v1365_v42  ;;  %v5928_v17 = vld [vmem:[#allocation3 + $0x1a4] sm:$0xf0]  ;;  %v5381_v62 = vld [vmem:[#allocation3 + $0x190] sm:$0xf] }
 0x285   : > { %1386 = vst [vmem:[#allocation3 + $0x198] sm:$0xff] %v1366_v59  ;;  %v5390_v24 = vor.u32 %v5928_v17, %v5389_v52  ;;  %v1343_v59 = vrot.slane %v1313_v37, 4 }
 0x286   : > { %3779 = vrot.lane.b32.xlu2 %v8540_v26, %s6123_s14 }
 0x287   : > { %2444 = vmatpush.bf16.msrb.mxu2 %v5282_v40  ;;  %2359 = vmatpush.bf16.msra.mxu3 %v5390_v24  ;;  %v1648_v21 = vpop.permute.xlu0 %1647  ;;  %v5258_v40 = vor.u32 %v5893_v29, %v5255_v18  ;;  %v5163_v18 = vld [vmem:[%s8533_s1 + $0x8c] sm:$0xf0] }
 0x288   : > { %v1664_v54 = vrot.slane %v1648_v21, 4  ;;  %v1644_v32 = vpop.permute.xlu1 %1643 }
 0x289   : > { %v1662_v36 = vrot.slane %v1644_v32, 4 }
 0x28a   : > { %v1680_v9 = vsel %vm506_vm4, %v1663_v47, %v1664_v54  ;;  %2338 = vmatmul.bf16.gmra.mxu2 %v7070_v8 }
 0x28b   : > { %2445 = vmatpush.bf16.msrb.mxu2 %v5274_v4  ;;  %v1681_v33 = vsel %vm397_vm6, %v1646_v19, %v1680_v9  ;;  %v1678_v56 = vsel %vm506_vm4, %v1661_v11, %v1662_v36  ;;  %v5891_v19 = vld [vmem:[#allocation3 + $0x84] sm:$0xf]  ;;  %v5868_v11 = vld [vmem:[%s8533_s1 + $0x68] sm:$0xf0] }
 0x28c   : > { %1697 = vst [vmem:[#allocation3 + $0x238] sm:$0xff] %v1681_v33  ;;  %v1679_v28 = vsel %vm397_vm6, %v1642_v57, %v1678_v56  ;;  %v5926_v58 = vld [vmem:[#allocation3 + $0x194] sm:$0xf0]  ;;  %v5250_v17 = vor.u32 %v5891_v19, %v5247_v16  ;;  %v7113_v33 = vor.u32 %v5872_v31, %v5161_v23  ;;  %v5870_v56 = vld [vmem:[%s8533_s1 + $0x7c] sm:$0xf] }
 0x28d   : > { %1696 = vst [vmem:[#allocation3 + $0x230] sm:$0xff] %v1679_v28  ;;  %v5382_v63 = vor.u32 %v5926_v58, %v5381_v62  ;;  %v5149_v57 = vld [vmem:[%s8533_s1 + $0x58] sm:$0xf]  ;;  %v1640_v28 = vpop.permute.xlu2 %1639  ;;  %v7123_v58 = vor.u32 %v5870_v56, %v5163_v18  ;;  %v5919_v56 = vld [vmem:[#allocation3 + $0x164] sm:$0xf] }
 0x28e   : > { %v7105_v54 = vor.u32 %v5868_v11, %v5149_v57  ;;  %v5111_v57 = vld [vmem:[%s8533_s1 + $0x1c] sm:$0xf0] }
 0x28f   : > { %2446 = vmatpush.bf16.msrb.mxu2 %v5266_v0  ;;  %2360 = vmatpush.bf16.msra.mxu3 %v5382_v63  ;;  %v1315_v42 = vpop.permute.xlu0 %1314 }
 0x290   : > { %v1311_v22 = vpop.permute.xlu1 %1310  ;;  %v1344_v9 = vrot.slane %v1315_v42, 4  ;;  %2290 = vmatmul.bf16.gmra.mxu0 %v7113_v33 }
 0x291   : > { %v1342_v52 = vrot.slane %v1311_v22, 4 }
 0x292   : > { %2319 = vmatmul.bf16.gmra.mxu1 %v7123_v58 }
 0x293   : > { %2447 = vmatpush.bf16.msrb.mxu2 %v5258_v40  ;;  %v1358_v24 = vsel %vm506_vm4, %v1342_v52, %v1343_v59  ;;  %v5946_v27 = vld [vmem:[#allocation3 + $0x234] sm:$0xf0]  ;;  %v5463_v4 = vld [vmem:[#allocation3 + $0x238] sm:$0xf0] }
 0x294   : > { %v1360_v21 = vsel %vm707_vm7, %v1311_v22, %v1358_v24  ;;  %v5461_v46 = vld [vmem:[#allocation3 + $0x230] sm:$0xf]  ;;  %v5945_v25 = vld [vmem:[#allocation3 + $0x234] sm:$0xf]  ;;  %v1660_v22 = vrot.slane %v1640_v28, 4 }
 0x295   : > { %1383 = vst [vmem:[#allocation3 + $0x180] sm:$0xff] %v1360_v21  ;;  %v5462_v37 = vor.u32 %v5946_v27, %v5461_v46  ;;  %v5466_v47 = vor.u32 %v5945_v25, %v5463_v4  ;;  %v5367_v52 = vld [vmem:[#allocation3 + $0x178] sm:$0xf0]  ;;  %v5873_v24 = vld [vmem:[%s8533_s1 + $0x90] sm:$0xf0]  ;;  %v1630_v27 = vpop.permute.xlu2 %1629 }
 0x296   : > { %v5921_v25 = vld [vmem:[#allocation3 + $0x174] sm:$0xf] }
 0x297   : > { %2448 = vmatpush.bf16.msrb.mxu2 %v5250_v17  ;;  %2387 = vmatpush.bf16.msrb.mxu0 %v5462_v37  ;;  %v1636_v32 = vpop.permute.xlu0 %1635  ;;  %v5856_v17 = vld [vmem:[%s8533_s1 + $0xc] sm:$0xf]  ;;  %v5370_v37 = vor.u32 %v5921_v25, %v5367_v52 }
 0x298   : > { %2532 = vmatpush.bf16.msra.mxu1 %v5466_v47  ;;  %v1658_v55 = vrot.slane %v1636_v32, 4  ;;  %v1317_v36 = vpop.permute.xlu1 %1316  ;;  %v7144_v47 = vor.u32 %v5856_v17, %v5111_v57 }
 0x299   : > { %v1345_v0 = vrot.slane %v1317_v36, 4  ;;  %v1655_v36 = vrot.slane %v1630_v27, 4 }
 0x29a   : > { %v1674_v62 = vsel %vm506_vm4, %v1657_v38, %v1658_v55  ;;  %2343 = vmatmul.bf16.gmra.mxu2 %v7105_v54  ;;  %v5359_v55 = vld [vmem:[#allocation3 + $0x168] sm:$0xf0] }
 0x29b   : > { %v1675_v63 = vsel %vm397_vm6, %v1634_v35, %v1674_v62  ;;  %v1361_v29 = vsel %vm506_vm4, %v1344_v9, %v1345_v0  ;;  %v5362_v28 = vor.u32 %v5919_v56, %v5359_v55  ;;  %v5351_v62 = vld [vmem:[#allocation3 + $0x158] sm:$0xf0]  ;;  %v5131_v55 = vld [vmem:[%s8533_s1 + $0x44] sm:$0xf0] }
 0x29c   : > { %1694 = vst [vmem:[#allocation3 + $0x220] sm:$0xff] %v1675_v63  ;;  %v1362_v40 = vsel %vm707_vm7, %v1315_v42, %v1361_v29  ;;  %v5169_v42 = vld [vmem:[%s8533_s1 + $0x80] sm:$0xf] }
 0x29d   : > { %1384 = vst [vmem:[#allocation3 + $0x188] sm:$0xff] %v1362_v40  ;;  %v5373_v11 = vld [vmem:[#allocation3 + $0x180] sm:$0xf]  ;;  %v7146_v32 = vor.u32 %v5873_v24, %v5169_v42  ;;  %v1620_v42 = vpop.permute.xlu2 %1619 }
 0x29f   : > { %v1626_v19 = vpop.permute.xlu0 %1625 }
 0x2a0   : > { %v1638_v16 = vpop.permute.xlu1 %1637  ;;  %v1653_v9 = vrot.slane %v1626_v19, 4 }
 0x2a1   : > { %v1659_v59 = vrot.slane %v1638_v16, 4 }
 0x2a2   : > { %2420 = vmatmul.bf16.vlgmr.msrb.gmra.mxu1 %v6986_v1 }
 0x2a3   : > { %v1676_v35 = vsel %vm506_vm4, %v1659_v59, %v1660_v22  ;;  %v5453_v40 = vld [vmem:[#allocation3 + $0x220] sm:$0xf]  ;;  %v5917_v22 = vld [vmem:[#allocation3 + $0x154] sm:$0xf] }
 0x2a4   : > { %v1677_v4 = vsel %vm397_vm6, %v1638_v16, %v1676_v35  ;;  %v5924_v21 = vld [vmem:[#allocation3 + $0x184] sm:$0xf0]  ;;  %v5943_v16 = vld [vmem:[#allocation3 + $0x224] sm:$0xf]  ;;  %v5354_v24 = vor.u32 %v5917_v22, %v5351_v62 }
 0x2a5   : > { %1695 = vst [vmem:[#allocation3 + $0x228] sm:$0xff] %v1677_v4  ;;  %v5374_v46 = vor.u32 %v5924_v21, %v5373_v11  ;;  %v1650_v11 = vrot.slane %v1620_v42, 4  ;;  %v5319_v42 = vld [vmem:[#allocation3 + $0x118] sm:$0xf0] }
 0x2a7   : > { %2361 = vmatpush.bf16.msra.mxu3 %v5374_v46  ;;  %v1632_v38 = vpop.permute.xlu0 %1631  ;;  %v5915_v46 = vld [vmem:[#allocation3 + $0x144] sm:$0xf] }
 0x2a8   : > { %v1656_v23 = vrot.slane %v1632_v38, 4  ;;  %v1628_v31 = vpop.permute.xlu1 %1627 }
 0x2a9   : > { %v1654_v0 = vrot.slane %v1628_v31, 4 }
 0x2aa   : > { %v1672_v18 = vsel %vm506_vm4, %v1655_v36, %v1656_v23  ;;  %2362 = vmatmul.bf16.vlgmr.msra.gmra.mxu3 %v7144_v47  ;;  %2348 = vmatmul.bf16.gmra.mxu2 %v7146_v32 }
 0x2ab   : > { %2470 = vmatpush.bf16.msrb.mxu3 %v5370_v37  ;;  %v1673_v63 = vsel %vm397_vm6, %v1630_v27, %v1672_v18  ;;  %v1670_v29 = vsel %vm506_vm4, %v1653_v9, %v1654_v0  ;;  %v5343_v27 = vld [vmem:[#allocation3 + $0x148] sm:$0xf0] }
 0x2ac   : > { %1693 = vst [vmem:[#allocation3 + $0x218] sm:$0xff] %v1673_v63  ;;  %v1671_v59 = vsel %vm397_vm6, %v1626_v19, %v1670_v29  ;;  %v5944_v52 = vld [vmem:[#allocation3 + $0x224] sm:$0xf0]  ;;  %v5455_v17 = vld [vmem:[#allocation3 + $0x228] sm:$0xf0]  ;;  %v5346_v25 = vor.u32 %v5915_v46, %v5343_v27 }
 0x2ad   : > { %1692 = vst [vmem:[#allocation3 + $0x210] sm:$0xff] %v1671_v59  ;;  %v5454_v35 = vor.u32 %v5944_v52, %v5453_v40  ;;  %v5458_v57 = vor.u32 %v5943_v16, %v5455_v17  ;;  %v5861_v19 = vld [vmem:[%s8533_s1 + $0x34] sm:$0xf]  ;;  %v5335_v16 = vld [vmem:[#allocation3 + $0x138] sm:$0xf0] }
 0x2ae   : > { %v7163_v18 = vor.u32 %v5861_v19, %v5131_v55  ;;  %v5913_v29 = vld [vmem:[#allocation3 + $0x134] sm:$0xf]  ;;  %v5911_v52 = vld [vmem:[#allocation3 + $0x124] sm:$0xf]  ;;  %v5327_v17 = vld [vmem:[#allocation3 + $0x128] sm:$0xf0] }
 0x2af   : > { %2471 = vmatpush.bf16.msrb.mxu3 %v5362_v28  ;;  %2388 = vmatpush.bf16.msrb.mxu0 %v5454_v35  ;;  %v1622_v56 = vpop.permute.xlu0 %1621  ;;  %v5338_v59 = vor.u32 %v5913_v29, %v5335_v16  ;;  %v5330_v35 = vor.u32 %v5911_v52, %v5327_v17  ;;  %v5431_v27 = vld [vmem:[#allocation3 + $0x1f8] sm:$0xf0]  ;;  %v5933_v29 = vld [vmem:[#allocation3 + $0x1d4] sm:$0xf]  ;;  %v5407_v16 = vld [vmem:[#allocation3 + $0x1c8] sm:$0xf0] }
 0x2b0   : > { %2533 = vmatpush.bf16.msra.mxu1 %v5458_v57  ;;  %v1618_v4 = vpop.permute.xlu1 %1617  ;;  %v1651_v62 = vrot.slane %v1622_v56, 4  ;;  %v5909_v57 = vld [vmem:[#allocation3 + $0x114] sm:$0xf]  ;;  %v5399_v17 = vld [vmem:[#allocation3 + $0x1b8] sm:$0xf0] }
 0x2b1   : > { %v1649_v21 = vrot.slane %v1618_v4, 4  ;;  %v5929_v52 = vld [vmem:[#allocation3 + $0x1b4] sm:$0xf] }
 0x2b2   : > { %2425 = vmatmul.bf16.gmra.mxu1 %v7037_v45  ;;  %v5117_v45 = vld [vmem:[%s8533_s1 + $0x10] sm:$0xf] }
 0x2b3   : > { %2472 = vmatpush.bf16.msrb.mxu3 %v5354_v24  ;;  %v1665_v1 = vsel %vm506_vm4, %v1649_v21, %v1650_v11  ;;  %v5942_v37 = vld [vmem:[#allocation3 + $0x214] sm:$0xf0]  ;;  %v5447_v38 = vld [vmem:[#allocation3 + $0x218] sm:$0xf0]  ;;  %v5937_v24 = vld [vmem:[#allocation3 + $0x1f4] sm:$0xf]  ;;  %v5322_v11 = vor.u32 %v5909_v57, %v5319_v42  ;;  %v5402_v42 = vor.u32 %v5929_v52, %v5399_v17  ;;  %v7246_v17 = vpop.permute.xlu2 %2567 }
 0x2b4   : > { %v1667_v36 = vsel %vm397_vm6, %v1618_v4, %v1665_v1  ;;  %v5445_v23 = vld [vmem:[#allocation3 + $0x210] sm:$0xf]  ;;  %v5941_v31 = vld [vmem:[#allocation3 + $0x214] sm:$0xf]  ;;  %v5171_v57 = vld [vmem:[%s8533_s1 + $0x94] sm:$0xf0] }
 0x2b5   : > { %1690 = vst [vmem:[#allocation3 + $0x200] sm:$0xff] %v1667_v36  ;;  %v5446_v9 = vor.u32 %v5942_v37, %v5445_v23  ;;  %v5450_v0 = vor.u32 %v5941_v31, %v5447_v38  ;;  %v5151_v4 = vld [vmem:[%s8533_s1 + $0x6c] sm:$0xf0]  ;;  %v5907_v37 = vld [vmem:[#allocation3 + $0x104] sm:$0xf]  ;;  %v5434_v23 = vor.u32 %v5937_v24, %v5431_v27 }
 0x2b6   : > { %v5311_v36 = vld [vmem:[#allocation3 + $0x108] sm:$0xf0] }
 0x2b7   : > { %2473 = vmatpush.bf16.msrb.mxu3 %v5346_v25  ;;  %2389 = vmatpush.bf16.msrb.mxu0 %v5446_v9  ;;  %v5859_v25 = vld [vmem:[%s8533_s1 + $0x20] sm:$0xf0] }
 0x2b8   : > { %2534 = vmatpush.bf16.msra.mxu1 %v5450_v0  ;;  %v1624_v28 = vpop.permute.xlu1 %1623  ;;  %v5118_v9 = vor.u32 %v5859_v25, %v5117_v45  ;;  %v5423_v0 = vld [vmem:[#allocation3 + $0x1e8] sm:$0xf0] }
 0x2b9   : > { %v1652_v63 = vrot.slane %v1624_v28, 4  ;;  %v5935_v28 = vld [vmem:[#allocation3 + $0x1e4] sm:$0xf]  ;;  %v5375_v25 = vld [vmem:[#allocation3 + $0x188] sm:$0xf0] }
 0x2ba   : > { %2367 = vmatmul.bf16.gmra.mxu3 %v7163_v18  ;;  %2449 = vmatmul.bf16.vlgmr.msrb.gmra.mxu2 %v6998_v20  ;;  %v5866_v20 = vld [vmem:[%s8533_s1 + $0x5c] sm:$0xf] }
 0x2bb   : > { %v1668_v40 = vsel %vm506_vm4, %v1651_v62, %v1652_v63  ;;  %2474 = vmatpush.bf16.msrb.mxu3 %v5338_v59  ;;  %v7182_v31 = vor.u32 %v5866_v20, %v5151_v4  ;;  %v5426_v62 = vor.u32 %v5935_v28, %v5423_v0  ;;  %v5415_v63 = vld [vmem:[#allocation3 + $0x1d8] sm:$0xf0]  ;;  %v5391_v20 = vld [vmem:[#allocation3 + $0x1a8] sm:$0xf0]  ;;  %v5927_v4 = vld [vmem:[#allocation3 + $0x1a4] sm:$0xf] }
 0x2bc   : > { %v1669_v22 = vsel %vm397_vm6, %v1622_v56, %v1668_v40  ;;  %v5437_v21 = vld [vmem:[#allocation3 + $0x200] sm:$0xf]  ;;  %v5939_v46 = vld [vmem:[#allocation3 + $0x204] sm:$0xf]  ;;  %v5314_v56 = vor.u32 %v5907_v37, %v5311_v36  ;;  %v5418_v40 = vor.u32 %v5933_v29, %v5415_v63  ;;  %v5394_v45 = vor.u32 %v5927_v4, %v5391_v20  ;;  %v5177_v0 = vld [vmem:[%s8533_s1 + $0x88] sm:$0xf]  ;;  %v7257_v4 = vpop.permute.xlu0 %2572 }
 0x2bd   : > { %1691 = vst [vmem:[#allocation3 + $0x208] sm:$0xff] %v1669_v22  ;;  %v5931_v22 = vld [vmem:[#allocation3 + $0x1c4] sm:$0xf]  ;;  %v5157_v37 = vld [vmem:[%s8533_s1 + $0x60] sm:$0xf] }
 0x2be   : > { %v5410_v59 = vor.u32 %v5931_v22, %v5407_v16 }
 0x2bf   : > { %2475 = vmatpush.bf16.msrb.mxu3 %v5330_v35  ;;  %v5871_v35 = vld [vmem:[%s8533_s1 + $0x84] sm:$0xf] }
 0x2c0   : > { %v7200_v24 = vor.u32 %v5871_v35, %v5171_v57 }
 0x2c2   : > { %2430 = vmatmul.bf16.gmra.mxu1 %v7080_v43  ;;  %v5864_v43 = vld [vmem:[%s8533_s1 + $0x48] sm:$0xf0] }
 0x2c3   : > { %2476 = vmatpush.bf16.msrb.mxu3 %v5322_v11  ;;  %v5383_v11 = vld [vmem:[#allocation3 + $0x198] sm:$0xf0] }
 0x2c4   : > { %v5940_v19 = vld [vmem:[#allocation3 + $0x204] sm:$0xf0]  ;;  %v5439_v1 = vld [vmem:[#allocation3 + $0x208] sm:$0xf0] }
 0x2c5   : > { %v5438_v38 = vor.u32 %v5940_v19, %v5437_v21  ;;  %v5442_v55 = vor.u32 %v5939_v46, %v5439_v1  ;;  %v5925_v21 = vld [vmem:[#allocation3 + $0x194] sm:$0xf]  ;;  %v5923_v19 = vld [vmem:[#allocation3 + $0x184] sm:$0xf] }
 0x2c6   : > { %v5386_v46 = vor.u32 %v5925_v21, %v5383_v11  ;;  %v5378_v1 = vor.u32 %v5923_v19, %v5375_v25 }
 0x2c7   : > { %2390 = vmatpush.bf16.msrb.mxu0 %v5438_v38  ;;  %2535 = vmatpush.bf16.msra.mxu1 %v5442_v55  ;;  %v5869_v38 = vld [vmem:[%s8533_s1 + $0x70] sm:$0xf0] }
 0x2c8   : > { %2477 = vmatpush.bf16.msrb.mxu3 %v5314_v56  ;;  %v5158_v55 = vor.u32 %v5869_v38, %v5157_v37  ;;  %v5874_v56 = vld [vmem:[%s8533_s1 + $0x98] sm:$0xf0] }
 0x2c9   : > { %v5178_v28 = vor.u32 %v5874_v56, %v5177_v0  ;;  %v7269_v56 = vpop.permute.xlu0 %2597 }
 0x2ca   : > { %2372 = vmatmul.bf16.gmra.mxu3 %v7182_v31  ;;  %5467 = vmatmul.msk.bf16.vlgmr.msrb.gmra.mxu0 %vm2254_vm13, %v5118_v9 }
 0x2cb   : > { %2499 = vmatpush.bf16.msra.mxu0 %v5434_v23  ;;  %2454 = vmatmul.bf16.gmra.mxu2 %v7047_v15  ;;  %v5137_v15 = vld [vmem:[%s8533_s1 + $0x38] sm:$0xf] }
 0x2cc   : > { %v5138_v27 = vor.u32 %v5864_v43, %v5137_v15 }
 0x2cf   : > { %2500 = vmatpush.bf16.msra.mxu0 %v5426_v62 }
 0x2d2   : > { %2435 = vmatmul.bf16.gmra.mxu1 %v7113_v33 }
 0x2d3   : > { %2501 = vmatpush.bf16.msra.mxu0 %v5418_v40 }
 0x2d7   : > { %2502 = vmatpush.bf16.msra.mxu0 %v5410_v59 }
 0x2da   : > { %2377 = vmatmul.bf16.gmra.mxu3 %v7200_v24  ;;  %5468 = vmatmul.msk.bf16.gmra.mxu0 %vm2254_vm13, %v5138_v27  ;;  %v2305_v36 = vpop.f32.mrf.mxu1 }
 0x2db   : > { %2503 = vmatpush.bf16.msra.mxu0 %v5402_v42  ;;  %2459 = vmatmul.bf16.gmra.mxu2 %v7090_v13  ;;  %v2276_v13 = vpop.f32.mrf.mxu0  ;;  %v7250_v42 = vpop.permute.xlu2 %2582 }
 0x2df   : > { %2504 = vmatpush.bf16.msra.mxu0 %v5394_v45  ;;  %v2306_v45 = vadd.f32 %v2305_v36, %v2276_v13 }
 0x2e2   : > { %5471 = vmatmul.msk.bf16.vlgmr.msra.gmra.mxu1 %vm2254_vm13, %v5118_v9  ;;  %v2307_v23 = vpop.f32.mrf.mxu1 }
 0x2e3   : > { %2505 = vmatpush.bf16.msra.mxu0 %v5386_v46  ;;  %v2278_v33 = vpop.f32.mrf.mxu0  ;;  %v7263_v21 = vpop.permute.xlu2 %2592 }
 0x2e7   : > { %2506 = vmatpush.bf16.msra.mxu0 %v5378_v1 }
 0x2ea   : > { %5469 = vmatmul.msk.bf16.gmra.mxu0 %vm2254_vm13, %v5158_v55  ;;  %2478 = vmatmul.bf16.vlgmr.msrb.gmra.mxu3 %v7028_v2 }
 0x2eb   : > { %2464 = vmatmul.bf16.gmra.mxu2 %v7123_v58  ;;  %v7272_v13 = vpop.permute.xlu2 %2631 }
 0x2ed   : > { %v2281_v62 = vpop.f32.mrf.mxu0  ;;  %v2310_v63 = vpop.f32.mrf.mxu1 }
 0x2f2   : > { %5472 = vmatmul.msk.bf16.gmra.mxu1 %vm2254_vm13, %v5138_v27  ;;  %v7255_v27 = vpop.permute.xlu1 %2577 }
 0x2f5   : > { %v7225_v2 = vpop.f32.mrf.mxu0  ;;  %v7227_v58 = vpop.f32.mrf.mxu1 }
 0x2fa   : > { %5470 = vmatmul.msk.bf16.gmra.mxu0 %vm2254_vm13, %v5178_v28  ;;  %2483 = vmatmul.bf16.gmra.mxu3 %v7070_v8  ;;  %v7265_v37 = vpop.permute.xlu1 %2587 }
 0x2fd   : > { %v2286_v9 = vpop.f32.mrf.mxu0 }
 0x2ff   : > { %v2315_v29 = vpop.f32.mrf.mxu1 }
 0x300   : > { %v7231_v40 = vadd.f32 %v2315_v29, %v2286_v9 }
 0x302   : > { %5473 = vmatmul.msk.bf16.gmra.mxu1 %vm2254_vm13, %v5158_v55 }
 0x305   : > { %v7234_v16 = vpop.f32.mrf.mxu0 }
 0x307   : > { %v7236_v22 = vpop.f32.mrf.mxu1 }
 0x30a   : > { %2488 = vmatmul.bf16.gmra.mxu3 %v7105_v54  ;;  %2507 = vmatmul.bf16.vlgmr.msra.gmra.mxu0 %v7144_v47  ;;  %v2334_v54 = vpop.f32.mrf.mxu2 }
 0x30b   : > { %v2335_v25 = vadd.f32 %v2334_v54, %v2306_v45  ;;  %v2311_v45 = vadd.f32 %v2310_v63, %v2281_v62 }
 0x30d   : > { %v2291_v8 = vpop.f32.mrf.mxu0 }
 0x30f   : > { %v2320_v59 = vpop.f32.mrf.mxu1 }
 0x310   : > { %v7240_v52 = vadd.f32 %v2320_v59, %v2291_v8 }
 0x312   : > { %5474 = vmatmul.msk.bf16.gmra.mxu1 %vm2254_vm13, %v5178_v28  ;;  %v2336_v57 = vpop.f32.mrf.mxu2 }
 0x317   : > { %v7243_v47 = vpop.f32.mrf.mxu1 }
 0x31a   : > { %2493 = vmatmul.bf16.gmra.mxu3 %v7146_v32  ;;  %2512 = vmatmul.bf16.gmra.mxu0 %v7163_v18  ;;  %v2339_v32 = vpop.f32.mrf.mxu2 }
 0x31b   : > { %v2340_v62 = vadd.f32 %v2339_v32, %v2311_v45  ;;  %v2313_v32 = vadd.f32 %v7227_v58, %v7225_v2 }
 0x31f   : > { %v7248_v15 = vpop.f32.mrf.mxu1 }
 0x322   : > { %v2341_v46 = vpop.f32.mrf.mxu2 }
 0x327   : > { %v7252_v18 = vpop.f32.mrf.mxu1 }
 0x32a   : > { %2517 = vmatmul.bf16.gmra.mxu0 %v7182_v31  ;;  %v7259_v31 = vpop.f32.mrf.mxu0  ;;  %v2344_v9 = vpop.f32.mrf.mxu2 }
 0x32d   : > { %v2363_v35 = vpop.f32.mrf.mxu3 }
 0x32e   : > { %v2364_v1 = vadd.f32 %v2363_v35, %v2335_v25 }
 0x32f   : > { %v7261_v11 = vpop.f32.mrf.mxu1 }
 0x335   : > { %v2365_v43 = vpop.f32.mrf.mxu3 }
 0x337   : > { %v7267_v0 = vpop.f32.mrf.mxu1 }
 0x33a   : > { %2522 = vmatmul.bf16.gmra.mxu0 %v7200_v24  ;;  %v2308_v24 = vadd.f32 %v2307_v23, %v2278_v33  ;;  %v7277_v23 = vpop.permute.xlu1 %2602 }
 0x33c   : > { %v2337_v36 = vadd.f32 %v2336_v57, %v2308_v24 }
 0x33d   : > { %v2368_v20 = vpop.f32.mrf.mxu3 }
 0x33e   : > { %v2366_v59 = vadd.f32 %v2365_v43, %v2337_v36 }
 0x345   : > { %v2370_v19 = vpop.f32.mrf.mxu3 }
 0x347   : > { %v2392_v38 = vpop.f32.mrf.mxu0 }
 0x348   : > { %v2393_v55 = vadd.f32 %v2392_v38, %v2364_v1  ;;  %v7279_v1 = vpop.f32.mrf.mxu1 }
 0x34a   : > { %v2605_v28 = vmul.f32 %v7246_v17, %v2393_v55  ;;  %v7288_v55 = vpop.permute.xlu0 %2636 }
 0x34c   : > { %v2669_v29 = vadd.f32 %v7272_v13, %v2605_v28 }
 0x34d   : > { %v2373_v8 = vpop.f32.mrf.mxu3 }
 0x34e   : > { %v2685_v54 = vmul.f32 0.1, %v2669_v29 }
 0x34f   : > { %v2394_v35 = vpop.f32.mrf.mxu0 }
 0x350   : > { %v7275_v25 = vmax.f32 %v2669_v29, %v2685_v54  ;;  %v2395_v33 = vadd.f32 %v2394_v35, %v2366_v59  ;;  %v2346_v29 = vpop.f32.mrf.mxu2  ;;  %v2369_v59 = vadd.f32 %v2368_v20, %v2340_v62  ;;  %v7307_v62 = vpop.permute.xlu1 %2641 }
 0x352   : > { %v2607_v38 = vmul.f32 %v7257_v4, %v2395_v33  ;;  %v2917_v57 = vpack.c.bf16 %v7275_v25, %v8542_v7  ;;  %v3214_v24 = vmul.f32 %v7275_v25, %v6444_v48  ;;  %v2758_v43 = vmul.f32 %v7275_v25, %v6362_v44 }
 0x354   : > { %v2671_v63 = vadd.f32 %v7288_v55, %v2607_v38  ;;  %2949 = vrot.lane.b32.xlu2 %v2917_v57, %s6116_s30  ;;  %v3237_v28 = vpack.c.bf16 %v3214_v24, %v6449_v53  ;;  %v2781_v36 = vpack.c.bf16 %v2758_v43, %v6367_v49  ;;  %v3054_v57 = vmul.f32 %v7275_v25, %v6402_v12 }
 0x355   : > { %v2375_v35 = vpop.f32.mrf.mxu3 }
 0x356   : > { %v2687_v54 = vmul.f32 0.1, %v2671_v63  ;;  %3269 = vrot.lane.b32.xlu0 %v3237_v28, %s6122_s13  ;;  %2813 = vrot.lane.b32.xlu1 %v2781_v36, %s6120_s11  ;;  %v7309_v28 = vpop.f32.mrf.mxu1  ;;  %v2342_v36 = vadd.f32 %v2341_v46, %v2313_v32 }
 0x357   : > { %v2397_v33 = vpop.f32.mrf.mxu0 }
 0x358   : > { %v7298_v45 = vmax.f32 %v2671_v63, %v2687_v54  ;;  %v2398_v38 = vadd.f32 %v2397_v33, %v2369_v59  ;;  %v3077_v59 = vpack.c.bf16 %v3054_v57, %v6408_v3  ;;  %v2371_v54 = vadd.f32 %v2370_v19, %v2342_v36  ;;  %v7325_v57 = vpop.permute.xlu2 %2646 }
 0x359   : > { %v2345_v36 = vadd.f32 %v2344_v9, %v7231_v40  ;;  %v2318_v40 = vadd.f32 %v7236_v22, %v7234_v16 }
 0x35a   : > { %v2609_v24 = vmul.f32 %v7255_v27, %v2398_v38  ;;  %v2761_v20 = vmul.f32 %v7298_v45, %v6362_v44  ;;  %v3217_v43 = vmul.f32 %v7298_v45, %v6444_v48  ;;  %v3057_v32 = vmul.f32 %v7298_v45, %v6402_v12 }
 0x35c   : > { %v2673_v2 = vadd.f32 %v7307_v62, %v2609_v24  ;;  %v2783_v58 = vpack.c.bf16 %v2761_v20, %v6367_v49  ;;  %v3239_v63 = vpack.c.bf16 %v3217_v43, %v6449_v53  ;;  %v2349_v24 = vpop.f32.mrf.mxu2 }
 0x35d   : > { %v2378_v20 = vpop.f32.mrf.mxu3 }
 0x35e   : > { %v2689_v33 = vmul.f32 0.1, %v2673_v2  ;;  %2817 = vrot.lane.b32.xlu0 %v2783_v58, %s6120_s11  ;;  %3273 = vrot.lane.b32.xlu2 %v3239_v63, %s6122_s13 }
 0x35f   : > { %3109 = vrot.lane.b32.xlu1 %v3077_v59, %s6121_s12  ;;  %v2399_v38 = vpop.f32.mrf.mxu0  ;;  %v2919_v59 = vpack.c.bf16 %v7298_v45, %v8542_v7 }
 0x360   : > { %v7318_v26 = vmax.f32 %v2673_v2, %v2689_v33  ;;  %v2400_v46 = vadd.f32 %v2399_v38, %v2371_v54  ;;  %v3079_v2 = vpack.c.bf16 %v3057_v32, %v6408_v3  ;;  %v7333_v54 = vpop.f32.mrf.mxu1  ;;  %v2374_v33 = vadd.f32 %v2373_v8, %v2345_v36 }
 0x362   : > { %v2611_v43 = vmul.f32 %v7250_v42, %v2400_v46  ;;  %v2764_v19 = vmul.f32 %v7318_v26, %v6362_v44 }
 0x364   : > { %v2675_v58 = vadd.f32 %v7325_v57, %v2611_v43  ;;  %v2785_v63 = vpack.c.bf16 %v2764_v19, %v6367_v49  ;;  %v3220_v43 = vmul.f32 %v7318_v26, %v6444_v48  ;;  %v7344_v19 = vpop.permute.xlu0 %2651 }
 0x365   : > { %v2380_v7 = vpop.f32.mrf.mxu3 }
 0x366   : > { %v2691_v38 = vmul.f32 0.1, %v2675_v58  ;;  %3113 = vrot.lane.b32.xlu0 %v3079_v2, %s6121_s12  ;;  %2821 = vrot.lane.b32.xlu2 %v2785_v63, %s6120_s11  ;;  %v2347_v2 = vadd.f32 %v2346_v29, %v2318_v40  ;;  %v2351_v63 = vpop.f32.mrf.mxu2 }
 0x367   : > { %2953 = vrot.lane.b32.xlu1 %v2919_v59, %s6116_s30  ;;  %v2402_v9 = vpop.f32.mrf.mxu0 }
 0x368   : > { %v7340_v46 = vmax.f32 %v2675_v58, %v2691_v38  ;;  %v2403_v32 = vadd.f32 %v2402_v9, %v2374_v33  ;;  %v8570_v58 = vmov 0.0   ;;  %v3241_v33 = vpack.c.bf16 %v3220_v43, %v6449_v53  ;;  %v7357_v29 = vpop.f32.mrf.mxu1 }
 0x369   : > { %v2921_v59 = vpack.c.bf16 %v7318_v26, %v8570_v58  ;;  %v2376_v38 = vadd.f32 %v2375_v35, %v2347_v2  ;;  %v7364_v35 = vpop.permute.xlu1 %2656  ;;  %v2350_v2 = vadd.f32 %v2349_v24, %v7240_v52  ;;  %v2323_v24 = vadd.f32 %v7243_v47, %v7259_v31 }
 0x36a   : > { %8569 = vst [vmem:[#allocation10_spill] sm:$0xff] %v7340_v46  ;;  %v2613_v8 = vmul.f32 %v7265_v37, %v2403_v32  ;;  %v2767_v36 = vmul.f32 %v7340_v46, %v6362_v44 }
 0x36b   : > { %v2379_v39 = vadd.f32 %v2378_v20, %v2350_v2 }
 0x36c   : > { %v2677_v16 = vadd.f32 %v7344_v19, %v2613_v8  ;;  %v2787_v22 = vpack.c.bf16 %v2767_v36, %v6367_v49  ;;  %v3060_v8 = vmul.f32 %v7318_v26, %v6402_v12  ;;  %v3223_v36 = vmul.f32 %v7340_v46, %v6444_v48 }
 0x36e   : > { %2957 = vrot.lane.b32.xlu0 %v2921_v59, %s6116_s30  ;;  %3277 = vrot.lane.b32.xlu2 %v3241_v33, %s6122_s13  ;;  %v2693_v40 = vmul.f32 0.1, %v2677_v16  ;;  %v2450_v59 = vpop.f32.mrf.mxu2  ;;  %v3081_v5 = vpack.c.bf16 %v3060_v8, %v6408_v3  ;;  %v3243_v61 = vpack.c.bf16 %v3223_v36, %v6449_v53  ;;  %v7386_v36 = vpop.permute.xlu2 %2661 }
 0x36f   : > { %2825 = vrot.lane.b32.xlu1 %v2787_v22, %s6120_s11  ;;  %v2404_v9 = vpop.f32.mrf.mxu0 }
 0x370   : > { %v2405_v32 = vadd.f32 %v2404_v9, %v2376_v38  ;;  %v7367_v33 = vmax.f32 %v2677_v16, %v2693_v40  ;;  %v2923_v38 = vpack.c.bf16 %v7340_v46, %v8570_v58  ;;  %v2479_v9 = vpop.f32.mrf.mxu3  ;;  %v2537_v20 = vpop.f32.mrf.mxu1 }
 0x372   : > { %v2615_v43 = vmul.f32 %v7263_v21, %v2405_v32  ;;  %v2770_v40 = vmul.f32 %v7367_v33, %v6362_v44  ;;  %v3063_v32 = vmul.f32 %v7340_v46, %v6402_v12 }
 0x374   : > { %v2679_v22 = vadd.f32 %v7364_v35, %v2615_v43  ;;  %v2352_v43 = vadd.f32 %v2351_v63, %v2323_v24  ;;  %v3083_v2 = vpack.c.bf16 %v3063_v32, %v6408_v3  ;;  %v7401_v32 = vpop.permute.xlu0 %2666 }
 0x376   : > { %v2695_v10 = vmul.f32 0.1, %v2679_v22  ;;  %3117 = vrot.lane.b32.xlu0 %v3081_v5, %s6121_s12  ;;  %2961 = vrot.lane.b32.xlu2 %v2923_v38, %s6116_s30  ;;  %v2452_v47 = vpop.f32.mrf.mxu2  ;;  %v2381_v38 = vadd.f32 %v2380_v7, %v2352_v43 }
 0x377   : > { %3281 = vrot.lane.b32.xlu1 %v3243_v61, %s6122_s13  ;;  %v2407_v52 = vpop.f32.mrf.mxu0  ;;  %v2789_v61 = vpack.c.bf16 %v2770_v40, %v6367_v49 }
 0x378   : > { %v2408_v16 = vadd.f32 %v2407_v52, %v2379_v39  ;;  %v7383_v8 = vmax.f32 %v2679_v22, %v2695_v10  ;;  %v2481_v10 = vpop.f32.mrf.mxu3  ;;  %v3226_v52 = vmul.f32 %v7367_v33, %v6444_v48  ;;  %v2539_v7 = vpop.f32.mrf.mxu1 }
 0x37a   : > { %v2617_v5 = vmul.f32 %v7269_v56, %v2408_v16  ;;  %v2927_v31 = vpack.c.bf16 %v7383_v8, %v8570_v58  ;;  %v3069_v16 = vmul.f32 %v7383_v8, %v6402_v12 }
 0x37c   : > { %v2681_v39 = vadd.f32 %v7386_v36, %v2617_v5  ;;  %v2451_v5 = vadd.f32 %v2450_v59, %v7248_v15 }
 0x37e   : > { %2829 = vrot.lane.b32.xlu0 %v2789_v61, %s6120_s11  ;;  %3121 = vrot.lane.b32.xlu2 %v3083_v2, %s6121_s12  ;;  %v2697_v24 = vmul.f32 0.1, %v2681_v39  ;;  %v3245_v61 = vpack.c.bf16 %v3226_v52, %v6449_v53  ;;  %v2925_v2 = vpack.c.bf16 %v7367_v33, %v8570_v58  ;;  %v3066_v52 = vmul.f32 %v7367_v33, %v6402_v12 }
 0x37f   : > { %2969 = vrot.lane.b32.xlu1 %v2927_v31, %s6116_s30  ;;  %v2409_v22 = vpop.f32.mrf.mxu0 }
 0x380   : > { %v2410_v63 = vadd.f32 %v2409_v22, %v2381_v38  ;;  %v7408_v31 = vmax.f32 %v2681_v39, %v2697_v24  ;;  %v3087_v38 = vpack.c.bf16 %v3069_v16, %v6408_v3  ;;  %v2480_v22 = vadd.f32 %v2479_v9, %v2451_v5  ;;  %v2484_v50 = vpop.f32.mrf.mxu3 }
 0x381   : > { %v2453_v9 = vadd.f32 %v2452_v47, %v7252_v18 }
 0x382   : > { %v2619_v40 = vmul.f32 %v7277_v23, %v2410_v63  ;;  %v2455_v63 = vpop.f32.mrf.mxu2  ;;  %v2776_v39 = vmul.f32 %v7408_v31, %v6362_v44 }
 0x384   : > { %v2683_v43 = vadd.f32 %v7401_v32, %v2619_v40 }
 0x386   : > { %3285 = vrot.lane.b32.xlu0 %v3245_v61, %s6122_s13  ;;  %2965 = vrot.lane.b32.xlu2 %v2925_v2, %s6116_s30  ;;  %v2699_v59 = vmul.f32 0.1, %v2683_v43  ;;  %v2929_v61 = vpack.c.bf16 %v7408_v31, %v8570_v58  ;;  %v3085_v2 = vpack.c.bf16 %v3066_v52, %v6408_v3 }
 0x387   : > { %3129 = vrot.lane.b32.xlu1 %v3087_v38, %s6121_s12  ;;  %v2508_v15 = vpop.f32.mrf.mxu0  ;;  %v2793_v38 = vpack.c.bf16 %v2776_v39, %v6367_v49  ;;  %v7438_v39 = vpop.permute.xlu2 %3491 }
 0x388   : > { %v2509_v40 = vadd.f32 %v2508_v15, %v2480_v22  ;;  %v7419_v16 = vmax.f32 %v2683_v43, %v2699_v59  ;;  %v2542_v22 = vpop.f32.mrf.mxu1  ;;  %v2482_v15 = vadd.f32 %v2481_v10, %v2453_v9  ;;  %v2773_v43 = vmul.f32 %v7383_v8, %v6362_v44  ;;  %v2486_v52 = vpop.f32.mrf.mxu3  ;;  %8571 = vst [vmem:[#allocation11_spill] sm:$0xff] %v7438_v39 }
 0x389   : > { %v3232_v10 = vmul.f32 %v7408_v31, %v6444_v48 }
 0x38a   : > { %v2538_v24 = vadd.f32 %v2537_v20, %v2509_v40  ;;  %v2779_v47 = vmul.f32 %v7419_v16, %v6362_v44  ;;  %v2457_v59 = vpop.f32.mrf.mxu2 }
 0x38b   : > { %v3249_v44 = vpack.c.bf16 %v3232_v10, %v6449_v53 }
 0x38c   : > { %v2606_v5 = vmul.f32 %v7246_v17, %v2538_v24  ;;  %v2456_v24 = vadd.f32 %v2455_v63, %v7261_v11 }
 0x38e   : > { %v2670_v14 = vadd.f32 %v7272_v13, %v2606_v5  ;;  %2973 = vrot.lane.b32.xlu0 %v2929_v61, %s6116_s30  ;;  %3125 = vrot.lane.b32.xlu2 %v3085_v2, %s6121_s12  ;;  %v2795_v5 = vpack.c.bf16 %v2779_v47, %v6367_v49  ;;  %v2791_v61 = vpack.c.bf16 %v2773_v43, %v6367_v49 }
 0x38f   : > { %2837 = vrot.lane.b32.xlu1 %v2793_v38, %s6120_s11  ;;  %v2510_v18 = vpop.f32.mrf.mxu0  ;;  %v3235_v38 = vmul.f32 %v7419_v16, %v6444_v48 }
 0x390   : > { %v2686_v20 = vmul.f32 0.1, %v2670_v14  ;;  %v2511_v17 = vadd.f32 %v2510_v18, %v2482_v15  ;;  %v2544_v11 = vpop.f32.mrf.mxu1 }
 0x391   : > { %v3251_v43 = vpack.c.bf16 %v3235_v38, %v6449_v53 }
 0x392   : > { %v7436_v13 = vmax.f32 %v2670_v14, %v2686_v20  ;;  %v2540_v40 = vadd.f32 %v2539_v7, %v2511_v17  ;;  %v2485_v14 = vadd.f32 %v2484_v50, %v2456_v24  ;;  %v3229_v50 = vmul.f32 %v7383_v8, %v6444_v48  ;;  %v2460_v20 = vpop.f32.mrf.mxu2 }
 0x393   : > { %v2458_v17 = vadd.f32 %v2457_v59, %v7267_v0  ;;  %v3075_v59 = vmul.f32 %v7419_v16, %v6402_v12 }
 0x394   : > { %v2608_v9 = vmul.f32 %v7257_v4, %v2540_v40  ;;  %v7447_v2 = vpack.c.bf16 %v7436_v13, %v7275_v25  ;;  %v3247_v10 = vpack.c.bf16 %v3229_v50, %v6449_v53  ;;  %v2489_v40 = vpop.f32.mrf.mxu3 }
 0x396   : > { %v2672_v7 = vadd.f32 %v7288_v55, %v2608_v9  ;;  %2841 = vrot.lane.b32.xlu0 %v2795_v5, %s6120_s11  ;;  %2833 = vrot.lane.b32.xlu2 %v2791_v61, %s6120_s11  ;;  %3373 = vst [vmem:[#allocation3 + $0x100] sm:$0xff] %v7447_v2  ;;  %v3072_v55 = vmul.f32 %v7408_v31, %v6402_v12  ;;  %v7471_v9 = vpop.permute.xlu2 %3479 }
 0x397   : > { %3293 = vrot.lane.b32.xlu1 %v3249_v44, %s6122_s13  ;;  %v2513_v4 = vpop.f32.mrf.mxu0  ;;  %v2487_v5 = vadd.f32 %v2486_v52, %v2458_v17  ;;  %v3215_v61 = vmul.f32 %v6434_v41, %v7436_v13 }
 0x398   : > { %v2688_v49 = vmul.f32 0.1, %v2672_v7  ;;  %v2514_v63 = vadd.f32 %v2513_v4, %v2485_v14  ;;  %v3089_v24 = vpack.c.bf16 %v3072_v55, %v6408_v3  ;;  %v2547_v52 = vpop.f32.mrf.mxu1  ;;  %v2461_v14 = vadd.f32 %v2460_v20, %v7279_v1 }
 0x399   : > { %v3091_v4 = vpack.c.bf16 %v3075_v59, %v6408_v3  ;;  %v3238_v38 = vpack.c.bf16 %v3215_v61, %v3215_v61 }
 0x39a   : > { %v7460_v15 = vmax.f32 %v2672_v7, %v2688_v49  ;;  %v2543_v18 = vadd.f32 %v2542_v22, %v2514_v63  ;;  %v2931_v49 = vpack.c.bf16 %v7419_v16, %v8570_v58  ;;  %v2462_v63 = vpop.f32.mrf.mxu2  ;;  %v2490_v50 = vadd.f32 %v2489_v40, %v2461_v14 }
 0x39c   : > { %v2610_v47 = vmul.f32 %v7255_v27, %v2543_v18  ;;  %v7469_v48 = vpack.c.bf16 %v7460_v15, %v7298_v45 }
 0x39e   : > { %v2674_v22 = vadd.f32 %v7307_v62, %v2610_v47  ;;  %3297 = vrot.lane.b32.xlu0 %v3251_v43, %s6122_s13  ;;  %3289 = vrot.lane.b32.xlu2 %v3247_v10, %s6122_s13  ;;  %3374 = vst [vmem:[#allocation3 + $0x108] sm:$0xff] %v7469_v48  ;;  %v7494_v18 = vpop.permute.xlu2 %3779  ;;  %v7506_v43 = vpop.permute.xlu0 %3487  ;;  %v2463_v10 = vadd.f32 %v2462_v63, %v7309_v28 }
 0x39f   : > { %3133 = vrot.lane.b32.xlu1 %v3089_v24, %s6121_s12  ;;  %v2515_v27 = vpop.f32.mrf.mxu0  ;;  %8572 = vst [vmem:[#allocation12_spill] sm:$0xff] %v7494_v18  ;;  %v2918_v24 = vpack.c.bf16 %v7436_v13, %v7436_v13 }
 0x3a0   : > { %v2690_v53 = vmul.f32 0.1, %v2674_v22  ;;  %v2516_v0 = vadd.f32 %v2515_v27, %v2487_v5  ;;  %v2549_v47 = vpop.f32.mrf.mxu1 }
 0x3a2   : > { %v7482_v44 = vmax.f32 %v2674_v22, %v2690_v53  ;;  %v2545_v62 = vadd.f32 %v2544_v11, %v2516_v0  ;;  %v2759_v11 = vmul.f32 %v6301_v60, %v7436_v13  ;;  %v2465_v59 = vpop.f32.mrf.mxu2 }
 0x3a3   : > { %v2466_v63 = vadd.f32 %v2465_v59, %v7333_v54 }
 0x3a4   : > { %v2612_v7 = vmul.f32 %v7250_v42, %v2545_v62  ;;  %v7491_v12 = vpack.c.bf16 %v7482_v44, %v7318_v26  ;;  %v2491_v42 = vpop.f32.mrf.mxu3  ;;  %v2782_v5 = vpack.c.bf16 %v2759_v11, %v2759_v11  ;;  %v3218_v62 = vmul.f32 %v6434_v41, %v7460_v15 }
 0x3a5   : > { %v2492_v53 = vadd.f32 %v2491_v42, %v2463_v10 }
 0x3a6   : > { %v2676_v55 = vadd.f32 %v7325_v57, %v2612_v7  ;;  %3137 = vrot.lane.b32.xlu0 %v3091_v4, %s6121_s12  ;;  %2977 = vrot.lane.b32.xlu2 %v2931_v49, %s6116_s30  ;;  %3375 = vst [vmem:[#allocation3 + $0x110] sm:$0xff] %v7491_v12  ;;  %v2762_v57 = vmul.f32 %v6301_v60, %v7460_v15  ;;  %v7533_v42 = vpop.permute.xlu0 %3787 }
 0x3a7   : > { %3271 = vrot.lane.b32.xlu1 %v3238_v38, %s6122_s13  ;;  %v2518_v3 = vpop.f32.mrf.mxu0  ;;  %v3058_v7 = vmul.f32 %v6342_v6, %v7460_v15  ;;  %8573 = vst [vmem:[#allocation13_spill] sm:$0xff] %v7533_v42 }
 0x3a8   : > { %v2692_v1 = vmul.f32 0.1, %v2676_v55  ;;  %v2519_v58 = vadd.f32 %v2518_v3, %v2490_v50  ;;  %v2784_v22 = vpack.c.bf16 %v2762_v57, %v2762_v57  ;;  %v3240_v50 = vpack.c.bf16 %v3218_v62, %v3218_v62 }
 0x3aa   : > { %v7504_v20 = vmax.f32 %v2676_v55, %v2692_v1  ;;  %v2548_v17 = vadd.f32 %v2547_v52, %v2519_v58  ;;  %v3080_v1 = vpack.c.bf16 %v3058_v7, %v3058_v7  ;;  %v2552_v58 = vpop.f32.mrf.mxu1 }
 0x3ac   : > { %v2614_v40 = vmul.f32 %v7265_v37, %v2548_v17  ;;  %v7514_v27 = vpack.c.bf16 %v7504_v20, %v7340_v46  ;;  %v2494_v14 = vpop.f32.mrf.mxu3 }
 0x3ad   : > { %v2495_v11 = vadd.f32 %v2494_v14, %v2466_v63 }
 0x3ae   : > { %v2678_v0 = vadd.f32 %v7344_v19, %v2614_v40  ;;  %2951 = vrot.lane.b32.xlu0 %v2918_v24, %s6116_s30  ;;  %2815 = vrot.lane.b32.xlu2 %v2782_v5, %s6120_s11  ;;  %3376 = vst [vmem:[#allocation3 + $0x118] sm:$0xff] %v7514_v27  ;;  %v7521_v61 = vpop.permute.xlu2 %2949  ;;  %v3055_v19 = vmul.f32 %v6342_v6, %v7436_v13  ;;  %v2467_v24 = vpop.f32.mrf.mxu2 }
 0x3af   : > { %2819 = vrot.lane.b32.xlu1 %v2784_v22, %s6120_s11  ;;  %v2520_v37 = vpop.f32.mrf.mxu0  ;;  %v2765_v40 = vmul.f32 %v6301_v60, %v7482_v44 }
 0x3b0   : > { %v2694_v28 = vmul.f32 0.1, %v2678_v0  ;;  %v2521_v52 = vadd.f32 %v2520_v37, %v2492_v53  ;;  %v3078_v55 = vpack.c.bf16 %v3055_v19, %v3055_v19  ;;  %v2468_v53 = vadd.f32 %v2467_v24, %v7357_v29  ;;  %v7565_v29 = vpop.permute.xlu0 %3775 }
 0x3b1   : > { %v2786_v59 = vpack.c.bf16 %v2765_v40, %v2765_v40  ;;  %v2920_v37 = vpack.c.bf16 %v7460_v15, %v7460_v15 }
 0x3b2   : > { %v7529_v4 = vmax.f32 %v2678_v0, %v2694_v28  ;;  %v2550_v49 = vadd.f32 %v2549_v47, %v2521_v52  ;;  %v2922_v28 = vpack.c.bf16 %v7482_v44, %v7482_v44  ;;  %v2554_v14 = vpop.f32.mrf.mxu1 }
 0x3b4   : > { %v2616_v38 = vmul.f32 %v7263_v21, %v2550_v49  ;;  %v7537_v3 = vpack.c.bf16 %v7529_v4, %v7367_v33  ;;  %v7543_v21 = vpop.permute.xlu1 %3783  ;;  %v2496_v22 = vpop.f32.mrf.mxu3 }
 0x3b5   : > { %8574 = vst [vmem:[#allocation14_spill] sm:$0xff] %v7543_v21  ;;  %v2497_v62 = vadd.f32 %v2496_v22, %v2468_v53  ;;  %v3064_v22 = vmul.f32 %v6342_v6, %v7504_v20  ;;  %v3224_v53 = vmul.f32 %v6434_v41, %v7504_v20 }
 0x3b6   : > { %v2680_v57 = vadd.f32 %v7364_v35, %v2616_v38  ;;  %3275 = vrot.lane.b32.xlu0 %v3240_v50, %s6122_s13  ;;  %3111 = vrot.lane.b32.xlu2 %v3078_v55, %s6121_s12  ;;  %3377 = vst [vmem:[#allocation3 + $0x120] sm:$0xff] %v7537_v3  ;;  %v3221_v38 = vmul.f32 %v6434_v41, %v7482_v44 }
 0x3b7   : > { %3115 = vrot.lane.b32.xlu1 %v3080_v1, %s6121_s12  ;;  %v2523_v54 = vpop.f32.mrf.mxu0  ;;  %v3061_v55 = vmul.f32 %v6342_v6, %v7482_v44 }
 0x3b8   : > { %v2696_v17 = vmul.f32 0.1, %v2680_v57  ;;  %v2524_v47 = vadd.f32 %v2523_v54, %v2495_v11  ;;  %v7546_v10 = vpop.permute.xlu2 %3273 }
 0x3ba   : > { %v7550_v35 = vmax.f32 %v2680_v57, %v2696_v17  ;;  %v2553_v5 = vadd.f32 %v2552_v58, %v2524_v47  ;;  %v3242_v57 = vpack.c.bf16 %v3221_v38, %v3221_v38  ;;  %v3082_v17 = vpack.c.bf16 %v3061_v55, %v3061_v55 }
 0x3bc   : > { %v2618_v0 = vmul.f32 %v7269_v56, %v2553_v5  ;;  %v7560_v52 = vpack.c.bf16 %v7550_v35, %v7383_v8  ;;  %v7575_v50 = vpop.permute.xlu1 %3483 }
 0x3bd   : > { %8575 = vst [vmem:[#allocation15_spill] sm:$0xff] %v7575_v50 }
 0x3be   : > { %v2682_v19 = vadd.f32 %v7386_v36, %v2618_v0  ;;  %2823 = vrot.lane.b32.xlu0 %v2786_v59, %s6120_s11  ;;  %2955 = vrot.lane.b32.xlu2 %v2920_v37, %s6116_s30  ;;  %3378 = vst [vmem:[#allocation3 + $0x128] sm:$0xff] %v7560_v52  ;;  %v2768_v36 = vmul.f32 %v6301_v60, %v7504_v20 }
 0x3bf   : > { %2959 = vrot.lane.b32.xlu1 %v2922_v28, %s6116_s30  ;;  %v2525_v56 = vpop.f32.mrf.mxu0  ;;  %v3084_v59 = vpack.c.bf16 %v3064_v22, %v3064_v22  ;;  %v3244_v37 = vpack.c.bf16 %v3224_v53, %v3224_v53  ;;  %v2924_v28 = vpack.c.bf16 %v7504_v20, %v7504_v20  ;;  %v2774_v22 = vmul.f32 %v6301_v60, %v7550_v35 }
 0x3c0   : > { %v2698_v7 = vmul.f32 0.1, %v2682_v19  ;;  %v2526_v49 = vadd.f32 %v2525_v56, %v2497_v62  ;;  %v7569_v63 = vpop.permute.xlu2 %2821  ;;  %v2788_v54 = vpack.c.bf16 %v2768_v36, %v2768_v36  ;;  %v3070_v53 = vmul.f32 %v6342_v6, %v7550_v35 }
 0x3c2   : > { %v7579_v1 = vmax.f32 %v2682_v19, %v2698_v7  ;;  %v2555_v58 = vadd.f32 %v2554_v14, %v2526_v49  ;;  %v2771_v7 = vmul.f32 %v6301_v60, %v7529_v4  ;;  %v2926_v49 = vpack.c.bf16 %v7529_v4, %v7529_v4 }
 0x3c4   : > { %v2620_v11 = vmul.f32 %v7277_v23, %v2555_v58  ;;  %v7584_v47 = vpack.c.bf16 %v7579_v1, %v7408_v31  ;;  %v2790_v38 = vpack.c.bf16 %v2771_v7, %v2771_v7  ;;  %v3067_v58 = vmul.f32 %v6342_v6, %v7529_v4 }
 0x3c5   : > { %v2792_v7 = vpack.c.bf16 %v2774_v22, %v2774_v22  ;;  %v3073_v21 = vmul.f32 %v6342_v6, %v7579_v1 }
 0x3c6   : > { %v2684_v40 = vadd.f32 %v7401_v32, %v2620_v11  ;;  %3279 = vrot.lane.b32.xlu0 %v3242_v57, %s6122_s13  ;;  %2827 = vrot.lane.b32.xlu2 %v2788_v54, %s6120_s11  ;;  %3379 = vst [vmem:[#allocation3 + $0x130] sm:$0xff] %v7584_v47  ;;  %v3227_v57 = vmul.f32 %v6434_v41, %v7529_v4 }
 0x3c7   : > { %3119 = vrot.lane.b32.xlu1 %v3082_v17, %s6121_s12  ;;  %v3086_v54 = vpack.c.bf16 %v3067_v58, %v3067_v58  ;;  %v2928_v17 = vpack.c.bf16 %v7550_v35, %v7550_v35 }
 0x3c8   : > { %v2700_v24 = vmul.f32 0.1, %v2684_v40  ;;  %v7591_v5 = vpop.permute.xlu0 %3269  ;;  %v7593_v23 = vpop.permute.xlu2 %3277 }
 0x3c9   : > { %v7599_v32 = vpop.permute.xlu1 %2813 }
 0x3ca   : > { %v7601_v0 = vmax.f32 %v2684_v40, %v2700_v24  ;;  %v3246_v40 = vpack.c.bf16 %v3227_v57, %v3227_v57 }
 0x3cc   : > { %v7607_v62 = vpack.c.bf16 %v7601_v0, %v7419_v16 }
 0x3ce   : > { %3123 = vrot.lane.b32.xlu0 %v3084_v59, %s6121_s12  ;;  %3283 = vrot.lane.b32.xlu2 %v3244_v37, %s6122_s13  ;;  %3380 = vst [vmem:[#allocation3 + $0x138] sm:$0xff] %v7607_v62  ;;  %v3418_v37 = vmul.f32 %v7529_v4, %v6606_v34 }
 0x3cf   : > { %2963 = vrot.lane.b32.xlu1 %v2924_v28, %s6116_s30  ;;  %v3417_v28 = vmul.f32 %v6602_v30, %v7367_v33 }
 0x3d0   : > { %v7613_v19 = vpop.permute.xlu0 %2817  ;;  %v7615_v56 = vpop.permute.xlu2 %2961 }
 0x3d1   : > { %v7617_v14 = vpop.permute.xlu1 %3109 }
 0x3d6   : > { %2967 = vrot.lane.b32.xlu0 %v2926_v49, %s6116_s30  ;;  %3773 = vrot.lane.b32.xlu2 %v7537_v3, %s6123_s14  ;;  %v3088_v49 = vpack.c.bf16 %v3070_v53, %v3070_v53 }
 0x3d7   : > { %2831 = vrot.lane.b32.xlu1 %v2790_v38, %s6120_s11  ;;  %v3437_v38 = vpack.c.bf16 %v3418_v37, %v3417_v28 }
 0x3d8   : > { %v7627_v36 = vpop.permute.xlu0 %3113  ;;  %v7629_v55 = vpop.permute.xlu2 %3121 }
 0x3d9   : > { %v7633_v11 = vpop.permute.xlu1 %2953 }
 0x3de   : > { %3127 = vrot.lane.b32.xlu0 %v3086_v54, %s6121_s12  ;;  %2971 = vrot.lane.b32.xlu2 %v2928_v17, %s6116_s30  ;;  %v3230_v54 = vmul.f32 %v6434_v41, %v7550_v35  ;;  %v2777_v17 = vmul.f32 %v6301_v60, %v7579_v1 }
 0x3df   : > { %3287 = vrot.lane.b32.xlu1 %v3246_v40, %s6122_s13 }
 0x3e0   : > { %v7642_v3 = vpop.permute.xlu0 %2957  ;;  %v7644_v24 = vpop.permute.xlu2 %2965  ;;  %v3248_v22 = vpack.c.bf16 %v3230_v54, %v3230_v54  ;;  %v2794_v53 = vpack.c.bf16 %v2777_v17, %v2777_v17  ;;  %v3420_v54 = vmul.f32 %v6602_v30, %v7383_v8 }
 0x3e1   : > { %v7650_v59 = vpop.permute.xlu1 %2825 }
 0x3e6   : > { %2835 = vrot.lane.b32.xlu0 %v2792_v7, %s6120_s11  ;;  %3131 = vrot.lane.b32.xlu2 %v3088_v49, %s6121_s12  ;;  %v3421_v7 = vmul.f32 %v7550_v35, %v6606_v34  ;;  %v3233_v49 = vmul.f32 %v6434_v41, %v7579_v1 }
 0x3e7   : > { %3477 = vrot.lane.b32.xlu1 %v3437_v38, %s6119_s10 }
 0x3e8   : > { %v7659_v58 = vpop.permute.xlu0 %3117  ;;  %v7661_v57 = vpop.permute.xlu2 %3125  ;;  %v3439_v17 = vpack.c.bf16 %v3421_v7, %v3420_v54  ;;  %v2780_v7 = vmul.f32 %v6301_v60, %v7601_v0  ;;  %v3236_v60 = vmul.f32 %v6434_v41, %v7601_v0  ;;  %v3412_v41 = vmul.f32 %v7482_v44, %v6606_v34 }
 0x3e9   : > { %v7667_v40 = vpop.permute.xlu1 %3281 }
 0x3ea   : > { %v2796_v54 = vpack.c.bf16 %v2780_v7, %v2780_v7 }
 0x3ee   : > { %3291 = vrot.lane.b32.xlu0 %v3248_v22, %s6122_s13  ;;  %2839 = vrot.lane.b32.xlu2 %v2794_v53, %s6120_s11  ;;  %v3250_v22 = vpack.c.bf16 %v3233_v49, %v3233_v49  ;;  %v3090_v49 = vpack.c.bf16 %v3073_v21, %v3073_v21  ;;  %v3423_v21 = vmul.f32 %v6602_v30, %v7408_v31 }
 0x3ef   : > { %3777 = vrot.lane.b32.xlu1 %v7560_v52, %s6123_s14  ;;  %v2930_v52 = vpack.c.bf16 %v7579_v1, %v7579_v1 }
 0x3f0   : > { %v7673_v37 = vpop.permute.xlu0 %2829  ;;  %v7675_v28 = vpop.permute.xlu2 %2833 }
 0x3f1   : > { %v7681_v38 = vpop.permute.xlu1 %2969 }
 0x3f6   : > { %3481 = vrot.lane.b32.xlu0 %v3439_v17, %s6119_s10  ;;  %3295 = vrot.lane.b32.xlu2 %v3250_v22, %s6122_s13 }
 0x3f7   : > { %2975 = vrot.lane.b32.xlu1 %v2930_v52, %s6116_s30  ;;  %v3424_v52 = vmul.f32 %v7579_v1, %v6606_v34 }
 0x3f8   : > { %v7690_v53 = vpop.permute.xlu0 %3285  ;;  %v7692_v39 = vpop.permute.xlu2 %3289 }
 0x3f9   : > { %8576 = vst [vmem:[#allocation16_spill] sm:$0xff] %v7692_v39  ;;  %v7696_v42 = vpop.permute.xlu1 %3129  ;;  %v3441_v7 = vpack.c.bf16 %v3424_v52, %v3423_v21  ;;  %v3076_v52 = vmul.f32 %v6342_v6, %v7601_v0 }
 0x3fe   : > { %3781 = vrot.lane.b32.xlu0 %v7584_v47, %s6123_s14  ;;  %3135 = vrot.lane.b32.xlu2 %v3090_v49, %s6121_s12  ;;  %v2932_v47 = vpack.c.bf16 %v7601_v0, %v7601_v0  ;;  %v3252_v49 = vpack.c.bf16 %v3236_v60, %v3236_v60  ;;  %v3411_v60 = vmul.f32 %v6602_v30, %v7318_v26 }
 0x3ff   : > { %2843 = vrot.lane.b32.xlu1 %v2796_v54, %s6120_s11 }
 0x400   : > { %v7704_v17 = vpop.permute.xlu0 %2973  ;;  %v7706_v22 = vpop.permute.xlu2 %2977 }
 0x401   : > { %8577 = vst [vmem:[#allocation17_spill] sm:$0xff] %v7704_v17  ;;  %v7710_v50 = vpop.permute.xlu1 %2837  ;;  %v2845_v17 = vrot.slane %v7599_v32, 4 }
 0x402   : > { %8578 = vst [vmem:[#allocation18_spill] sm:$0xff] %v7706_v22 }
 0x406   : > { %2979 = vrot.lane.b32.xlu0 %v2932_v47, %s6116_s30  ;;  %3485 = vrot.lane.b32.xlu2 %v3441_v7, %s6119_s10  ;;  %v3433_v7 = vpack.c.bf16 %v3412_v41, %v3411_v60  ;;  %v3427_v41 = vmul.f32 %v7601_v0, %v6606_v34  ;;  %v3426_v60 = vmul.f32 %v6602_v30, %v7419_v16 }
 0x407   : > { %3299 = vrot.lane.b32.xlu1 %v3252_v49, %s6122_s13  ;;  %v3092_v49 = vpack.c.bf16 %v3076_v52, %v3076_v52  ;;  %v3414_v52 = vmul.f32 %v6602_v30, %v7340_v46  ;;  %v3301_v46 = vrot.slane %v7591_v5, 4 }
 0x408   : > { %v7721_v54 = vpop.permute.xlu0 %2841  ;;  %v2816_v22 = vpop.permute.xlu2 %2815 }
 0x409   : > { %8579 = vst [vmem:[#allocation19_spill] sm:$0xff] %v7721_v54  ;;  %v2846_v18 = vrot.slane %v2816_v22, 4  ;;  %v7726_v39 = vpop.permute.xlu1 %3293  ;;  %v3415_v54 = vmul.f32 %v7504_v20, %v6606_v34 }
 0x40b   : > { %v2861_v21 = vsel %vm506_vm4, %v2845_v17, %v2846_v18  ;;  %v3141_v18 = vrot.slane %v7617_v14, 4 }
 0x40c   : > { %v2862_v47 = vsel %vm508_vm9, %v7599_v32, %v2861_v21 }
 0x40d   : > { %2885 = vst [vmem:[#allocation3] sm:$0xff] %v2862_v47  ;;  %v3435_v47 = vpack.c.bf16 %v3415_v54, %v3414_v52 }
 0x40e   : > { %3469 = vrot.lane.b32.xlu0 %v3433_v7, %s6119_s10  ;;  %3785 = vrot.lane.b32.xlu2 %v7607_v62, %s6123_s14  ;;  %v3443_v7 = vpack.c.bf16 %v3427_v41, %v3426_v60  ;;  %v8581_v60 = vmov 0.0|0.0  }
 0x40f   : > { %3139 = vrot.lane.b32.xlu1 %v3092_v49, %s6121_s12 }
 0x410   : > { %v7739_v22 = vpop.permute.xlu0 %3297  ;;  %v3112_v6 = vpop.permute.xlu2 %3111 }
 0x411   : > { %8580 = vst [vmem:[#allocation20_spill] sm:$0xff] %v7739_v22  ;;  %v3142_v17 = vrot.slane %v3112_v6, 4  ;;  %v7744_v32 = vpop.permute.xlu1 %3133 }
 0x413   : > { %v3157_v62 = vsel %vm506_vm4, %v3141_v18, %v3142_v17  ;;  %v2983_v18 = vrot.slane %v7633_v11, 4 }
 0x414   : > { %v3158_v21 = vsel %vm817_vm10, %v7617_v14, %v3157_v62 }
 0x415   : > { %3181 = vst [vmem:[#allocation3 + $0x80] sm:$0xff] %v3158_v21 }
 0x416   : > { %3475 = vrot.lane.b32.xlu0 %v6621_v51, %s6119_s10  ;;  %3473 = vrot.lane.b32.xlu2 %v3435_v47, %s6119_s10  ;;  %v2851_v47 = vrot.slane %v7650_v59, 4 }
 0x417   : > { %3489 = vrot.lane.b32.xlu1 %v3443_v7, %s6119_s10 }
 0x418   : > { %v7759_v49 = vpop.permute.xlu0 %3137  ;;  %v2956_v6 = vpop.permute.xlu2 %2955 }
 0x419   : > { %v2984_v17 = vrot.slane %v2956_v6, 4  ;;  %v3272_v22 = vpop.permute.xlu1 %3271 }
 0x41a   : > { %v3302_v14 = vrot.slane %v3272_v22, 4 }
 0x41b   : > { %v2999_v54 = vsel %vm506_vm4, %v2983_v18, %v2984_v17  ;;  %v3405_v17 = vmul.f32 %v6602_v30, %v7275_v25 }
 0x41c   : > { %v3000_v41 = vsel %vm645_vm5, %v7633_v11, %v2999_v54  ;;  %v3317_v52 = vsel %vm506_vm4, %v3301_v46, %v3302_v14  ;;  %v3406_v11 = vmul.f32 %v7436_v13, %v6606_v34  ;;  %v2981_v46 = vrot.slane %v7521_v61, 4 }
 0x41d   : > { %3022 = vst [vmem:[#allocation3 + $0x48] sm:$0xff] %v3000_v41  ;;  %v3318_v62 = vsel %vm987_vm11, %v7591_v5, %v3317_v52 }
 0x41e   : > { %3341 = vst [vmem:[#allocation3 + $0xc0] sm:$0xff] %v3318_v62  ;;  %3769 = vrot.lane.b32.xlu0 %v7514_v27, %s6123_s14  ;;  %3767 = vrot.lane.b32.xlu2 %v8581_v60, %s6123_s14  ;;  %v2847_v27 = vrot.slane %v7613_v19, 4 }
 0x41f   : > { %3471 = vrot.lane.b32.xlu1 %v6621_v51, %s6119_s10 }
 0x420   : > { %v2952_v22 = vpop.permute.xlu0 %2951  ;;  %v2828_v21 = vpop.permute.xlu2 %2827 }
 0x421   : > { %v2982_v5 = vrot.slane %v2952_v22, 4  ;;  %v2852_v7 = vrot.slane %v2828_v21, 4  ;;  %v2820_v6 = vpop.permute.xlu1 %2819  ;;  %v3429_v22 = vpack.c.bf16 %v3406_v11, %v3405_v17  ;;  %v3307_v11 = vrot.slane %v7667_v40, 4 }
 0x422   : > { %v2848_v18 = vrot.slane %v2820_v6, 4 }
 0x423   : > { %v2997_v14 = vsel %vm506_vm4, %v2981_v46, %v2982_v5  ;;  %v2867_v54 = vsel %vm506_vm4, %v2851_v47, %v2852_v7 }
 0x424   : > { %v2998_v41 = vsel %vm645_vm5, %v7521_v61, %v2997_v14  ;;  %v2868_v52 = vsel %vm508_vm9, %v7650_v59, %v2867_v54  ;;  %v2863_v62 = vsel %vm506_vm4, %v2847_v27, %v2848_v18  ;;  %v3303_v59 = vrot.slane %v7546_v10, 4 }
 0x425   : > { %3021 = vst [vmem:[#allocation3 + $0x40] sm:$0xff] %v2998_v41  ;;  %v2864_v21 = vsel %vm508_vm9, %v7613_v19, %v2863_v62  ;;  %v3143_v19 = vrot.slane %v7627_v36, 4 }
 0x426   : > { %2888 = vst [vmem:[#allocation3 + $0x18] sm:$0xff] %v2868_v52  ;;  %3463 = vrot.lane.b32.xlu0 %v6621_v51, %s6119_s10  ;;  %3461 = vrot.lane.b32.xlu2 %v3429_v22, %s6119_s10  ;;  %v3798_v52 = vrot.slane %v7565_v29, 4 }
 0x427   : > { %2886 = vst [vmem:[#allocation3 + $0x8] sm:$0xff] %v2864_v21  ;;  %3765 = vrot.lane.b32.xlu1 %v7491_v12, %s6123_s14 }
 0x428   : > { %v3276_v61 = vpop.permute.xlu0 %3275  ;;  %v3284_v46 = vpop.permute.xlu2 %3283 }
 0x429   : > { %v3304_v47 = vrot.slane %v3276_v61, 4  ;;  %v3308_v5 = vrot.slane %v3284_v46, 4  ;;  %v3116_v7 = vpop.permute.xlu1 %3115 }
 0x42a   : > { %v3144_v6 = vrot.slane %v3116_v7, 4  ;;  %v8582_v7 = vld [vmem:[#allocation8_spill] sm:$0xff] }
 0x42b   : > { %v3319_v27 = vsel %vm506_vm4, %v3303_v59, %v3304_v47  ;;  %v3323_v18 = vsel %vm506_vm4, %v3307_v11, %v3308_v5  ;;  %v3408_v59 = vmul.f32 %v6602_v30, %v7298_v45 }
 0x42c   : > { %v3320_v17 = vsel %vm987_vm11, %v7546_v10, %v3319_v27  ;;  %v3324_v12 = vsel %vm987_vm11, %v7667_v40, %v3323_v18  ;;  %v3159_v14 = vsel %vm506_vm4, %v3143_v19, %v3144_v6  ;;  %v3409_v40 = vmul.f32 %v7460_v15, %v6606_v34 }
 0x42d   : > { %3342 = vst [vmem:[#allocation3 + $0xc8] sm:$0xff] %v3320_v17  ;;  %v3160_v54 = vsel %vm817_vm10, %v7627_v36, %v3159_v14  ;;  %v2849_v36 = vrot.slane %v7569_v63, 4  ;;  %v3883_v19 = vmul.f32 %v7601_v0, %v8582_v7  ;;  %v3305_v6 = vrot.slane %v7593_v23, 4 }
 0x42e   : > { %3344 = vst [vmem:[#allocation3 + $0xd8] sm:$0xff] %v3324_v12  ;;  %3757 = vrot.lane.b32.xlu0 %v7447_v2, %s6123_s14  ;;  %3467 = vrot.lane.b32.xlu2 %v6621_v51, %s6119_s10  ;;  %v2985_v2 = vrot.slane %v7642_v3, 4  ;;  %v3431_v5 = vpack.c.bf16 %v3409_v40, %v3408_v59  ;;  %v3145_v12 = vrot.slane %v7659_v58, 4 }
 0x42f   : > { %3182 = vst [vmem:[#allocation3 + $0x88] sm:$0xff] %v3160_v54  ;;  %3771 = vrot.lane.b32.xlu1 %v8581_v60, %s6123_s14 }
 0x430   : > { %v2824_v10 = vpop.permute.xlu0 %2823  ;;  %v3774_v41 = vpop.permute.xlu2 %3773 }
 0x431   : > { %v2850_v62 = vrot.slane %v2824_v10, 4  ;;  %v3797_v22 = vrot.slane %v3774_v41, 4  ;;  %v2960_v21 = vpop.permute.xlu1 %2959 }
 0x432   : > { %v2986_v61 = vrot.slane %v2960_v21, 4  ;;  %v8584_v21 = vld [vmem:[#allocation9_spill] sm:$0xff] }
 0x433   : > { %v2865_v51 = vsel %vm506_vm4, %v2849_v36, %v2850_v62  ;;  %v3813_v46 = vsel %vm506_vm4, %v3797_v22, %v3798_v52 }
 0x434   : > { %v2866_v34 = vsel %vm508_vm9, %v7569_v63, %v2865_v51  ;;  %v3814_v29 = vsel %vm1496_vm12, %v3774_v41, %v3813_v46  ;;  %v3001_v11 = vsel %vm506_vm4, %v2985_v2, %v2986_v61  ;;  %v8585_v61 = vld [vmem:[#allocation5_spill] sm:$0xff]  ;;  %v3151_v46 = vrot.slane %v7696_v42, 4 }
 0x435   : > { %2887 = vst [vmem:[#allocation3 + $0x10] sm:$0xff] %v2866_v34  ;;  %v3002_v47 = vsel %vm645_vm5, %v7642_v3, %v3001_v11  ;;  %v2991_v3 = vrot.slane %v7681_v38, 4  ;;  %v3584_v51 = vmul.f32 %v7579_v1, %v8585_v61  ;;  %v2987_v11 = vrot.slane %v7615_v56, 4 }
 0x436   : > { %3833 = vst [vmem:[#allocation3 + $0x1e0] sm:$0xff] %v3814_v29  ;;  %3763 = vrot.lane.b32.xlu0 %v8581_v60, %s6123_s14  ;;  %3761 = vrot.lane.b32.xlu2 %v7469_v48, %s6123_s14  ;;  %v8583_v48 = vld [vmem:[#allocation7_spill] sm:$0xff] }
 0x437   : > { %3023 = vst [vmem:[#allocation3 + $0x50] sm:$0xff] %v3002_v47  ;;  %3465 = vrot.lane.b32.xlu1 %v3431_v5, %s6119_s10  ;;  %v3882_v54 = vmul.f32 %v8583_v48, %v7419_v16 }
 0x438   : > { %v3280_v30 = vpop.permute.xlu0 %3279  ;;  %v2972_v63 = vpop.permute.xlu2 %2971 }
 0x439   : > { %v3306_v27 = vrot.slane %v3280_v30, 4  ;;  %v2992_v18 = vrot.slane %v2972_v63, 4  ;;  %v3120_v17 = vpop.permute.xlu1 %3119  ;;  %v3899_v62 = vpack.c.bf16 %v3883_v19, %v3882_v54  ;;  %v2857_v54 = vrot.slane %v7710_v50, 4 }
 0x43a   : > { %v3146_v14 = vrot.slane %v3120_v17, 4 }
 0x43b   : > { %v3321_v10 = vsel %vm506_vm4, %v3305_v6, %v3306_v27  ;;  %v3007_v41 = vsel %vm506_vm4, %v2991_v3, %v2992_v18 }
 0x43c   : > { %v3322_v40 = vsel %vm987_vm11, %v7593_v23, %v3321_v10  ;;  %v3008_v52 = vsel %vm645_vm5, %v7681_v38, %v3007_v41  ;;  %v3161_v36 = vsel %vm506_vm4, %v3145_v12, %v3146_v14  ;;  %v3880_v38 = vmul.f32 %v7579_v1, %v8582_v7  ;;  %v8587_v12 = vld [vmem:[#allocation6_spill] sm:$0xff] }
 0x43d   : > { %3343 = vst [vmem:[#allocation3 + $0xd0] sm:$0xff] %v3322_v40  ;;  %v3162_v22 = vsel %vm817_vm10, %v7659_v58, %v3161_v36  ;;  %v3147_v58 = vrot.slane %v7629_v55, 4  ;;  %v3879_v1 = vmul.f32 %v8583_v48, %v7408_v31  ;;  %v2989_v14 = vrot.slane %v7644_v24, 4 }
 0x43e   : > { %3026 = vst [vmem:[#allocation3 + $0x68] sm:$0xff] %v3008_v52  ;;  %3945 = vrot.lane.b32.xlu0 %v3899_v62, %s6117_s8  ;;  %3943 = vrot.lane.b32.xlu2 %v8584_v21, %s6117_s8  ;;  %v2853_v40 = vrot.slane %v7673_v37, 4  ;;  %v3873_v36 = vmul.f32 %v8583_v48, %v7367_v33 }
 0x43f   : > { %3183 = vst [vmem:[#allocation3 + $0x90] sm:$0xff] %v3162_v22  ;;  %3759 = vrot.lane.b32.xlu1 %v8581_v60, %s6123_s14  ;;  %v8586_v60 = vld [vmem:[#allocation4_spill] sm:$0xff]  ;;  %v3897_v17 = vpack.c.bf16 %v3880_v38, %v3879_v1 }
 0x440   : > { %v3124_v23 = vpop.permute.xlu0 %3123  ;;  %v3132_v2 = vpop.permute.xlu2 %3131  ;;  %v3583_v5 = vmul.f32 %v8586_v60, %v7408_v31 }
 0x441   : > { %v3148_v59 = vrot.slane %v3124_v23, 4  ;;  %v3152_v34 = vrot.slane %v3132_v2, 4  ;;  %v2964_v29 = vpop.permute.xlu1 %2963 }
 0x442   : > { %v2988_v47 = vrot.slane %v2964_v29, 4  ;;  %v3601_v27 = vpack.c.bf16 %v3584_v51, %v3583_v5  ;;  %v3309_v5 = vrot.slane %v7690_v53, 4 }
 0x443   : > { %v3163_v30 = vsel %vm506_vm4, %v3147_v58, %v3148_v59  ;;  %v3167_v63 = vsel %vm506_vm4, %v3151_v46, %v3152_v34  ;;  %v3877_v59 = vmul.f32 %v7550_v35, %v8582_v7  ;;  %v3313_v34 = vrot.slane %v7726_v39, 4 }
 0x444   : > { %v3164_v19 = vsel %vm817_vm10, %v7629_v55, %v3163_v30  ;;  %v3168_v6 = vsel %vm817_vm10, %v7696_v42, %v3167_v63  ;;  %v3003_v3 = vsel %vm506_vm4, %v2987_v11, %v2988_v47  ;;  %v3874_v42 = vmul.f32 %v7529_v4, %v8582_v7 }
 0x445   : > { %3184 = vst [vmem:[#allocation3 + $0x98] sm:$0xff] %v3164_v19  ;;  %v3004_v18 = vsel %vm645_vm5, %v7615_v56, %v3003_v3  ;;  %v3876_v63 = vmul.f32 %v8583_v48, %v7383_v8  ;;  %v3586_v19 = vmul.f32 %v8586_v60, %v7419_v16 }
 0x446   : > { %3186 = vst [vmem:[#allocation3 + $0xa8] sm:$0xff] %v3168_v6  ;;  %3647 = vrot.lane.b32.xlu0 %v8587_v12, %s6118_s9  ;;  %3645 = vrot.lane.b32.xlu2 %v3601_v27, %s6118_s9  ;;  %v3893_v51 = vpack.c.bf16 %v3874_v42, %v3873_v36  ;;  %v3153_v42 = vrot.slane %v7744_v32, 4 }
 0x447   : > { %3024 = vst [vmem:[#allocation3 + $0x58] sm:$0xff] %v3004_v18  ;;  %3941 = vrot.lane.b32.xlu1 %v3897_v17, %s6117_s8  ;;  %v3895_v18 = vpack.c.bf16 %v3877_v59, %v3876_v63 }
 0x448   : > { %v2968_v31 = vpop.permute.xlu0 %2967  ;;  %v2840_v55 = vpop.permute.xlu2 %2839 }
 0x449   : > { %v2990_v56 = vrot.slane %v2968_v31, 4  ;;  %v2858_v10 = vrot.slane %v2840_v55, 4  ;;  %v2832_v41 = vpop.permute.xlu1 %2831  ;;  %v2855_v55 = vrot.slane %v7675_v28, 4 }
 0x44a   : > { %v2854_v52 = vrot.slane %v2832_v41, 4  ;;  %v3580_v41 = vmul.f32 %v8586_v60, %v7383_v8  ;;  %v3506_v8 = vrot.slane %v7506_v43, 4 }
 0x44b   : > { %v3005_v62 = vsel %vm506_vm4, %v2989_v14, %v2990_v56  ;;  %v2873_v22 = vsel %vm506_vm4, %v2857_v54, %v2858_v10  ;;  %v3502_v56 = vrot.slane %v7471_v9, 4 }
 0x44c   : > { %v3006_v23 = vsel %vm645_vm5, %v7644_v24, %v3005_v62  ;;  %v2874_v2 = vsel %vm508_vm9, %v7710_v50, %v2873_v22  ;;  %v2869_v38 = vsel %vm506_vm4, %v2853_v40, %v2854_v52  ;;  %v3587_v50 = vmul.f32 %v7601_v0, %v8585_v61 }
 0x44d   : > { %3025 = vst [vmem:[#allocation3 + $0x60] sm:$0xff] %v3006_v23  ;;  %v2870_v58 = vsel %vm508_vm9, %v7673_v37, %v2869_v38  ;;  %v3149_v37 = vrot.slane %v7661_v57, 4  ;;  %v3868_v23 = vmul.f32 %v7482_v44, %v8582_v7 }
 0x44e   : > { %2891 = vst [vmem:[#allocation3 + $0x30] sm:$0xff] %v2874_v2  ;;  %3933 = vrot.lane.b32.xlu0 %v3893_v51, %s6117_s8  ;;  %3651 = vrot.lane.b32.xlu2 %v8587_v12, %s6118_s9  ;;  %v3603_v31 = vpack.c.bf16 %v3587_v50, %v3586_v19  ;;  %v8588_v2 = vld [vmem:[#allocation16_spill] sm:$0xff]  ;;  %v3572_v19 = vmul.f32 %v7482_v44, %v8585_v61 }
 0x44f   : > { %2889 = vst [vmem:[#allocation3 + $0x20] sm:$0xff] %v2870_v58  ;;  %3947 = vrot.lane.b32.xlu1 %v8584_v21, %s6117_s8  ;;  %v3311_v38 = vrot.slane %v8588_v2, 4  ;;  %v8589_v50 = vld [vmem:[#allocation12_spill] sm:$0xff] }
 0x450   : > { %v3128_v24 = vpop.permute.xlu0 %3127  ;;  %v3296_v46 = vpop.permute.xlu2 %3295  ;;  %v3800_v59 = vrot.slane %v8589_v50, 4 }
 0x451   : > { %v3150_v29 = vrot.slane %v3128_v24, 4  ;;  %v3314_v11 = vrot.slane %v3296_v46, 4  ;;  %v3288_v47 = vpop.permute.xlu1 %3287  ;;  %v3578_v46 = vmul.f32 %v7529_v4, %v8585_v61 }
 0x452   : > { %v3310_v30 = vrot.slane %v3288_v47, 4 }
 0x453   : > { %v3165_v1 = vsel %vm506_vm4, %v3149_v37, %v3150_v29  ;;  %v3329_v0 = vsel %vm506_vm4, %v3313_v34, %v3314_v11  ;;  %v3867_v34 = vmul.f32 %v8583_v48, %v7318_v26  ;;  %v3577_v11 = vmul.f32 %v8586_v60, %v7367_v33 }
 0x454   : > { %v3166_v6 = vsel %vm817_vm10, %v7661_v57, %v3165_v1  ;;  %v3330_v3 = vsel %vm987_vm11, %v7726_v39, %v3329_v0  ;;  %v3325_v27 = vsel %vm506_vm4, %v3309_v5, %v3310_v30  ;;  %v3581_v39 = vmul.f32 %v7550_v35, %v8585_v61 }
 0x455   : > { %3185 = vst [vmem:[#allocation3 + $0xa0] sm:$0xff] %v3166_v6  ;;  %v3326_v17 = vsel %vm987_vm11, %v7690_v53, %v3325_v27  ;;  %v3889_v30 = vpack.c.bf16 %v3868_v23, %v3867_v34  ;;  %v3597_v1 = vpack.c.bf16 %v3578_v46, %v3577_v11  ;;  %v8590_v6 = vld [vmem:[#allocation15_spill] sm:$0xff]  ;;  %v8591_v27 = vld [vmem:[#allocation13_spill] sm:$0xff]  ;;  %v8595_v23 = vld [vmem:[#allocation10_spill] sm:$0xff]  ;;  %v3865_v34 = vmul.f32 %v7460_v15, %v8582_v7 }
 0x456   : > { %3347 = vst [vmem:[#allocation3 + $0xf0] sm:$0xff] %v3330_v3  ;;  %3939 = vrot.lane.b32.xlu0 %v8584_v21, %s6117_s8  ;;  %3937 = vrot.lane.b32.xlu2 %v3895_v18, %s6117_s8  ;;  %v3599_v22 = vpack.c.bf16 %v3581_v39, %v3580_v41  ;;  %v3504_v3 = vrot.slane %v8590_v6, 4  ;;  %v3804_v18 = vrot.slane %v8591_v27, 4 }
 0x457   : > { %3345 = vst [vmem:[#allocation3 + $0xe0] sm:$0xff] %v3326_v17  ;;  %3649 = vrot.lane.b32.xlu1 %v3603_v31, %s6118_s9 }
 0x458   : > { %v2836_v16 = vpop.permute.xlu0 %2835  ;;  %v3136_v57 = vpop.permute.xlu2 %3135 }
 0x459   : > { %v2856_v53 = vrot.slane %v2836_v16, 4  ;;  %v3154_v14 = vrot.slane %v3136_v57, 4  ;;  %v3478_v54 = vpop.permute.xlu1 %3477  ;;  %v8592_v57 = vld [vmem:[#allocation17_spill] sm:$0xff] }
 0x45a   : > { %v3501_v10 = vrot.slane %v3478_v54, 4  ;;  %v2993_v39 = vrot.slane %v8592_v57, 4 }
 0x45b   : > { %v2871_v40 = vsel %vm506_vm4, %v2855_v55, %v2856_v53  ;;  %v3169_v52 = vsel %vm506_vm4, %v3153_v42, %v3154_v14  ;;  %v3571_v42 = vmul.f32 %v8586_v60, %v7318_v26 }
 0x45c   : > { %v2872_v35 = vsel %vm508_vm9, %v7675_v28, %v2871_v40  ;;  %v3170_v36 = vsel %vm817_vm10, %v7744_v32, %v3169_v52  ;;  %v3517_v62 = vsel %vm506_vm4, %v3501_v10, %v3502_v56  ;;  %v3575_v52 = vmul.f32 %v7504_v20, %v8585_v61 }
 0x45d   : > { %2890 = vst [vmem:[#allocation3 + $0x28] sm:$0xff] %v2872_v35  ;;  %v3518_v9 = vsel %vm877_vm8, %v3478_v54, %v3517_v62  ;;  %v3593_v10 = vpack.c.bf16 %v3572_v19, %v3571_v42  ;;  %v8593_v35 = vld [vmem:[#allocation14_spill] sm:$0xff] }
 0x45e   : > { %3187 = vst [vmem:[#allocation3 + $0xb0] sm:$0xff] %v3170_v36  ;;  %3641 = vrot.lane.b32.xlu0 %v3599_v22, %s6118_s9  ;;  %3639 = vrot.lane.b32.xlu2 %v8587_v12, %s6118_s9  ;;  %v3802_v36 = vrot.slane %v8593_v35, 4 }
 0x45f   : > { %3537 = vst [vmem:[#allocation3 + $0x160] sm:$0xff] %v3518_v9  ;;  %3935 = vrot.lane.b32.xlu1 %v8584_v21, %s6117_s8  ;;  %v3871_v9 = vmul.f32 %v7504_v20, %v8582_v7 }
 0x460   : > { %v3292_v28 = vpop.permute.xlu0 %3291  ;;  %v3486_v32 = vpop.permute.xlu2 %3485 }
 0x461   : > { %v3312_v51 = vrot.slane %v3292_v28, 4  ;;  %v3505_v58 = vrot.slane %v3486_v32, 4  ;;  %v3778_v24 = vpop.permute.xlu1 %3777 }
 0x462   : > { %v3799_v37 = vrot.slane %v3778_v24, 4 }
 0x463   : > { %v3327_v43 = vsel %vm506_vm4, %v3311_v38, %v3312_v51  ;;  %v3521_v29 = vsel %vm506_vm4, %v3505_v58, %v3506_v8  ;;  %v8594_v8 = vld [vmem:[#allocation19_spill] sm:$0xff]  ;;  %v3870_v51 = vmul.f32 %v8583_v48, %v8595_v23 }
 0x464   : > { %v3328_v47 = vsel %vm987_vm11, %v8588_v2, %v3327_v43  ;;  %v3522_v5 = vsel %vm877_vm8, %v3486_v32, %v3521_v29  ;;  %v3815_v4 = vsel %vm506_vm4, %v3799_v37, %v3800_v59  ;;  %v2859_v28 = vrot.slane %v8594_v8, 4  ;;  %v8596_v43 = vld [vmem:[#allocation18_spill] sm:$0xff] }
 0x465   : > { %3346 = vst [vmem:[#allocation3 + $0xe8] sm:$0xff] %v3328_v47  ;;  %v3816_v63 = vsel %vm1496_vm12, %v3778_v24, %v3815_v4  ;;  %v3574_v2 = vmul.f32 %v8586_v60, %v8595_v23  ;;  %v3891_v50 = vpack.c.bf16 %v3871_v9, %v3870_v51  ;;  %v2995_v29 = vrot.slane %v8596_v43, 4  ;;  %v8598_v51 = vld [vmem:[#allocation11_spill] sm:$0xff] }
 0x466   : > { %3539 = vst [vmem:[#allocation3 + $0x170] sm:$0xff] %v3522_v5  ;;  %3927 = vrot.lane.b32.xlu0 %v8584_v21, %s6117_s8  ;;  %3925 = vrot.lane.b32.xlu2 %v3889_v30, %s6117_s8  ;;  %v8597_v5 = vld [vmem:[#allocation20_spill] sm:$0xff] }
 0x467   : > { %3834 = vst [vmem:[#allocation3 + $0x1e8] sm:$0xff] %v3816_v63  ;;  %3637 = vrot.lane.b32.xlu1 %v3597_v1, %s6118_s9  ;;  %v3595_v46 = vpack.c.bf16 %v3575_v52, %v3574_v2  ;;  %v3315_v4 = vrot.slane %v8597_v5, 4  ;;  %v3864_v63 = vmul.f32 %v8583_v48, %v7298_v45 }
 0x468   : > { %v3482_v33 = vpop.permute.xlu0 %3481  ;;  %v3786_v0 = vpop.permute.xlu2 %3785 }
 0x469   : > { %v3503_v17 = vrot.slane %v3482_v33, 4  ;;  %v3803_v31 = vrot.slane %v3786_v0, 4  ;;  %v2976_v16 = vpop.permute.xlu1 %2975  ;;  %v3887_v19 = vpack.c.bf16 %v3865_v34, %v3864_v63  ;;  %v5661_v34 = vld [vmem:[#allocation3 + $0xd0] sm:$0xf]  ;;  %v5589_v63 = vld [vmem:[#allocation3 + $0x40] sm:$0xf] }
 0x46a   : > { %v2994_v55 = vrot.slane %v2976_v16, 4 }
 0x46b   : > { %v3519_v53 = vsel %vm506_vm4, %v3503_v17, %v3504_v3  ;;  %v3819_v14 = vsel %vm506_vm4, %v3803_v31, %v3804_v18 }
 0x46c   : > { %v3520_v54 = vsel %vm877_vm8, %v3482_v33, %v3519_v53  ;;  %v3820_v44 = vsel %vm1496_vm12, %v3786_v0, %v3819_v14  ;;  %v3009_v56 = vsel %vm506_vm4, %v2993_v39, %v2994_v55  ;;  %v3566_v39 = vmul.f32 %v7436_v13, %v8585_v61 }
 0x46d   : > { %3538 = vst [vmem:[#allocation3 + $0x168] sm:$0xff] %v3520_v54  ;;  %v3010_v41 = vsel %vm645_vm5, %v8592_v57, %v3009_v56  ;;  %v5797_v57 = vld [vmem:[#allocation3 + $0x1e0] sm:$0xf]  ;;  %v3862_v53 = vmul.f32 %v7436_v13, %v8582_v7  ;;  %v3155_v14 = vrot.slane %v7759_v49, 4  ;;  %v3861_v56 = vmul.f32 %v8583_v48, %v7275_v25  ;;  %v5677_v7 = vld [vmem:[#allocation3 + $0xf0] sm:$0xf] }
 0x46e   : > { %3836 = vst [vmem:[#allocation3 + $0x1f8] sm:$0xff] %v3820_v44  ;;  %3629 = vrot.lane.b32.xlu0 %v3593_v10, %s6118_s9  ;;  %3931 = vrot.lane.b32.xlu2 %v8584_v21, %s6117_s8  ;;  %v6028_v17 = vld [vmem:[#allocation3 + $0x1e4] sm:$0xf0]  ;;  %v3565_v44 = vmul.f32 %v8586_v60, %v7275_v25  ;;  %v5605_v25 = vld [vmem:[#allocation3 + $0x60] sm:$0xf] }
 0x46f   : > { %3027 = vst [vmem:[#allocation3 + $0x70] sm:$0xff] %v3010_v41  ;;  %3643 = vrot.lane.b32.xlu1 %v8587_v12, %s6118_s9  ;;  %v5798_v42 = vor.u32 %v6028_v17, %v5797_v57  ;;  %v5996_v48 = vld [vmem:[#allocation3 + $0xe4] sm:$0xf0] }
 0x470   : > { %v3782_v26 = vpop.permute.xlu0 %3781  ;;  %v7985_v40 = vpop.permute.xlu2 %3473  ;;  %v3589_v41 = vpack.c.bf16 %v3566_v39, %v3565_v44  ;;  %v3568_v39 = vmul.f32 %v8586_v60, %v7298_v45  ;;  %v5645_v44 = vld [vmem:[#allocation3 + $0xb0] sm:$0xf] }
 0x471   : > { %v3801_v62 = vrot.slane %v3782_v26, 4  ;;  %v2844_v22 = vpop.permute.xlu1 %2843 }
 0x472   : > { %v2860_v32 = vrot.slane %v2844_v22, 4 }
 0x473   : > { %v3817_v38 = vsel %vm506_vm4, %v3801_v62, %v3802_v36  ;;  %v3885_v36 = vpack.c.bf16 %v3862_v53, %v3861_v56  ;;  %v5741_v56 = vld [vmem:[#allocation3 + $0x170] sm:$0xf] }
 0x474   : > { %v3818_v58 = vsel %vm1496_vm12, %v3782_v26, %v3817_v38  ;;  %v2875_v24 = vsel %vm506_vm4, %v2859_v28, %v2860_v32  ;;  %v3499_v28 = vrot.slane %v7985_v40, 4  ;;  %v5669_v38 = vld [vmem:[#allocation3 + $0xe0] sm:$0xf] }
 0x475   : > { %3835 = vst [vmem:[#allocation3 + $0x1f0] sm:$0xff] %v3818_v58  ;;  %v2876_v20 = vsel %vm508_vm9, %v8594_v8, %v2875_v24  ;;  %v6030_v3 = vld [vmem:[#allocation3 + $0x1f4] sm:$0xf0]  ;;  %v3508_v58 = vrot.slane %v8598_v51, 4 }
 0x476   : > { %2892 = vst [vmem:[#allocation3 + $0x38] sm:$0xff] %v2876_v20  ;;  %3635 = vrot.lane.b32.xlu0 %v8587_v12, %s6118_s9  ;;  %3633 = vrot.lane.b32.xlu2 %v3595_v46, %s6118_s9  ;;  %v5613_v26 = vld [vmem:[#allocation3 + $0x70] sm:$0xf]  ;;  %v5670_v46 = vor.u32 %v5996_v48, %v5669_v38  ;;  %v5978_v20 = vld [vmem:[#allocation3 + $0x54] sm:$0xf0] }
 0x477   : > { %3929 = vrot.lane.b32.xlu1 %v3891_v50, %s6117_s8  ;;  %v5733_v48 = vld [vmem:[#allocation3 + $0x160] sm:$0xf]  ;;  %v5986_v38 = vld [vmem:[#allocation3 + $0x94] sm:$0xf0] }
 0x478   : > { %v2980_v59 = vpop.permute.xlu0 %2979  ;;  %v8006_v37 = vpop.permute.xlu2 %3767 }
 0x479   : > { %v2996_v11 = vrot.slane %v2980_v59, 4  ;;  %v3300_v47 = vpop.permute.xlu1 %3299  ;;  %v4855_v59 = vld [vmem:[%s8537_s5] sm:$0xff] }
 0x47a   : > { %v3316_v30 = vrot.slane %v3300_v47, 4 }
 0x47b   : > { %v3011_v1 = vsel %vm506_vm4, %v2995_v29, %v2996_v11  ;;  %v5597_v11 = vld [vmem:[#allocation3 + $0x50] sm:$0xf] }
 0x47c   : > { %v3012_v33 = vsel %vm645_vm5, %v8596_v43, %v3011_v1  ;;  %v3331_v0 = vsel %vm506_vm4, %v3315_v4, %v3316_v30  ;;  %v5805_v6 = vld [vmem:[#allocation3 + $0x1f0] sm:$0xf]  ;;  %v5994_v4 = vld [vmem:[#allocation3 + $0xd4] sm:$0xf0] }
 0x47d   : > { %3028 = vst [vmem:[#allocation3 + $0x78] sm:$0xff] %v3012_v33  ;;  %v3332_v27 = vsel %vm987_vm11, %v8597_v5, %v3331_v0  ;;  %v5806_v18 = vor.u32 %v6030_v3, %v5805_v6  ;;  %v5598_v5 = vor.u32 %v5978_v20, %v5597_v11  ;;  %v5662_v30 = vor.u32 %v5994_v4, %v5661_v34  ;;  %v5976_v33 = vld [vmem:[#allocation3 + $0x44] sm:$0xf0]  ;;  %v5653_v6 = vld [vmem:[#allocation3 + $0xc0] sm:$0xf] }
 0x47e   : > { %3348 = vst [vmem:[#allocation3 + $0xf8] sm:$0xff] %v3332_v27  ;;  %3921 = vrot.lane.b32.xlu0 %v3887_v19, %s6117_s8  ;;  %3919 = vrot.lane.b32.xlu2 %v8584_v21, %s6117_s8  ;;  %v5590_v19 = vor.u32 %v5976_v33, %v5589_v63  ;;  %v3569_v3 = vmul.f32 %v7460_v15, %v8585_v61  ;;  %v5974_v57 = vld [vmem:[#allocation3 + $0x34] sm:$0xf0] }
 0x47f   : > { %3631 = vrot.lane.b32.xlu1 %v8587_v12, %s6118_s9  ;;  %4652 = vmatpush.bf16.msrb.mxu1 %v5806_v18  ;;  %v5970_v20 = vld [vmem:[#allocation3 + $0x14] sm:$0xf0] }
 0x480   : > { %v8025_v31 = vpop.permute.xlu0 %3469  ;;  %v8027_v16 = vpop.permute.xlu2 %3461 }
 0x481   : > { %v3140_v55 = vpop.permute.xlu1 %3139  ;;  %v3497_v27 = vrot.slane %v8025_v31, 4 }
 0x482   : > { %v3156_v54 = vrot.slane %v3140_v55, 4  ;;  %v4857_v55 = vld [vmem:[%s8537_s5 + $0x10] sm:$0xff] }
 0x483   : > { %4653 = vmatpush.bf16.msrb.mxu1 %v5798_v42  ;;  %v5581_v42 = vld [vmem:[#allocation3 + $0x30] sm:$0xf] }
 0x484   : > { %v3171_v10 = vsel %vm506_vm4, %v3155_v14, %v3156_v54  ;;  %v5982_v52 = vld [vmem:[#allocation3 + $0x74] sm:$0xf0]  ;;  %v3591_v14 = vpack.c.bf16 %v3569_v3, %v3568_v39  ;;  %v5582_v54 = vor.u32 %v5974_v57, %v5581_v42  ;;  %v5615_v63 = vld [vmem:[#allocation3 + $0x78] sm:$0xf0]  ;;  %v4919_v57 = vld [vmem:[%s8538_s6] sm:$0xff] }
 0x485   : > { %v3172_v35 = vsel %vm817_vm10, %v7759_v49, %v3171_v10  ;;  %v5614_v13 = vor.u32 %v5982_v52, %v5613_v26  ;;  %v5998_v62 = vld [vmem:[#allocation3 + $0xf4] sm:$0xf0]  ;;  %v5980_v49 = vld [vmem:[#allocation3 + $0x64] sm:$0xf0]  ;;  %v5637_v26 = vld [vmem:[#allocation3 + $0xa0] sm:$0xf] }
 0x486   : > { %3188 = vst [vmem:[#allocation3 + $0xb8] sm:$0xff] %v3172_v35  ;;  %3623 = vrot.lane.b32.xlu0 %v8587_v12, %s6118_s9  ;;  %3621 = vrot.lane.b32.xlu2 %v3589_v41, %s6118_s9  ;;  %v5678_v22 = vor.u32 %v5998_v62, %v5677_v7  ;;  %v5606_v2 = vor.u32 %v5980_v49, %v5605_v25  ;;  %v5972_v41 = vld [vmem:[#allocation3 + $0x24] sm:$0xf0]  ;;  %v3794_v35 = vrot.slane %v8006_v37, 4  ;;  %v4861_v37 = vld [vmem:[%s8537_s5 + $0x30] sm:$0xff]  ;;  %v4859_v39 = vld [vmem:[%s8537_s5 + $0x20] sm:$0xff] }
 0x487   : > { %3917 = vrot.lane.b32.xlu1 %v3885_v36, %s6117_s8  ;;  %4565 = vmatpush.bf16.msra.mxu2 %v5614_v13  ;;  %v6012_v52 = vld [vmem:[#allocation3 + $0x164] sm:$0xf0]  ;;  %v5573_v36 = vld [vmem:[#allocation3 + $0x20] sm:$0xf]  ;;  %v3493_v13 = vrot.slane %v8027_v16, 4 }
 0x488   : > { %4594 = vmatpush.bf16.msra.mxu3 %v5678_v22  ;;  %v3476_v9 = vpop.permute.xlu0 %3475  ;;  %v8045_v8 = vpop.permute.xlu2 %3467  ;;  %v5574_v22 = vor.u32 %v5972_v41, %v5573_v36  ;;  %v5988_v25 = vld [vmem:[#allocation3 + $0xa4] sm:$0xf0]  ;;  %v5607_v42 = vld [vmem:[#allocation3 + $0x68] sm:$0xf0] }
 0x489   : > { %v3500_v32 = vrot.slane %v3476_v9, 4  ;;  %v3490_v23 = vpop.permute.xlu1 %3489  ;;  %v5638_v49 = vor.u32 %v5988_v25, %v5637_v26 }
 0x48a   : > { %v3507_v24 = vrot.slane %v3490_v23, 4 }
 0x48b   : > { %v3515_v50 = vsel %vm506_vm4, %v3499_v28, %v3500_v32  ;;  %4566 = vmatpush.bf16.msra.mxu2 %v5606_v2  ;;  %v5734_v28 = vor.u32 %v6012_v52, %v5733_v48  ;;  %v5565_v32 = vld [vmem:[#allocation3 + $0x10] sm:$0xf]  ;;  %v4860_v2 = vld [vmem:[%s8537_s5 + $0x28] sm:$0xff]  ;;  %v4923_v52 = vld [vmem:[%s8538_s6 + $0x20] sm:$0xff] }
 0x48c   : > { %v3516_v43 = vsel %vm877_vm8, %v7985_v40, %v3515_v50  ;;  %v3523_v29 = vsel %vm506_vm4, %v3507_v24, %v3508_v58  ;;  %4595 = vmatpush.bf16.msra.mxu3 %v5670_v46  ;;  %v5992_v40 = vld [vmem:[#allocation3 + $0xc4] sm:$0xf0]  ;;  %v5629_v50 = vld [vmem:[#allocation3 + $0x90] sm:$0xf]  ;;  %v5566_v34 = vor.u32 %v5970_v20, %v5565_v32  ;;  %v4926_v20 = vld [vmem:[%s8538_s6 + $0x38] sm:$0xff] }
 0x48d   : > { %3536 = vst [vmem:[#allocation3 + $0x158] sm:$0xff] %v3516_v43  ;;  %v3524_v47 = vsel %vm877_vm8, %v3490_v23, %v3523_v29  ;;  %v5654_v17 = vor.u32 %v5992_v40, %v5653_v6  ;;  %v5990_v15 = vld [vmem:[#allocation3 + $0xb4] sm:$0xf0]  ;;  %v4856_v46 = vld [vmem:[%s8537_s5 + $0x8] sm:$0xff] }
 0x48e   : > { %3540 = vst [vmem:[#allocation3 + $0x178] sm:$0xff] %v3524_v47  ;;  %4865 = vperm.xlu0 %6089, %v4855_v59   ;;  %3627 = vrot.lane.b32.xlu2 %v8587_v12, %s6118_s9  ;;  %v5646_v45 = vor.u32 %v5990_v15, %v5645_v44  ;;  %v5968_v47 = vld [vmem:[#allocation3 + $0x4] sm:$0xf0] }
 0x48f   : > { %3923 = vrot.lane.b32.xlu1 %v8584_v21, %s6117_s8  ;;  %4567 = vmatpush.bf16.msra.mxu2 %v5598_v5  ;;  %v4858_v21 = vld [vmem:[%s8537_s5 + $0x18] sm:$0xff]  ;;  %v5984_v5 = vld [vmem:[#allocation3 + $0x84] sm:$0xf0] }
 0x490   : > { %4596 = vmatpush.bf16.msra.mxu3 %v5662_v30  ;;  %v8061_v1 = vpop.permute.xlu0 %3769  ;;  %v8066_v12 = vpop.permute.xlu2 %3761  ;;  %v5557_v30 = vld [vmem:[#allocation3] sm:$0xf] }
 0x491   : > { %v3472_v0 = vpop.permute.xlu1 %3471  ;;  %v5558_v33 = vor.u32 %v5968_v47, %v5557_v30  ;;  %v3791_v44 = vrot.slane %v8066_v12, 4 }
 0x492   : > { %v3498_v18 = vrot.slane %v3472_v0, 4  ;;  %v5621_v0 = vld [vmem:[#allocation3 + $0x80] sm:$0xf] }
 0x493   : > { %4568 = vmatpush.bf16.msra.mxu2 %v5590_v19  ;;  %v3795_v19 = vrot.slane %v8061_v1, 4  ;;  %v5622_v3 = vor.u32 %v5984_v5, %v5621_v0  ;;  %v6006_v0 = vld [vmem:[#allocation3 + $0x134] sm:$0xf0] }
 0x494   : > { %v3513_v61 = vsel %vm506_vm4, %v3497_v27, %v3498_v18  ;;  %4597 = vmatpush.bf16.msra.mxu3 %v5654_v17  ;;  %v6010_v29 = vld [vmem:[#allocation3 + $0x154] sm:$0xf0]  ;;  %v5981_v27 = vld [vmem:[#allocation3 + $0x74] sm:$0xf]  ;;  %v4920_v17 = vld [vmem:[%s8538_s6 + $0x8] sm:$0xff] }
 0x495   : > { %v3514_v53 = vsel %vm877_vm8, %v8025_v31, %v3513_v61  ;;  %v6014_v10 = vld [vmem:[#allocation3 + $0x174] sm:$0xf0]  ;;  %v5618_v18 = vor.u32 %v5981_v27, %v5615_v63 }
 0x496   : > { %3535 = vst [vmem:[#allocation3 + $0x150] sm:$0xff] %v3514_v53  ;;  %4880 = vperm.xlu0 %6089, %v4858_v21   ;;  %4875 = vperm.xlu2 %6088, %v4857_v55   ;;  %v5742_v60 = vor.u32 %v6014_v10, %v5741_v56  ;;  %v5979_v55 = vld [vmem:[#allocation3 + $0x64] sm:$0xf] }
 0x497   : > { %3625 = vrot.lane.b32.xlu1 %v3591_v14, %s6118_s9  ;;  %4569 = vmatpush.bf16.msra.mxu2 %v5582_v54  ;;  %v5610_v53 = vor.u32 %v5979_v55, %v5607_v42  ;;  %v5599_v54 = vld [vmem:[#allocation3 + $0x58] sm:$0xf0] }
 0x498   : > { %4598 = vmatpush.bf16.msra.mxu3 %v5646_v45  ;;  %4623 = vmatpush.bf16.msrb.mxu0 %v5742_v60  ;;  %v3464_v31 = vpop.permute.xlu0 %3463  ;;  %v8091_v58 = vpop.permute.xlu2 %3943  ;;  %v3496_v45 = vrot.slane %v8045_v8, 4  ;;  %v4862_v8 = vld [vmem:[%s8537_s5 + $0x38] sm:$0xff] }
 0x499   : > { %v3494_v7 = vrot.slane %v3464_v31, 4  ;;  %v3766_v62 = vpop.permute.xlu1 %3765  ;;  %v5567_v55 = vld [vmem:[#allocation3 + $0x18] sm:$0xf0] }
 0x49a   : > { %v3793_v9 = vrot.slane %v3766_v62, 4 }
 0x49b   : > { %v3509_v23 = vsel %vm506_vm4, %v3493_v13, %v3494_v7  ;;  %4570 = vmatpush.bf16.msra.mxu2 %v5574_v22  ;;  %v5975_v13 = vld [vmem:[#allocation3 + $0x44] sm:$0xf]  ;;  %v5591_v7 = vld [vmem:[#allocation3 + $0x48] sm:$0xf0] }
 0x49c   : > { %v3510_v51 = vsel %vm877_vm8, %v8027_v16, %v3509_v23  ;;  %v3809_v24 = vsel %vm506_vm4, %v3793_v9, %v3794_v35  ;;  %4599 = vmatpush.bf16.msra.mxu3 %v5638_v49  ;;  %4624 = vmatpush.bf16.msrb.mxu0 %v5734_v28  ;;  %v5630_v16 = vor.u32 %v5986_v38, %v5629_v50  ;;  %v4922_v35 = vld [vmem:[%s8538_s6 + $0x18] sm:$0xff]  ;;  %v4925_v50 = vld [vmem:[%s8538_s6 + $0x30] sm:$0xff] }
 0x49d   : > { %3533 = vst [vmem:[#allocation3 + $0x140] sm:$0xff] %v3510_v51  ;;  %v3810_v59 = vsel %vm1496_vm12, %v3766_v62, %v3809_v24  ;;  %v5725_v43 = vld [vmem:[#allocation3 + $0x150] sm:$0xf]  ;;  %v5479_v9 = vld [vmem:[%s8536_s4 + $0x14] sm:$0xf0]  ;;  %v5594_v49 = vor.u32 %v5975_v13, %v5591_v7 }
 0x49e   : > { %3831 = vst [vmem:[#allocation3 + $0x1d0] sm:$0xff] %v3810_v59  ;;  %4895 = vperm.xlu0 %6089, %v4861_v37   ;;  %4890 = vperm.xlu2 %6088, %v4860_v2   ;;  %v5726_v11 = vor.u32 %v6010_v29, %v5725_v43  ;;  %v5583_v37 = vld [vmem:[#allocation3 + $0x38] sm:$0xf0]  ;;  %v5973_v24 = vld [vmem:[#allocation3 + $0x34] sm:$0xf] }
 0x49f   : > { %4870 = vperm.xlu1 %6090, %v4856_v46   ;;  %4571 = vmatpush.bf16.msra.mxu2 %v5566_v34  ;;  %v5586_v46 = vor.u32 %v5973_v24, %v5583_v37  ;;  %v5575_v59 = vld [vmem:[#allocation3 + $0x28] sm:$0xf0]  ;;  %v4921_v43 = vld [vmem:[%s8538_s6 + $0x10] sm:$0xff]  ;;  %v5477_v29 = vld [vmem:[%s8536_s4] sm:$0xf] }
 0x4a0   : > { %4600 = vmatpush.bf16.msra.mxu3 %v5630_v16  ;;  %4625 = vmatpush.bf16.msrb.mxu0 %v5726_v11  ;;  %v8098_v4 = vpop.permute.xlu0 %3757  ;;  %v8113_v61 = vpop.permute.xlu2 %3645  ;;  %v5949_v16 = vld [vmem:[%s8536_s4 + $0x10] sm:$0xf0]  ;;  %v5950_v37 = vld [vmem:[%s8536_s4 + $0x18] sm:$0xf0]  ;;  %v5952_v24 = vld [vmem:[%s8536_s4 + $0x2c] sm:$0xf] }
 0x4a1   : > { %v3772_v40 = vpop.permute.xlu1 %3771  ;;  %v3789_v38 = vrot.slane %v8098_v4, 4  ;;  %v8163_v30 = vor.u32 %v5949_v16, %v5477_v29  ;;  %v5671_v29 = vld [vmem:[#allocation3 + $0xe8] sm:$0xf0] }
 0x4a2   : > { %v3796_v6 = vrot.slane %v3772_v40, 4  ;;  %v5971_v40 = vld [vmem:[#allocation3 + $0x24] sm:$0xf] }
 0x4a3   : > { %4572 = vmatpush.bf16.msra.mxu2 %v5558_v33  ;;  %v5578_v33 = vor.u32 %v5971_v40, %v5575_v59  ;;  %v5995_v40 = vld [vmem:[#allocation3 + $0xe4] sm:$0xf] }
 0x4a4   : > { %v3811_v21 = vsel %vm506_vm4, %v3795_v19, %v3796_v6  ;;  %4601 = vmatpush.bf16.msra.mxu3 %v5622_v3  ;;  %v5717_v47 = vld [vmem:[#allocation3 + $0x140] sm:$0xf]  ;;  %v5969_v6 = vld [vmem:[#allocation3 + $0x14] sm:$0xf] }
 0x4a5   : > { %v3812_v15 = vsel %vm1496_vm12, %v8061_v1, %v3811_v21  ;;  %v5977_v1 = vld [vmem:[#allocation3 + $0x54] sm:$0xf]  ;;  %v5789_v22 = vld [vmem:[#allocation3 + $0x1d0] sm:$0xf]  ;;  %v5570_v42 = vor.u32 %v5969_v6, %v5567_v55 }
 0x4a6   : > { %3832 = vst [vmem:[#allocation3 + $0x1d8] sm:$0xff] %v3812_v15  ;;  %4934 = vperm.xlu0 %6089, %v4920_v17   ;;  %4929 = vperm.xlu2 %6088, %v4919_v57   ;;  %v5602_v26 = vor.u32 %v5977_v1, %v5599_v54  ;;  %v3962_v17 = vrot.slane %v8091_v58, 4  ;;  %v5701_v58 = vld [vmem:[#allocation3 + $0x120] sm:$0xf] }
 0x4a7   : > { %4885 = vperm.xlu1 %6090, %v4859_v39   ;;  %4573 = vmatmul.bf16.vlgmr.msra.gmra.mxu2 %v8163_v30 }
 0x4a8   : > { %4710 = vmatpush.bf16.msrb.mxu3 %v5618_v18  ;;  %v3764_v14 = vpop.permute.xlu0 %3763  ;;  %v8139_v32 = vpop.permute.xlu2 %3651  ;;  %v5709_v18 = vld [vmem:[#allocation3 + $0x130] sm:$0xf] }
 0x4a9   : > { %v3792_v56 = vrot.slane %v3764_v14, 4  ;;  %v3466_v10 = vpop.permute.xlu1 %3465  ;;  %v5710_v39 = vor.u32 %v6006_v0, %v5709_v18  ;;  %v5674_v0 = vor.u32 %v5995_v40, %v5671_v29 }
 0x4aa   : > { %v3495_v60 = vrot.slane %v3466_v10, 4 }
 0x4ab   : > { %v3807_v41 = vsel %vm506_vm4, %v3791_v44, %v3792_v56  ;;  %v4924_v44 = vld [vmem:[%s8538_s6 + $0x28] sm:$0xff] }
 0x4ac   : > { %4711 = vmatpush.bf16.msrb.mxu3 %v5610_v53  ;;  %v3808_v31 = vsel %vm1496_vm12, %v8066_v12, %v3807_v41  ;;  %v3511_v36 = vsel %vm506_vm4, %v3495_v60, %v3496_v45  ;;  %v5947_v12 = vld [vmem:[%s8536_s4 + $0x4] sm:$0xf]  ;;  %v6004_v53 = vld [vmem:[#allocation3 + $0x124] sm:$0xf0]  ;;  %v5559_v56 = vld [vmem:[#allocation3 + $0x8] sm:$0xf0] }
 0x4ad   : > { %3830 = vst [vmem:[#allocation3 + $0x1c8] sm:$0xff] %v3808_v31  ;;  %v3512_v62 = vsel %vm877_vm8, %v3466_v10, %v3511_v36  ;;  %v6026_v25 = vld [vmem:[#allocation3 + $0x1d4] sm:$0xf0]  ;;  %v8137_v28 = vor.u32 %v5947_v12, %v5479_v9  ;;  %v5702_v1 = vor.u32 %v6004_v53, %v5701_v58  ;;  %v5693_v36 = vld [vmem:[#allocation3 + $0x110] sm:$0xf] }
 0x4ae   : > { %3534 = vst [vmem:[#allocation3 + $0x148] sm:$0xff] %v3512_v62  ;;  %4949 = vperm.xlu0 %6089, %v4923_v52   ;;  %4944 = vperm.xlu2 %6088, %v4922_v35   ;;  %v5790_v48 = vor.u32 %v6026_v25, %v5789_v22  ;;  %v6002_v52 = vld [vmem:[#allocation3 + $0x114] sm:$0xf0]  ;;  %v6000_v62 = vld [vmem:[#allocation3 + $0x104] sm:$0xf0] }
 0x4af   : > { %4900 = vperm.xlu1 %6090, %v4862_v8   ;;  %4602 = vmatmul.bf16.vlgmr.msra.gmra.mxu3 %v8137_v28  ;;  %v5694_v7 = vor.u32 %v6002_v52, %v5693_v36  ;;  %v5679_v22 = vld [vmem:[#allocation3 + $0xf8] sm:$0xf0]  ;;  %v5485_v25 = vld [vmem:[%s8536_s4 + $0x8] sm:$0xf]  ;;  %v5655_v53 = vld [vmem:[#allocation3 + $0xc8] sm:$0xf0] }
 0x4b0   : > { %4712 = vmatpush.bf16.msrb.mxu3 %v5602_v26  ;;  %4654 = vmatpush.bf16.msrb.mxu1 %v5790_v48  ;;  %v8141_v23 = vpop.permute.xlu0 %3945  ;;  %v8168_v57 = vpop.permute.xlu2 %3937  ;;  %v5967_v26 = vld [vmem:[#allocation3 + $0x4] sm:$0xf]  ;;  %v5497_v9 = vld [vmem:[%s8536_s4 + $0x28] sm:$0xf]  ;;  %v5957_v36 = vld [vmem:[%s8536_s4 + $0x54] sm:$0xf] }
 0x4b1   : > { %v3760_v2 = vpop.permute.xlu1 %3759  ;;  %v3963_v8 = vrot.slane %v8141_v23, 4  ;;  %v3959_v16 = vrot.slane %v8168_v57, 4  ;;  %v5991_v58 = vld [vmem:[#allocation3 + $0xc4] sm:$0xf] }
 0x4b2   : > { %v3790_v51 = vrot.slane %v3760_v2, 4 }
 0x4b4   : > { %4713 = vmatpush.bf16.msrb.mxu3 %v5594_v49  ;;  %v3805_v34 = vsel %vm506_vm4, %v3789_v38, %v3790_v51  ;;  %v6024_v60 = vld [vmem:[#allocation3 + $0x1c4] sm:$0xf0]  ;;  %v5954_v49 = vld [vmem:[%s8536_s4 + $0x38] sm:$0xf0]  ;;  %v5685_v38 = vld [vmem:[#allocation3 + $0x100] sm:$0xf] }
 0x4b5   : > { %v3806_v11 = vsel %vm1496_vm12, %v8098_v4, %v3805_v34  ;;  %v6008_v5 = vld [vmem:[#allocation3 + $0x144] sm:$0xf0]  ;;  %v3665_v4 = vrot.slane %v8113_v61, 4  ;;  %v8198_v51 = vor.u32 %v5954_v49, %v5497_v9  ;;  %v5987_v49 = vld [vmem:[#allocation3 + $0xa4] sm:$0xf] }
 0x4b6   : > { %3829 = vst [vmem:[#allocation3 + $0x1c0] sm:$0xff] %v3806_v11  ;;  %4964 = vperm.xlu0 %6089, %v4926_v20   ;;  %4959 = vperm.xlu2 %6088, %v4925_v50   ;;  %v5718_v63 = vor.u32 %v6008_v5, %v5717_v47  ;;  %v5997_v20 = vld [vmem:[#allocation3 + $0xf4] sm:$0xf]  ;;  %v5499_v50 = vld [vmem:[%s8536_s4 + $0x3c] sm:$0xf0]  ;;  %v3668_v5 = vrot.slane %v8139_v32, 4 }
 0x4b7   : > { %4939 = vperm.xlu1 %6090, %v4921_v43   ;;  %v5682_v59 = vor.u32 %v5997_v20, %v5679_v22  ;;  %4578 = vmatmul.bf16.gmra.mxu2 %v8198_v51  ;;  %v8207_v34 = vor.u32 %v5952_v24, %v5499_v50  ;;  %v5639_v20 = vld [vmem:[#allocation3 + $0xa8] sm:$0xf0] }
 0x4b8   : > { %4714 = vmatpush.bf16.msrb.mxu3 %v5586_v46  ;;  %4626 = vmatpush.bf16.msrb.mxu0 %v5718_v63  ;;  %v3648_v19 = vpop.permute.xlu0 %3647  ;;  %v8184_v48 = vpop.permute.xlu2 %3639  ;;  %v5686_v46 = vor.u32 %v6000_v62, %v5685_v38  ;;  %v5519_v62 = vld [vmem:[%s8536_s4 + $0x64] sm:$0xf0] }
 0x4b9   : > { %v3666_v3 = vrot.slane %v3648_v19, 4  ;;  %v3942_v27 = vpop.permute.xlu1 %3941  ;;  %v8246_v22 = vor.u32 %v5957_v36, %v5519_v62  ;;  %v3662_v24 = vrot.slane %v8184_v48, 4 }
 0x4ba   : > { %v3961_v21 = vrot.slane %v3942_v27, 4 }
 0x4bb   : > { %v3681_v15 = vsel %vm506_vm4, %v3665_v4, %v3666_v3 }
 0x4bc   : > { %4715 = vmatpush.bf16.msrb.mxu3 %v5578_v33  ;;  %v3682_v14 = vsel %vm707_vm7, %v8113_v61, %v3681_v15  ;;  %v3977_v54 = vsel %vm506_vm4, %v3961_v21, %v3962_v17  ;;  %4627 = vmatpush.bf16.msrb.mxu0 %v5710_v39  ;;  %v5562_v61 = vor.u32 %v5967_v26, %v5559_v56  ;;  %v5663_v15 = vld [vmem:[#allocation3 + $0xd8] sm:$0xf0]  ;;  %v5955_v26 = vld [vmem:[%s8536_s4 + $0x40] sm:$0xf0] }
 0x4bd   : > { %3699 = vst [vmem:[#allocation3 + $0x1b0] sm:$0xff] %v3682_v14  ;;  %v3978_v10 = vsel %vm397_vm6, %v3942_v27, %v3977_v54  ;;  %v5781_v45 = vld [vmem:[#allocation3 + $0x1c0] sm:$0xf]  ;;  %v5993_v27 = vld [vmem:[#allocation3 + $0xd4] sm:$0xf]  ;;  %v5658_v56 = vor.u32 %v5991_v58, %v5655_v53 }
 0x4be   : > { %3995 = vst [vmem:[#allocation3 + $0x230] sm:$0xff] %v3978_v10  ;;  %v5782_v41 = vor.u32 %v6024_v60, %v5781_v45  ;;  %v5647_v45 = vld [vmem:[#allocation3 + $0xb8] sm:$0xf0]  ;;  %v5539_v58 = vld [vmem:[%s8536_s4 + $0x8c] sm:$0xf0] }
 0x4bf   : > { %4954 = vperm.xlu1 %6090, %v4924_v44   ;;  %4607 = vmatmul.bf16.gmra.mxu3 %v8207_v34 }
 0x4c0   : > { %4716 = vmatpush.bf16.msrb.mxu3 %v5570_v42  ;;  %4628 = vmatpush.bf16.msrb.mxu0 %v5702_v1  ;;  %v8178_v35 = vpop.permute.xlu0 %3933  ;;  %v3926_v21 = vpop.permute.xlu2 %3925  ;;  %v5666_v42 = vor.u32 %v5993_v27, %v5663_v15  ;;  %v5517_v1 = vld [vmem:[%s8536_s4 + $0x50] sm:$0xf]  ;;  %v5525_v15 = vld [vmem:[%s8536_s4 + $0x58] sm:$0xf] }
 0x4c1   : > { %4655 = vmatpush.bf16.msrb.mxu1 %v5782_v41  ;;  %v3948_v31 = vpop.permute.xlu1 %3947  ;;  %v3957_v54 = vrot.slane %v8178_v35, 4  ;;  %v5505_v41 = vld [vmem:[%s8536_s4 + $0x30] sm:$0xf] }
 0x4c2   : > { %v3964_v13 = vrot.slane %v3948_v31, 4  ;;  %v5959_v31 = vld [vmem:[%s8536_s4 + $0x60] sm:$0xf0] }
 0x4c4   : > { %4717 = vmatpush.bf16.msrb.mxu3 %v5562_v61  ;;  %v3979_v12 = vsel %vm506_vm4, %v3963_v8, %v3964_v13  ;;  %4629 = vmatpush.bf16.msrb.mxu0 %v5694_v7  ;;  %v5773_v10 = vld [vmem:[#allocation3 + $0x1b0] sm:$0xf]  ;;  %v5989_v13 = vld [vmem:[#allocation3 + $0xb4] sm:$0xf]  ;;  %v8241_v7 = vor.u32 %v5959_v31, %v5517_v1 }
 0x4c5   : > { %v3980_v2 = vsel %vm397_vm6, %v8141_v23, %v3979_v12  ;;  %v8209_v23 = vor.u32 %v5950_v37, %v5485_v25  ;;  %v5837_v4 = vld [vmem:[#allocation3 + $0x230] sm:$0xf]  ;;  %v6037_v3 = vld [vmem:[#allocation3 + $0x234] sm:$0xf]  ;;  %v8248_v25 = vor.u32 %v5955_v26, %v5505_v41  ;;  %v3953_v37 = vrot.slane %v3926_v21, 4 }
 0x4c6   : > { %3996 = vst [vmem:[#allocation3 + $0x238] sm:$0xff] %v3980_v2 }
 0x4c7   : > { %4583 = vmatmul.bf16.gmra.mxu2 %v8241_v7 }
 0x4c8   : > { %4630 = vmatpush.bf16.msrb.mxu0 %v5686_v46  ;;  %v3940_v43 = vpop.permute.xlu0 %3939  ;;  %v8250_v12 = vpop.permute.xlu2 %3931 }
 0x4c9   : > { %v3960_v11 = vrot.slane %v3940_v43, 4  ;;  %v3650_v47 = vpop.permute.xlu1 %3649  ;;  %v3956_v41 = vrot.slane %v8250_v12, 4 }
 0x4ca   : > { %v3667_v63 = vrot.slane %v3650_v47, 4 }
 0x4cb   : > { %v3975_v33 = vsel %vm506_vm4, %v3959_v16, %v3960_v11  ;;  %4631 = vmatmul.bf16.vlgmr.msrb.gmra.mxu0 %v8209_v23 }
 0x4cc   : > { %4739 = vmatpush.bf16.msra.mxu0 %v5682_v59  ;;  %v3976_v19 = vsel %vm397_vm6, %v8168_v57, %v3975_v33  ;;  %v3683_v6 = vsel %vm506_vm4, %v3667_v63, %v3668_v5  ;;  %v5642_v59 = vor.u32 %v5987_v49, %v5639_v20 }
 0x4cd   : > { %3994 = vst [vmem:[#allocation3 + $0x228] sm:$0xff] %v3976_v19  ;;  %v3684_v18 = vsel %vm707_vm7, %v3650_v47, %v3683_v6  ;;  %v6038_v32 = vld [vmem:[#allocation3 + $0x234] sm:$0xf0]  ;;  %v5839_v17 = vld [vmem:[#allocation3 + $0x238] sm:$0xf0] }
 0x4ce   : > { %3700 = vst [vmem:[#allocation3 + $0x1b8] sm:$0xff] %v3684_v18  ;;  %v5838_v39 = vor.u32 %v6038_v32, %v5837_v4  ;;  %v5842_v55 = vor.u32 %v6037_v3, %v5839_v17  ;;  %v5631_v47 = vld [vmem:[#allocation3 + $0x98] sm:$0xf0]  ;;  %v5623_v4 = vld [vmem:[#allocation3 + $0x88] sm:$0xf0] }
 0x4cf   : > { %4612 = vmatmul.bf16.gmra.mxu3 %v8246_v22  ;;  %v5983_v17 = vld [vmem:[#allocation3 + $0x84] sm:$0xf] }
 0x4d0   : > { %4740 = vmatpush.bf16.msra.mxu0 %v5674_v0  ;;  %4685 = vmatpush.bf16.msrb.mxu2 %v5838_v39  ;;  %v8220_v57 = vpop.permute.xlu0 %3641  ;;  %v5985_v0 = vld [vmem:[#allocation3 + $0x94] sm:$0xf]  ;;  %v3634_v18 = vpop.permute.xlu2 %3633 }
 0x4d1   : > { %4830 = vmatpush.bf16.msra.mxu3 %v5842_v55  ;;  %v3936_v14 = vpop.permute.xlu1 %3935  ;;  %v5634_v19 = vor.u32 %v5985_v0, %v5631_v47  ;;  %v3663_v27 = vrot.slane %v8220_v57, 4  ;;  %v5537_v55 = vld [vmem:[%s8536_s4 + $0x78] sm:$0xf] }
 0x4d2   : > { %v3958_v44 = vrot.slane %v3936_v14, 4  ;;  %v5964_v14 = vld [vmem:[%s8536_s4 + $0x88] sm:$0xf0] }
 0x4d4   : > { %4741 = vmatpush.bf16.msra.mxu0 %v5666_v42  ;;  %v3973_v60 = vsel %vm506_vm4, %v3957_v54, %v3958_v44  ;;  %v6036_v16 = vld [vmem:[#allocation3 + $0x224] sm:$0xf0]  ;;  %v5831_v11 = vld [vmem:[#allocation3 + $0x228] sm:$0xf0]  ;;  %v5962_v54 = vld [vmem:[%s8536_s4 + $0x7c] sm:$0xf]  ;;  %v8279_v44 = vor.u32 %v5964_v14, %v5537_v55 }
 0x4d5   : > { %v3974_v61 = vsel %vm397_vm6, %v8178_v35, %v3973_v60  ;;  %v6022_v52 = vld [vmem:[#allocation3 + $0x1b4] sm:$0xf0]  ;;  %v5650_v35 = vor.u32 %v5989_v13, %v5647_v45  ;;  %v5960_v42 = vld [vmem:[%s8536_s4 + $0x68] sm:$0xf0]  ;;  %v3659_v45 = vrot.slane %v3634_v18, 4 }
 0x4d6   : > { %3993 = vst [vmem:[#allocation3 + $0x220] sm:$0xff] %v3974_v61  ;;  %v5774_v8 = vor.u32 %v6022_v52, %v5773_v10  ;;  %v8286_v10 = vor.u32 %v5960_v42, %v5525_v15 }
 0x4d7   : > { %4588 = vmatmul.bf16.gmra.mxu2 %v8279_v44 }
 0x4d8   : > { %4742 = vmatpush.bf16.msra.mxu0 %v5658_v56  ;;  %4656 = vmatpush.bf16.msrb.mxu1 %v5774_v8  ;;  %v3928_v9 = vpop.permute.xlu0 %3927  ;;  %v8284_v56 = vor.u32 %v5962_v54, %v5539_v58  ;;  %v3920_v52 = vpop.permute.xlu2 %3919  ;;  %v6029_v54 = vld [vmem:[#allocation3 + $0x1f4] sm:$0xf] }
 0x4d9   : > { %v3954_v2 = vrot.slane %v3928_v9, 4  ;;  %v3638_v38 = vpop.permute.xlu1 %3637 }
 0x4da   : > { %v3661_v46 = vrot.slane %v3638_v38, 4 }
 0x4db   : > { %v3969_v50 = vsel %vm506_vm4, %v3953_v37, %v3954_v2  ;;  %4636 = vmatmul.bf16.gmra.mxu0 %v8248_v25 }
 0x4dc   : > { %4743 = vmatpush.bf16.msra.mxu0 %v5650_v35  ;;  %v3970_v43 = vsel %vm397_vm6, %v3926_v21, %v3969_v50  ;;  %v3677_v29 = vsel %vm506_vm4, %v3661_v46, %v3662_v24  ;;  %v5626_v21 = vor.u32 %v5983_v17, %v5623_v4  ;;  %v5545_v24 = vld [vmem:[%s8536_s4 + $0x80] sm:$0xf]  ;;  %v5965_v46 = vld [vmem:[%s8536_s4 + $0x90] sm:$0xf0] }
 0x4dd   : > { %3991 = vst [vmem:[#allocation3 + $0x210] sm:$0xff] %v3970_v43  ;;  %v3678_v5 = vsel %vm707_vm7, %v3638_v38, %v3677_v29  ;;  %v5829_v63 = vld [vmem:[#allocation3 + $0x220] sm:$0xf]  ;;  %v6035_v48 = vld [vmem:[#allocation3 + $0x224] sm:$0xf]  ;;  %v8304_v47 = vor.u32 %v5965_v46, %v5545_v24 }
 0x4de   : > { %3697 = vst [vmem:[#allocation3 + $0x1a0] sm:$0xff] %v3678_v5  ;;  %v5830_v40 = vor.u32 %v6036_v16, %v5829_v63  ;;  %v5834_v33 = vor.u32 %v6035_v48, %v5831_v11  ;;  %v6013_v24 = vld [vmem:[#allocation3 + $0x174] sm:$0xf] }
 0x4df   : > { %4617 = vmatmul.bf16.gmra.mxu3 %v8284_v56  ;;  %v6025_v46 = vld [vmem:[#allocation3 + $0x1d4] sm:$0xf] }
 0x4e0   : > { %4744 = vmatpush.bf16.msra.mxu0 %v5642_v59  ;;  %4686 = vmatpush.bf16.msrb.mxu2 %v5830_v40  ;;  %v3630_v6 = vpop.permute.xlu0 %3629  ;;  %v3622_v29 = vpop.permute.xlu2 %3621 }
 0x4e1   : > { %4831 = vmatpush.bf16.msra.mxu3 %v5834_v33  ;;  %v3644_v3 = vpop.permute.xlu1 %3643  ;;  %v3657_v49 = vrot.slane %v3630_v6, 4  ;;  %v3653_v63 = vrot.slane %v3622_v29, 4  ;;  %v3950_v33 = vrot.slane %v3920_v52, 4 }
 0x4e2   : > { %v3664_v32 = vrot.slane %v3644_v3, 4 }
 0x4e4   : > { %4745 = vmatpush.bf16.msra.mxu0 %v5634_v19  ;;  %v3679_v39 = vsel %vm506_vm4, %v3663_v27, %v3664_v32  ;;  %v5821_v38 = vld [vmem:[#allocation3 + $0x210] sm:$0xf]  ;;  %v6033_v59 = vld [vmem:[#allocation3 + $0x214] sm:$0xf] }
 0x4e5   : > { %v3680_v53 = vsel %vm707_vm7, %v8220_v57, %v3679_v39  ;;  %v5765_v13 = vld [vmem:[#allocation3 + $0x1a0] sm:$0xf] }
 0x4e6   : > { %3698 = vst [vmem:[#allocation3 + $0x1a8] sm:$0xff] %v3680_v53 }
 0x4e8   : > { %4746 = vmatpush.bf16.msra.mxu0 %v5626_v21  ;;  %v3636_v57 = vpop.permute.xlu0 %3635  ;;  %v3628_v15 = vpop.permute.xlu2 %3627 }
 0x4e9   : > { %v3660_v60 = vrot.slane %v3636_v57, 4  ;;  %v3930_v1 = vpop.permute.xlu1 %3929  ;;  %v3656_v53 = vrot.slane %v3628_v15, 4  ;;  %v5507_v15 = vld [vmem:[%s8536_s4 + $0x44] sm:$0xf0] }
 0x4ea   : > { %v3955_v26 = vrot.slane %v3930_v1, 4 }
 0x4eb   : > { %v3675_v61 = vsel %vm506_vm4, %v3659_v45, %v3660_v60  ;;  %4641 = vmatmul.bf16.gmra.mxu0 %v8286_v10  ;;  %v5493_v45 = vld [vmem:[%s8536_s4 + $0x10] sm:$0xf]  ;;  %v5951_v60 = vld [vmem:[%s8536_s4 + $0x20] sm:$0xf0] }
 0x4ec   : > { %v3676_v31 = vsel %vm707_vm7, %v3634_v18, %v3675_v61  ;;  %v3971_v36 = vsel %vm506_vm4, %v3955_v26, %v3956_v41 }
 0x4ed   : > { %3696 = vst [vmem:[#allocation3 + $0x198] sm:$0xff] %v3676_v31  ;;  %v3972_v8 = vsel %vm397_vm6, %v3930_v1, %v3971_v36  ;;  %v6020_v62 = vld [vmem:[#allocation3 + $0x1a4] sm:$0xf0]  ;;  %v8324_v36 = vor.u32 %v5951_v60, %v5493_v45  ;;  %v6003_v60 = vld [vmem:[#allocation3 + $0x124] sm:$0xf] }
 0x4ee   : > { %3992 = vst [vmem:[#allocation3 + $0x218] sm:$0xff] %v3972_v8  ;;  %v5766_v35 = vor.u32 %v6020_v62, %v5765_v13  ;;  %v5799_v8 = vld [vmem:[#allocation3 + $0x1e8] sm:$0xf0]  ;;  %v6027_v13 = vld [vmem:[#allocation3 + $0x1e4] sm:$0xf] }
 0x4ef   : > { %4718 = vmatmul.bf16.vlgmr.msrb.gmra.mxu3 %v8163_v30  ;;  %v5802_v62 = vor.u32 %v6027_v13, %v5799_v8  ;;  %v5999_v13 = vld [vmem:[#allocation3 + $0x104] sm:$0xf] }
 0x4f0   : > { %4657 = vmatpush.bf16.msrb.mxu1 %v5766_v35  ;;  %v3922_v9 = vpop.permute.xlu0 %3921  ;;  %v5743_v35 = vld [vmem:[#allocation3 + $0x178] sm:$0xf0] }
 0x4f1   : > { %v3632_v12 = vpop.permute.xlu1 %3631  ;;  %v3951_v30 = vrot.slane %v3922_v9, 4 }
 0x4f2   : > { %v3658_v37 = vrot.slane %v3632_v12, 4  ;;  %v5948_v12 = vld [vmem:[%s8536_s4 + $0xc] sm:$0xf] }
 0x4f4   : > { %v3673_v2 = vsel %vm506_vm4, %v3657_v49, %v3658_v37  ;;  %v6018_v18 = vld [vmem:[#allocation3 + $0x194] sm:$0xf0]  ;;  %v5487_v49 = vld [vmem:[%s8536_s4 + $0x1c] sm:$0xf0] }
 0x4f5   : > { %v3674_v20 = vsel %vm707_vm7, %v3630_v6, %v3673_v2  ;;  %v6034_v50 = vld [vmem:[#allocation3 + $0x214] sm:$0xf0]  ;;  %v5823_v43 = vld [vmem:[#allocation3 + $0x218] sm:$0xf0] }
 0x4f6   : > { %3695 = vst [vmem:[#allocation3 + $0x190] sm:$0xff] %v3674_v20  ;;  %v5822_v16 = vor.u32 %v6034_v50, %v5821_v38  ;;  %v5826_v11 = vor.u32 %v6033_v59, %v5823_v43  ;;  %v5746_v20 = vor.u32 %v6013_v24, %v5743_v35  ;;  %v8334_v59 = vor.u32 %v5948_v12, %v5487_v49  ;;  %v5735_v43 = vld [vmem:[#allocation3 + $0x168] sm:$0xf0]  ;;  %v5527_v35 = vld [vmem:[%s8536_s4 + $0x6c] sm:$0xf0] }
 0x4f7   : > { %v5553_v49 = vld [vmem:[%s8536_s4 + $0x88] sm:$0xf] }
 0x4f8   : > { %4687 = vmatpush.bf16.msrb.mxu2 %v5822_v16  ;;  %4832 = vmatpush.bf16.msra.mxu3 %v5826_v11  ;;  %v3624_v5 = vpop.permute.xlu0 %3623  ;;  %v6011_v16 = vld [vmem:[#allocation3 + $0x164] sm:$0xf]  ;;  %v5783_v11 = vld [vmem:[#allocation3 + $0x1c8] sm:$0xf0] }
 0x4f9   : > { %v3654_v48 = vrot.slane %v3624_v5, 4  ;;  %v3918_v40 = vpop.permute.xlu1 %3917  ;;  %v5738_v5 = vor.u32 %v6011_v16, %v5735_v43 }
 0x4fa   : > { %v3949_v0 = vrot.slane %v3918_v40, 4 }
 0x4fb   : > { %v3669_v19 = vsel %vm506_vm4, %v3653_v63, %v3654_v48  ;;  %4646 = vmatmul.bf16.gmra.mxu0 %v8304_v47  ;;  %v6009_v48 = vld [vmem:[#allocation3 + $0x154] sm:$0xf] }
 0x4fc   : > { %v3670_v6 = vsel %vm707_vm7, %v3622_v29, %v3669_v19  ;;  %v3965_v4 = vsel %vm506_vm4, %v3949_v0, %v3950_v33  ;;  %v6023_v29 = vld [vmem:[#allocation3 + $0x1c4] sm:$0xf]  ;;  %v5513_v33 = vld [vmem:[%s8536_s4 + $0x38] sm:$0xf]  ;;  %v5956_v0 = vld [vmem:[%s8536_s4 + $0x48] sm:$0xf0] }
 0x4fd   : > { %3693 = vst [vmem:[#allocation3 + $0x180] sm:$0xff] %v3670_v6  ;;  %v3966_v3 = vsel %vm397_vm6, %v3918_v40, %v3965_v4  ;;  %v5757_v27 = vld [vmem:[#allocation3 + $0x190] sm:$0xf]  ;;  %v5786_v63 = vor.u32 %v6023_v29, %v5783_v11  ;;  %v5775_v40 = vld [vmem:[#allocation3 + $0x1b8] sm:$0xf0] }
 0x4fe   : > { %3989 = vst [vmem:[#allocation3 + $0x200] sm:$0xff] %v3966_v3  ;;  %v5758_v32 = vor.u32 %v6018_v18, %v5757_v27  ;;  %v5727_v19 = vld [vmem:[#allocation3 + $0x158] sm:$0xf0]  ;;  %v5514_v3 = vor.u32 %v5956_v0, %v5513_v33  ;;  %v5719_v27 = vld [vmem:[#allocation3 + $0x148] sm:$0xf0] }
 0x4ff   : > { %4723 = vmatmul.bf16.gmra.mxu3 %v8198_v51  ;;  %v5730_v6 = vor.u32 %v6009_v48, %v5727_v19  ;;  %v5767_v18 = vld [vmem:[#allocation3 + $0x1a8] sm:$0xf0] }
 0x500   : > { %4658 = vmatpush.bf16.msrb.mxu1 %v5758_v32  ;;  %v6019_v32 = vld [vmem:[#allocation3 + $0x1a4] sm:$0xf] }
 0x501   : > { %v3924_v17 = vpop.permute.xlu1 %3923 }
 0x502   : > { %v3952_v21 = vrot.slane %v3924_v17, 4 }
 0x504   : > { %v3967_v39 = vsel %vm506_vm4, %v3951_v30, %v3952_v21  ;;  %v5749_v37 = vld [vmem:[#allocation3 + $0x180] sm:$0xf]  ;;  %v5770_v30 = vor.u32 %v6019_v32, %v5767_v18  ;;  %v5711_v21 = vld [vmem:[#allocation3 + $0x138] sm:$0xf0] }
 0x505   : > { %v3968_v55 = vsel %vm397_vm6, %v3922_v9, %v3967_v39  ;;  %v5813_v57 = vld [vmem:[#allocation3 + $0x200] sm:$0xf]  ;;  %v6031_v51 = vld [vmem:[#allocation3 + $0x204] sm:$0xf]  ;;  %v5791_v9 = vld [vmem:[#allocation3 + $0x1d8] sm:$0xf0] }
 0x506   : > { %3990 = vst [vmem:[#allocation3 + $0x208] sm:$0xff] %v3968_v55  ;;  %v5794_v50 = vor.u32 %v6025_v46, %v5791_v9  ;;  %v6017_v39 = vld [vmem:[#allocation3 + $0x194] sm:$0xf] }
 0x507   : > { %v5953_v55 = vld [vmem:[%s8536_s4 + $0x34] sm:$0xf] }
 0x509   : > { %v3626_v42 = vpop.permute.xlu1 %3625 }
 0x50a   : > { %v3655_v14 = vrot.slane %v3626_v42, 4 }
 0x50b   : > { %4747 = vmatmul.bf16.vlgmr.msra.gmra.mxu0 %v8137_v28  ;;  %v5807_v28 = vld [vmem:[#allocation3 + $0x1f8] sm:$0xf0] }
 0x50c   : > { %v3671_v58 = vsel %vm506_vm4, %v3655_v14, %v3656_v53  ;;  %v5810_v31 = vor.u32 %v6029_v54, %v5807_v28  ;;  %v5759_v53 = vld [vmem:[#allocation3 + $0x198] sm:$0xf0]  ;;  %v6001_v28 = vld [vmem:[#allocation3 + $0x114] sm:$0xf] }
 0x50d   : > { %v3672_v1 = vsel %vm707_vm7, %v3626_v42, %v3671_v58  ;;  %v6032_v41 = vld [vmem:[#allocation3 + $0x204] sm:$0xf0]  ;;  %v5815_v26 = vld [vmem:[#allocation3 + $0x208] sm:$0xf0]  ;;  %v6005_v42 = vld [vmem:[#allocation3 + $0x134] sm:$0xf]  ;;  %v5762_v54 = vor.u32 %v6017_v39, %v5759_v53  ;;  %v5510_v58 = vor.u32 %v5953_v55, %v5507_v15 }
 0x50e   : > { %3694 = vst [vmem:[#allocation3 + $0x188] sm:$0xff] %v3672_v1  ;;  %v5814_v61 = vor.u32 %v6032_v41, %v5813_v57  ;;  %v5818_v52 = vor.u32 %v6031_v51, %v5815_v26  ;;  %v5714_v14 = vor.u32 %v6005_v42, %v5711_v21  ;;  %v5703_v57 = vld [vmem:[#allocation3 + $0x128] sm:$0xf0]  ;;  %v6015_v1 = vld [vmem:[#allocation3 + $0x184] sm:$0xf] }
 0x50f   : > { %4728 = vmatmul.bf16.gmra.mxu3 %v8241_v7  ;;  %v6021_v7 = vld [vmem:[#allocation3 + $0x1b4] sm:$0xf]  ;;  %v5706_v41 = vor.u32 %v6003_v60, %v5703_v57  ;;  %v5695_v26 = vld [vmem:[#allocation3 + $0x118] sm:$0xf0] }
 0x510   : > { %4688 = vmatpush.bf16.msrb.mxu2 %v5814_v61  ;;  %4833 = vmatpush.bf16.msra.mxu3 %v5818_v52  ;;  %v5778_v4 = vor.u32 %v6021_v7, %v5775_v40  ;;  %v5533_v61 = vld [vmem:[%s8536_s4 + $0x60] sm:$0xf]  ;;  %v5961_v52 = vld [vmem:[%s8536_s4 + $0x70] sm:$0xf0]  ;;  %v8408_v7 = vpop.permute.xlu0 %4865 }
 0x511   : > { %v5534_v8 = vor.u32 %v5961_v52, %v5533_v61 }
 0x513   : > { %5843 = vmatmul.msk.bf16.vlgmr.msrb.gmra.mxu2 %vm2254_vm13, %v8324_v36 }
 0x514   : > { %4797 = vmatpush.bf16.msra.mxu2 %v5810_v31  ;;  %v5698_v31 = vor.u32 %v6001_v28, %v5695_v26 }
 0x515   : > { %v6016_v2 = vld [vmem:[#allocation3 + $0x184] sm:$0xf0]  ;;  %v5751_v45 = vld [vmem:[#allocation3 + $0x188] sm:$0xf0] }
 0x516   : > { %v5750_v38 = vor.u32 %v6016_v2, %v5749_v37  ;;  %v5754_v51 = vor.u32 %v6015_v1, %v5751_v45  ;;  %v5966_v37 = vld [vmem:[%s8536_s4 + $0x98] sm:$0xf0] }
 0x517   : > { %v5554_v2 = vor.u32 %v5966_v37, %v5553_v49 }
 0x518   : > { %4798 = vmatpush.bf16.msra.mxu2 %v5802_v62  ;;  %4659 = vmatpush.bf16.msrb.mxu1 %v5750_v38 }
 0x51b   : > { %4660 = vmatmul.bf16.vlgmr.msrb.gmra.mxu1 %v8334_v59  ;;  %4752 = vmatmul.bf16.gmra.mxu0 %v8207_v34  ;;  %v6007_v34 = vld [vmem:[#allocation3 + $0x144] sm:$0xf] }
 0x51c   : > { %4768 = vmatpush.bf16.msra.mxu1 %v5746_v20  ;;  %4799 = vmatpush.bf16.msra.mxu2 %v5794_v50  ;;  %v5722_v17 = vor.u32 %v6007_v34, %v5719_v27  ;;  %v8417_v27 = vpop.permute.xlu1 %4870 }
 0x51f   : > { %4733 = vmatmul.bf16.gmra.mxu3 %v8279_v44  ;;  %v5687_v44 = vld [vmem:[#allocation3 + $0x108] sm:$0xf0] }
 0x520   : > { %4769 = vmatpush.bf16.msra.mxu1 %v5738_v5  ;;  %4800 = vmatpush.bf16.msra.mxu2 %v5786_v63  ;;  %v5690_v62 = vor.u32 %v5999_v13, %v5687_v44 }
 0x523   : > { %5844 = vmatmul.msk.bf16.gmra.mxu2 %vm2254_vm13, %v5514_v3 }
 0x524   : > { %4770 = vmatpush.bf16.msra.mxu1 %v5730_v6  ;;  %4801 = vmatpush.bf16.msra.mxu2 %v5778_v4  ;;  %v8412_v6 = vpop.permute.xlu2 %4875  ;;  %v8425_v15 = vpop.permute.xlu1 %4885 }
 0x528   : > { %4771 = vmatpush.bf16.msra.mxu1 %v5722_v17  ;;  %4802 = vmatpush.bf16.msra.mxu2 %v5770_v30 }
 0x52a   : > { %v4574_v46 = vpop.f32.mrf.mxu2 }
 0x52b   : > { %4665 = vmatmul.bf16.gmra.mxu1 %v5510_v58  ;;  %4757 = vmatmul.bf16.gmra.mxu0 %v8246_v22  ;;  %v5958_v22 = vld [vmem:[%s8536_s4 + $0x5c] sm:$0xf] }
 0x52c   : > { %4772 = vmatpush.bf16.msra.mxu1 %v5714_v14  ;;  %4803 = vmatpush.bf16.msra.mxu2 %v5762_v54  ;;  %v5530_v9 = vor.u32 %v5958_v22, %v5527_v35  ;;  %v8423_v34 = vpop.permute.xlu2 %4890 }
 0x52f   : > { %5847 = vmatmul.msk.bf16.vlgmr.msra.gmra.mxu3 %vm2254_vm13, %v8324_v36  ;;  %v5963_v36 = vld [vmem:[%s8536_s4 + $0x84] sm:$0xf] }
 0x530   : > { %4773 = vmatpush.bf16.msra.mxu1 %v5706_v41  ;;  %4804 = vmatpush.bf16.msra.mxu2 %v5754_v51 }
 0x532   : > { %v4603_v12 = vpop.f32.mrf.mxu3  ;;  %v4576_v50 = vpop.f32.mrf.mxu2 }
 0x533   : > { %5845 = vmatmul.msk.bf16.gmra.mxu2 %vm2254_vm13, %v5534_v8  ;;  %v4604_v32 = vadd.f32 %v4603_v12, %v4574_v46 }
 0x534   : > { %4774 = vmatpush.bf16.msra.mxu1 %v5698_v31  ;;  %v8431_v54 = vpop.permute.xlu2 %4929  ;;  %v8442_v31 = vpop.permute.xlu1 %4900 }
 0x538   : > { %4775 = vmatpush.bf16.msra.mxu1 %v5690_v62 }
 0x53a   : > { %v4605_v38 = vpop.f32.mrf.mxu3  ;;  %v4579_v29 = vpop.f32.mrf.mxu2 }
 0x53b   : > { %4670 = vmatmul.bf16.gmra.mxu1 %v5530_v9  ;;  %4762 = vmatmul.bf16.gmra.mxu0 %v8284_v56  ;;  %v5547_v56 = vld [vmem:[%s8536_s4 + $0x94] sm:$0xf0]  ;;  %v4606_v42 = vadd.f32 %v4605_v38, %v4576_v50 }
 0x53c   : > { %v5550_v24 = vor.u32 %v5963_v36, %v5547_v56 }
 0x53f   : > { %5848 = vmatmul.msk.bf16.gmra.mxu3 %vm2254_vm13, %v5514_v3 }
 0x542   : > { %v4608_v20 = vpop.f32.mrf.mxu3  ;;  %v4581_v5 = vpop.f32.mrf.mxu2 }
 0x543   : > { %5846 = vmatmul.msk.bf16.gmra.mxu2 %vm2254_vm13, %v5554_v2  ;;  %v4609_v61 = vadd.f32 %v4608_v20, %v4579_v29 }
 0x548   : > { %v4632_v48 = vpop.f32.mrf.mxu0 }
 0x549   : > { %v4633_v21 = vadd.f32 %v4632_v48, %v4604_v32 }
 0x54a   : > { %v8385_v43 = vpop.f32.mrf.mxu3 }
 0x54b   : > { %4675 = vmatmul.bf16.gmra.mxu1 %v5550_v24 }
 0x54f   : > { %5849 = vmatmul.msk.bf16.gmra.mxu3 %vm2254_vm13, %v5534_v8 }
 0x550   : > { %v4634_v0 = vpop.f32.mrf.mxu0 }
 0x551   : > { %v4635_v60 = vadd.f32 %v4634_v0, %v4606_v42 }
 0x552   : > { %v8389_v16 = vpop.f32.mrf.mxu3 }
 0x553   : > { %4805 = vmatmul.bf16.vlgmr.msra.gmra.mxu2 %v8334_v59  ;;  %v8397_v59 = vpop.f32.mrf.mxu2 }
 0x558   : > { %v4637_v4 = vpop.f32.mrf.mxu0 }
 0x559   : > { %v4638_v22 = vadd.f32 %v4637_v4, %v4609_v61 }
 0x55a   : > { %v8391_v11 = vpop.f32.mrf.mxu3 }
 0x55b   : > { %4776 = vmatmul.bf16.vlgmr.msra.gmra.mxu1 %v8209_v23  ;;  %v8401_v23 = vpop.f32.mrf.mxu2 }
 0x55f   : > { %5850 = vmatmul.msk.bf16.gmra.mxu3 %vm2254_vm13, %v5554_v2  ;;  %v4611_v2 = vadd.f32 %v8385_v43, %v4581_v5  ;;  %v4614_v43 = vadd.f32 %v8389_v16, %v8397_v59  ;;  %v4616_v16 = vadd.f32 %v8391_v11, %v8401_v23 }
 0x560   : > { %v4639_v17 = vpop.f32.mrf.mxu0 }
 0x561   : > { %v4640_v20 = vadd.f32 %v4639_v17, %v4611_v2 }
 0x562   : > { %v8395_v63 = vpop.f32.mrf.mxu3 }
 0x563   : > { %4810 = vmatmul.bf16.gmra.mxu2 %v5510_v58  ;;  %v8406_v19 = vpop.f32.mrf.mxu2 }
 0x568   : > { %v4642_v57 = vpop.f32.mrf.mxu0 }
 0x56a   : > { %v8399_v40 = vpop.f32.mrf.mxu3 }
 0x56b   : > { %4781 = vmatmul.bf16.gmra.mxu1 %v8248_v25  ;;  %v8415_v3 = vpop.f32.mrf.mxu2 }
 0x572   : > { %v8404_v33 = vpop.f32.mrf.mxu3 }
 0x573   : > { %4815 = vmatmul.bf16.gmra.mxu2 %v5530_v9  ;;  %v4644_v9 = vpop.f32.mrf.mxu0 }
 0x574   : > { %v4645_v61 = vadd.f32 %v4644_v9, %v4616_v16 }
 0x57a   : > { %v8410_v25 = vpop.f32.mrf.mxu3 }
 0x57b   : > { %4786 = vmatmul.bf16.gmra.mxu1 %v8286_v10  ;;  %v8419_v10 = vpop.permute.xlu0 %4880  ;;  %v4647_v32 = vpop.f32.mrf.mxu0 }
 0x582   : > { %v8421_v18 = vpop.f32.mrf.mxu3 }
 0x583   : > { %4820 = vmatmul.bf16.gmra.mxu2 %v5550_v24  ;;  %v8454_v24 = vpop.permute.xlu1 %4939 }
 0x58a   : > { %v8429_v14 = vpop.f32.mrf.mxu3 }
 0x58b   : > { %4791 = vmatmul.bf16.gmra.mxu1 %v8304_v47  ;;  %v8427_v47 = vpop.permute.xlu0 %4895 }
 0x592   : > { %v8448_v62 = vpop.f32.mrf.mxu3 }
 0x593   : > { %v8444_v8 = vpop.permute.xlu0 %4934 }
 0x596   : > { %v4690_v30 = vpop.f32.mrf.mxu2 }
 0x598   : > { %v4661_v39 = vpop.f32.mrf.mxu1 }
 0x599   : > { %v4662_v55 = vadd.f32 %v4661_v39, %v4633_v21  ;;  %v8463_v39 = vpop.permute.xlu2 %4944 }
 0x59a   : > { %v8457_v48 = vpop.f32.mrf.mxu3 }
 0x59b   : > { %v4691_v53 = vadd.f32 %v4690_v30, %v4662_v55  ;;  %v4643_v55 = vadd.f32 %v4642_v57, %v4614_v43 }
 0x59d   : > { %v4903_v58 = vmul.f32 %v8408_v7, %v4691_v53 }
 0x59e   : > { %v4692_v45 = vpop.f32.mrf.mxu2 }
 0x59f   : > { %v4967_v1 = vadd.f32 %v8431_v54, %v4903_v58 }
 0x5a0   : > { %v4663_v41 = vpop.f32.mrf.mxu1 }
 0x5a1   : > { %v4983_v51 = vmul.f32 0.1, %v4967_v1  ;;  %v4664_v26 = vadd.f32 %v4663_v41, %v4635_v60  ;;  %v4649_v41 = vpop.f32.mrf.mxu0 }
 0x5a2   : > { %v8466_v60 = vpop.f32.mrf.mxu3 }
 0x5a3   : > { %v4999_v52 = vmax.f32 %v4967_v1, %v4983_v51  ;;  %v4693_v28 = vadd.f32 %v4692_v45, %v4664_v26  ;;  %v8472_v26 = vpop.permute.xlu0 %4949 }
 0x5a5   : > { %5015 = vst [vmem:[%s8440_s28] sm:$0xff] %v4999_v52  ;;  %v4905_v44 = vmul.f32 %v8417_v27, %v4693_v28 }
 0x5a6   : > { %v4695_v13 = vpop.f32.mrf.mxu2 }
 0x5a7   : > { %v4969_v35 = vadd.f32 %v8444_v8, %v4905_v44 }
 0x5a8   : > { %v4666_v12 = vpop.f32.mrf.mxu1 }
 0x5a9   : > { %v4985_v49 = vmul.f32 0.1, %v4969_v35  ;;  %v4667_v37 = vadd.f32 %v4666_v12, %v4638_v22  ;;  %v4619_v22 = vadd.f32 %v8395_v63, %v8406_v19  ;;  %v8479_v12 = vpop.permute.xlu1 %4954  ;;  %v4621_v63 = vadd.f32 %v8399_v40, %v8415_v3 }
 0x5ab   : > { %v5001_v38 = vmax.f32 %v4969_v35, %v4985_v49  ;;  %v4696_v36 = vadd.f32 %v4695_v13, %v4667_v37  ;;  %v8477_v35 = vpop.f32.mrf.mxu3  ;;  %v4748_v37 = vpop.f32.mrf.mxu0  ;;  %v4648_v2 = vadd.f32 %v4647_v32, %v4619_v22  ;;  %v4650_v43 = vadd.f32 %v4649_v41, %v4621_v63 }
 0x5ad   : > { %5017 = vst [vmem:[%s8440_s28 + $0x10] sm:$0xff] %v5001_v38  ;;  %v4907_v56 = vmul.f32 %v8412_v6, %v4696_v36 }
 0x5ae   : > { %v4697_v46 = vpop.f32.mrf.mxu2 }
 0x5af   : > { %v4971_v50 = vadd.f32 %v8454_v24, %v4907_v56 }
 0x5b0   : > { %v4668_v29 = vpop.f32.mrf.mxu1 }
 0x5b1   : > { %v4987_v0 = vmul.f32 0.1, %v4971_v50  ;;  %v4669_v4 = vadd.f32 %v4668_v29, %v4640_v20 }
 0x5b3   : > { %v5003_v5 = vmax.f32 %v4971_v50, %v4987_v0  ;;  %v4698_v30 = vadd.f32 %v4697_v46, %v4669_v4  ;;  %v8486_v50 = vpop.permute.xlu2 %4959  ;;  %v4835_v4 = vpop.f32.mrf.mxu3 }
 0x5b5   : > { %5019 = vst [vmem:[%s8440_s28 + $0x20] sm:$0xff] %v5003_v5  ;;  %v4909_v21 = vmul.f32 %v8419_v10, %v4698_v30  ;;  %v4750_v5 = vpop.f32.mrf.mxu0 }
 0x5b6   : > { %v4700_v17 = vpop.f32.mrf.mxu2 }
 0x5b7   : > { %v4973_v42 = vadd.f32 %v8463_v39, %v4909_v21 }
 0x5b8   : > { %v4671_v53 = vpop.f32.mrf.mxu1 }
 0x5b9   : > { %v4989_v58 = vmul.f32 0.1, %v4973_v42  ;;  %v4672_v45 = vadd.f32 %v4671_v53, %v4643_v55 }
 0x5bb   : > { %v5005_v59 = vmax.f32 %v4973_v42, %v4989_v58  ;;  %v4701_v1 = vadd.f32 %v4700_v17, %v4672_v45  ;;  %v8493_v42 = vpop.permute.xlu0 %4964  ;;  %v4749_v58 = vadd.f32 %v4748_v37, %v8404_v33 }
 0x5bd   : > { %5021 = vst [vmem:[%s8440_s28 + $0x30] sm:$0xff] %v5005_v59  ;;  %v4911_v51 = vmul.f32 %v8425_v15, %v4701_v1  ;;  %v4837_v59 = vpop.f32.mrf.mxu3 }
 0x5be   : > { %v4702_v57 = vpop.f32.mrf.mxu2 }
 0x5bf   : > { %v4975_v52 = vadd.f32 %v8472_v26, %v4911_v51  ;;  %v4753_v51 = vpop.f32.mrf.mxu0 }
 0x5c0   : > { %v4673_v28 = vpop.f32.mrf.mxu1 }
 0x5c1   : > { %v4991_v44 = vmul.f32 0.1, %v4975_v52  ;;  %v4674_v13 = vadd.f32 %v4673_v28, %v4645_v61 }
 0x5c3   : > { %v5007_v11 = vmax.f32 %v4975_v52, %v4991_v44  ;;  %v4703_v23 = vadd.f32 %v4702_v57, %v4674_v13  ;;  %v4751_v44 = vadd.f32 %v4750_v5, %v8410_v25 }
 0x5c5   : > { %5023 = vst [vmem:[%s8440_s28 + $0x40] sm:$0xff] %v5007_v11  ;;  %v4913_v49 = vmul.f32 %v8423_v34, %v4703_v23  ;;  %v4840_v23 = vpop.f32.mrf.mxu3 }
 0x5c6   : > { %v4705_v9 = vpop.f32.mrf.mxu2 }
 0x5c7   : > { %v4977_v38 = vadd.f32 %v8479_v12, %v4913_v49 }
 0x5c8   : > { %v4676_v36 = vpop.f32.mrf.mxu1 }
 0x5c9   : > { %v4993_v56 = vmul.f32 0.1, %v4977_v38  ;;  %v4677_v46 = vadd.f32 %v4676_v36, %v4648_v2 }
 0x5cb   : > { %v5009_v19 = vmax.f32 %v4977_v38, %v4993_v56  ;;  %v4706_v20 = vadd.f32 %v4705_v9, %v4677_v46  ;;  %v4755_v9 = vpop.f32.mrf.mxu0  ;;  %v4754_v56 = vadd.f32 %v4753_v51, %v8421_v18 }
 0x5cd   : > { %5025 = vst [vmem:[%s8440_s28 + $0x50] sm:$0xff] %v5009_v19  ;;  %v4915_v29 = vmul.f32 %v8427_v47, %v4706_v20  ;;  %v4842_v20 = vpop.f32.mrf.mxu3 }
 0x5ce   : > { %v4707_v0 = vpop.f32.mrf.mxu2 }
 0x5cf   : > { %v4979_v32 = vadd.f32 %v8486_v50, %v4915_v29 }
 0x5d0   : > { %v4678_v30 = vpop.f32.mrf.mxu1 }
 0x5d1   : > { %v4995_v21 = vmul.f32 0.1, %v4979_v32  ;;  %v4679_v17 = vadd.f32 %v4678_v30, %v4650_v43 }
 0x5d3   : > { %v5011_v55 = vmax.f32 %v4979_v32, %v4995_v21  ;;  %v4708_v40 = vadd.f32 %v4707_v0, %v4679_v17  ;;  %v4756_v32 = vadd.f32 %v4755_v9, %v8429_v14 }
 0x5d5   : > { %5027 = vst [vmem:[%s8440_s28 + $0x60] sm:$0xff] %v5011_v55  ;;  %v4917_v3 = vmul.f32 %v8442_v31, %v4708_v40 }
 0x5d6   : > { %v4806_v53 = vpop.f32.mrf.mxu2 }
 0x5d7   : > { %v4981_v45 = vadd.f32 %v8493_v42, %v4917_v3  ;;  %v4845_v3 = vpop.f32.mrf.mxu3 }
 0x5d8   : > { %v4777_v16 = vpop.f32.mrf.mxu1 }
 0x5d9   : > { %v4997_v1 = vmul.f32 0.1, %v4981_v45  ;;  %v4778_v41 = vadd.f32 %v4777_v16, %v4749_v58 }
 0x5db   : > { %v5013_v57 = vmax.f32 %v4981_v45, %v4997_v1  ;;  %v4807_v61 = vadd.f32 %v4806_v53, %v4778_v41 }
 0x5dd   : > { %5029 = vst [vmem:[%s8440_s28 + $0x70] sm:$0xff] %v5013_v57  ;;  %v4836_v52 = vadd.f32 %v4835_v4, %v4807_v61  ;;  %v4758_v4 = vpop.f32.mrf.mxu0 }
 0x5de   : > { %v4808_v28 = vpop.f32.mrf.mxu2  ;;  %v4759_v53 = vadd.f32 %v4758_v4, %v8448_v62 }
 0x5df   : > { %v4904_v13 = vmul.f32 %v8408_v7, %v4836_v52  ;;  %v4847_v52 = vpop.f32.mrf.mxu3 }
 0x5e0   : > { %v4779_v22 = vpop.f32.mrf.mxu1 }
 0x5e1   : > { %v4968_v33 = vadd.f32 %v8431_v54, %v4904_v13  ;;  %v4780_v11 = vadd.f32 %v4779_v22, %v4751_v44 }
 0x5e3   : > { %v4984_v49 = vmul.f32 0.1, %v4968_v33  ;;  %v4809_v37 = vadd.f32 %v4808_v28, %v4780_v11 }
 0x5e5   : > { %v5000_v2 = vmax.f32 %v4968_v33, %v4984_v49  ;;  %v4838_v38 = vadd.f32 %v4837_v59, %v4809_v37  ;;  %v4760_v14 = vpop.f32.mrf.mxu0 }
 0x5e6   : > { %v4811_v36 = vpop.f32.mrf.mxu2  ;;  %v4761_v57 = vadd.f32 %v4760_v14, %v8457_v48 }
 0x5e7   : > { %5016 = vst [vmem:[%s8440_s28 + $0x8] sm:$0xff] %v5000_v2  ;;  %v4906_v46 = vmul.f32 %v8417_v27, %v4838_v38  ;;  %v4850_v9 = vpop.f32.mrf.mxu3 }
 0x5e8   : > { %v4782_v25 = vpop.f32.mrf.mxu1 }
 0x5e9   : > { %v4970_v7 = vadd.f32 %v8444_v8, %v4906_v46  ;;  %v4783_v63 = vadd.f32 %v4782_v25, %v4754_v56 }
 0x5eb   : > { %v4986_v19 = vmul.f32 0.1, %v4970_v7  ;;  %v4812_v54 = vadd.f32 %v4811_v36, %v4783_v63 }
 0x5ed   : > { %v5002_v29 = vmax.f32 %v4970_v7, %v4986_v19  ;;  %v4841_v0 = vadd.f32 %v4840_v23, %v4812_v54  ;;  %v4763_v44 = vpop.f32.mrf.mxu0 }
 0x5ee   : > { %v4813_v43 = vpop.f32.mrf.mxu2  ;;  %v4764_v11 = vadd.f32 %v4763_v44, %v8466_v60 }
 0x5ef   : > { %5018 = vst [vmem:[%s8440_s28 + $0x18] sm:$0xff] %v5002_v29  ;;  %v4908_v18 = vmul.f32 %v8412_v6, %v4841_v0  ;;  %v4852_v54 = vpop.f32.mrf.mxu3 }
 0x5f0   : > { %v4784_v5 = vpop.f32.mrf.mxu1 }
 0x5f1   : > { %v4972_v27 = vadd.f32 %v8454_v24, %v4908_v18  ;;  %v4785_v30 = vadd.f32 %v4784_v5, %v4756_v32 }
 0x5f3   : > { %v4988_v21 = vmul.f32 0.1, %v4972_v27  ;;  %v4814_v8 = vadd.f32 %v4813_v43, %v4785_v30 }
 0x5f5   : > { %v5004_v17 = vmax.f32 %v4972_v27, %v4988_v21  ;;  %v4843_v55 = vadd.f32 %v4842_v20, %v4814_v8  ;;  %v4765_v38 = vpop.f32.mrf.mxu0 }
 0x5f6   : > { %v4816_v40 = vpop.f32.mrf.mxu2  ;;  %v4766_v46 = vadd.f32 %v4765_v38, %v8477_v35 }
 0x5f7   : > { %5020 = vst [vmem:[%s8440_s28 + $0x28] sm:$0xff] %v5004_v17  ;;  %v4910_v58 = vmul.f32 %v8419_v10, %v4843_v55 }
 0x5f8   : > { %v4787_v45 = vpop.f32.mrf.mxu1 }
 0x5f9   : > { %v4974_v6 = vadd.f32 %v8463_v39, %v4910_v58  ;;  %v4788_v16 = vadd.f32 %v4787_v45, %v4759_v53 }
 0x5fb   : > { %v4990_v59 = vmul.f32 0.1, %v4974_v6  ;;  %v4817_v24 = vadd.f32 %v4816_v40, %v4788_v16 }
 0x5fd   : > { %v5006_v1 = vmax.f32 %v4974_v6, %v4990_v59  ;;  %v4846_v41 = vadd.f32 %v4845_v3, %v4817_v24 }
 0x5fe   : > { %v4818_v51 = vpop.f32.mrf.mxu2 }
 0x5ff   : > { %5022 = vst [vmem:[%s8440_s28 + $0x38] sm:$0xff] %v5006_v1  ;;  %v4912_v61 = vmul.f32 %v8425_v15, %v4846_v41 }
 0x600   : > { %v4789_v62 = vpop.f32.mrf.mxu1 }
 0x601   : > { %v4976_v10 = vadd.f32 %v8472_v26, %v4912_v61  ;;  %v4790_v28 = vadd.f32 %v4789_v62, %v4761_v57 }
 0x603   : > { %v4992_v13 = vmul.f32 0.1, %v4976_v10  ;;  %v4819_v39 = vadd.f32 %v4818_v51, %v4790_v28 }
 0x605   : > { %v5008_v22 = vmax.f32 %v4976_v10, %v4992_v13  ;;  %v4848_v33 = vadd.f32 %v4847_v52, %v4819_v39 }
 0x606   : > { %v4821_v49 = vpop.f32.mrf.mxu2 }
 0x607   : > { %5024 = vst [vmem:[%s8440_s28 + $0x48] sm:$0xff] %v5008_v22  ;;  %v4914_v23 = vmul.f32 %v8423_v34, %v4848_v33 }
 0x608   : > { %v4792_v48 = vpop.f32.mrf.mxu1 }
 0x609   : > { %v4978_v15 = vadd.f32 %v8479_v12, %v4914_v23  ;;  %v4793_v37 = vadd.f32 %v4792_v48, %v4764_v11 }
 0x60b   : > { %v4994_v2 = vmul.f32 0.1, %v4978_v15  ;;  %v4822_v26 = vadd.f32 %v4821_v49, %v4793_v37 }
 0x60d   : > { %v5010_v36 = vmax.f32 %v4978_v15, %v4994_v2  ;;  %v4851_v56 = vadd.f32 %v4850_v9, %v4822_v26 }
 0x60e   : > { %v4823_v63 = vpop.f32.mrf.mxu2 }
 0x60f   : > { %5026 = vst [vmem:[%s8440_s28 + $0x58] sm:$0xff] %v5010_v36  ;;  %v4916_v60 = vmul.f32 %v8427_v47, %v4851_v56 }
 0x610   : > { %v4794_v25 = vpop.f32.mrf.mxu1 }
 0x611   : > { %v4980_v34 = vadd.f32 %v8486_v50, %v4916_v60  ;;  %v4795_v7 = vadd.f32 %v4794_v25, %v4766_v46 }
 0x613   : > { %v4996_v12 = vmul.f32 0.1, %v4980_v34  ;;  %v4824_v19 = vadd.f32 %v4823_v63, %v4795_v7 }
 0x615   : > { %v5012_v20 = vmax.f32 %v4980_v34, %v4996_v12  ;;  %v4853_v29 = vadd.f32 %v4852_v54, %v4824_v19 }
 0x617   : > { %5028 = vst [vmem:[%s8440_s28 + $0x68] sm:$0xff] %v5012_v20  ;;  %v4918_v0 = vmul.f32 %v8442_v31, %v4853_v29 }
 0x619   : > { %v4982_v4 = vadd.f32 %v8493_v42, %v4918_v0 }
 0x61b   : > { %v4998_v35 = vmul.f32 0.1, %v4982_v4 }
 0x61d   : > { %v5014_v43 = vmax.f32 %v4982_v4, %v4998_v35 }
 0x61f   : > { %5030 = vst [vmem:[%s8440_s28 + $0x78] sm:$0xff] %v5014_v43 }
 0x620 PF: > { %s17_s24 = sadd.s32 1, %s6113_s24  }
 0x621   : > { %p14_p4 = scmp.ge.s32.totalorder %s17_s24, 4  }
 0x623   :  { %16 = sbr.rel (!%p14_p4) target bundleno = 1 (0x1), region = 78 }

</bundles_post_ra>
